<compile_context>
chip_gen: v6e
topology: v6e:2x2x1
jax: 0.10.0
libtpu: 0.0.40
codegen_flags: <defaults>
</compile_context>

<pallas_src>
import functools

import jax
import jax.numpy as jnp
from jax.experimental import pallas as pl
from jax.experimental.pallas import tpu as pltpu


def _round_up(x, m):
    return (x + m - 1) // m * m


# ----------------------------- Pallas kernels -----------------------------

def _gemm_kernel(a_ref, b_ref, bias_ref, o_ref, acc_ref, *, relu):
    k = pl.program_id(1)

    @pl.when(k == 0)
    def _():
        acc_ref[...] = jnp.zeros_like(acc_ref)

    acc_ref[...] += jnp.dot(a_ref[...], b_ref[...],
                            preferred_element_type=jnp.float32)

    @pl.when(k == pl.num_programs(1) - 1)
    def _():
        y = acc_ref[...] + bias_ref[...]
        if relu:
            y = jnp.maximum(y, 0.0)
        o_ref[...] = y.astype(o_ref.dtype)


def _gemm_res_kernel(a_ref, b_ref, bias_ref, res_ref, o_ref, acc_ref, *, relu):
    k = pl.program_id(1)

    @pl.when(k == 0)
    def _():
        acc_ref[...] = jnp.zeros_like(acc_ref)

    acc_ref[...] += jnp.dot(a_ref[...], b_ref[...],
                            preferred_element_type=jnp.float32)

    @pl.when(k == pl.num_programs(1) - 1)
    def _():
        y = acc_ref[...] + bias_ref[...] + res_ref[...]
        if relu:
            y = jnp.maximum(y, 0.0)
        o_ref[...] = y.astype(o_ref.dtype)


def _maxpool_kernel(p_ref, o_ref):
    # p: [9, TM, C] -> max over the 9 pooling taps
    o_ref[...] = jnp.max(p_ref[...], axis=0)


# ----------------------------- tiling helpers -----------------------------

def _m_tiling(M, max_tm=512):
    """Return (TM, M_pad): TM multiple of 8, M_pad multiple of TM."""
    m8 = _round_up(M, 8)
    if m8 <= max_tm:
        return m8, m8
    return max_tm, _round_up(M, max_tm)


def _k_tiling(K, max_tk=512):
    """Return (TK, K_pad): TK multiple of 128 dividing K_pad."""
    k128 = _round_up(K, 128)
    for tk in (max_tk, 256, 128):
        if k128 % tk == 0:
            return tk, k128
    return 128, k128


# ----------------------------- fused GEMM wrapper -----------------------------

def fused_gemm(a, b, bias, *, relu, residual=None):
    """out = act(A @ B + bias [+ residual]).  A:[M,K] B:[K,N] bias:[N]."""
    M, K = a.shape
    Kb, N = b.shape
    assert K == Kb
    TM, M_pad = _m_tiling(M)
    TK, K_pad = _k_tiling(K)
    grid = (M_pad // TM, K_pad // TK)

    # zero padding is exact for a GEMM; bf16 operands, f32 accumulation.
    a_p = jnp.pad(a, ((0, M_pad - M), (0, K_pad - K))).astype(jnp.bfloat16)
    b_p = jnp.pad(b, ((0, K_pad - K), (0, 0))).astype(jnp.bfloat16)
    bias_p = bias.reshape(1, N).astype(jnp.float32)

    in_specs = [
        pl.BlockSpec((TM, TK), lambda i, k: (i, k)),
        pl.BlockSpec((TK, N), lambda i, k: (k, 0)),
        pl.BlockSpec((1, N), lambda i, k: (0, 0)),
    ]
    operands = [a_p, b_p, bias_p]

    if residual is None:
        kernel = functools.partial(_gemm_kernel, relu=relu)
    else:
        r_p = jnp.pad(residual.astype(jnp.float32), ((0, M_pad - M), (0, 0)))
        in_specs.append(pl.BlockSpec((TM, N), lambda i, k: (i, 0)))
        operands.append(r_p)
        kernel = functools.partial(_gemm_res_kernel, relu=relu)

    flops = 2 * M_pad * K_pad * N
    bytes_accessed = int(a_p.size * 2 + b_p.size * 2 * grid[0]
                         + M_pad * N * 4
                         + (M_pad * N * 4 if residual is not None else 0))

    out = pl.pallas_call(
        kernel,
        grid=grid,
        in_specs=in_specs,
        out_specs=pl.BlockSpec((TM, N), lambda i, k: (i, 0)),
        out_shape=jax.ShapeDtypeStruct((M_pad, N), jnp.float32),
        scratch_shapes=[pltpu.VMEM((TM, N), jnp.float32)],
        compiler_params=pltpu.CompilerParams(
            dimension_semantics=("parallel", "arbitrary"),
            vmem_limit_bytes=32 * 1024 * 1024),
        cost_estimate=pl.CostEstimate(flops=flops, transcendentals=0,
                                      bytes_accessed=bytes_accessed),
    )(*operands)
    return out[:M]


# ----------------------------- conv / pool wrappers -----------------------------

def _conv_taps(x, kh, kw, stride, pad, pad_value):
    """Return list of kh*kw shifted/strided taps, each [N, Ho, Wo, C]."""
    N, H, W, C = x.shape
    xp = x
    if pad > 0:
        xp = jnp.pad(x, ((0, 0), (pad, pad), (pad, pad), (0, 0)),
                     constant_values=pad_value)
    Ho = (H + 2 * pad - kh) // stride + 1
    Wo = (W + 2 * pad - kw) // stride + 1
    taps = []
    for i in range(kh):
        for j in range(kw):
            taps.append(jax.lax.slice(
                xp,
                (0, i, j, 0),
                (N, i + (Ho - 1) * stride + 1, j + (Wo - 1) * stride + 1, C),
                (1, stride, stride, 1)))
    return taps, Ho, Wo


def _fold_bn(w, b, bn, eps=1e-5):
    """Fold eval-mode BatchNorm into conv weight/bias (PyTorch [Cout,Cin,kh,kw])."""
    gamma, beta, mean, var = bn
    scale = gamma / jnp.sqrt(var + eps)
    w_f = w * scale[:, None, None, None]
    b_f = (b - mean) * scale + beta
    return w_f, b_f


def conv2d_bn_act(x, conv, bn, *, stride, pad, relu, residual=None):
    """Conv2d + (folded) BN + optional residual add + optional ReLU as one GEMM."""
    w, b = conv
    if bn is not None:
        w, b = _fold_bn(w, b, bn)
    Cout, Cin, kh, kw = w.shape
    N = x.shape[0]
    taps, Ho, Wo = _conv_taps(x, kh, kw, stride, pad, 0.0)
    # A columns ordered (tap, cin); B rows match via transpose(w, (kh,kw,Cin,Cout)).
    A = jnp.concatenate(taps, axis=-1).reshape(N * Ho * Wo, kh * kw * Cin)
    B = jnp.transpose(w, (2, 3, 1, 0)).reshape(kh * kw * Cin, Cout)
    res2 = None
    if residual is not None:
        res2 = residual.reshape(N * Ho * Wo, Cout)
    y = fused_gemm(A, B, b, relu=relu, residual=res2)
    return y.reshape(N, Ho, Wo, Cout)


def maxpool_3x3_s2_p1(x):
    N, H, W, C = x.shape
    taps, Ho, Wo = _conv_taps(x, 3, 3, 2, 1, -jnp.inf)
    M = N * Ho * Wo
    p = jnp.stack(taps, axis=0).reshape(9, M, C)   # no HBM transpose
    TM, M_pad = _m_tiling(M)
    if M_pad != M:
        p = jnp.pad(p, ((0, 0), (0, M_pad - M), (0, 0)))
    out = pl.pallas_call(
        _maxpool_kernel,
        grid=(M_pad // TM,),
        in_specs=[pl.BlockSpec((9, TM, C), lambda i: (0, i, 0))],
        out_specs=pl.BlockSpec((TM, C), lambda i: (i, 0)),
        out_shape=jax.ShapeDtypeStruct((M_pad, C), jnp.float32),
        compiler_params=pltpu.CompilerParams(
            dimension_semantics=("parallel",)),
    )(p)
    return out[:M].reshape(N, Ho, Wo, C)


def gap_fc(x, fc_w, fc_b):
    """AdaptiveAvgPool2d((1,1)) + flatten + Linear, fused into one GEMM."""
    N, H, W, C = x.shape
    HW = H * W
    A = x.reshape(N, HW * C)                    # col index = p*C + c
    B = jnp.tile(fc_w, (HW, 1)) / float(HW)     # row p*C + c -> fc_w[c] / HW
    return fused_gemm(A, B, fc_b, relu=False)


# ----------------------------- parameters -----------------------------

def _conv_init(key, cout, cin, kh, kw):
    fan_in = cin * kh * kw
    w = jax.random.normal(key, (cout, cin, kh, kw), jnp.float32) \
        * (2.0 / fan_in) ** 0.5
    b = jnp.zeros((cout,), jnp.float32)
    return w, b


def _bn_init(c):
    # gamma, beta, running_mean, running_var  (PyTorch __init__ defaults)
    return (jnp.ones((c,), jnp.float32), jnp.zeros((c,), jnp.float32),
            jnp.zeros((c,), jnp.float32), jnp.ones((c,), jnp.float32))


def _make_residual_params(key, cin, cout, stride):
    k1, k2, k3 = jax.random.split(key, 3)
    p = {
        'conv1': _conv_init(k1, cout, cin, 3, 3),
        'bn1': _bn_init(cout),
        'conv2': _conv_init(k2, cout, cout, 3, 3),
        'bn2': _bn_init(cout),
    }
    if stride != 1 or cin != cout:
        p['sc_conv'] = _conv_init(k3, cout, cin, 1, 1)
        p['sc_bn'] = _bn_init(cout)
    return p, stride


def init_params(key, base_channels=16, num_classes=2):
    C = base_channels
    keys = jax.random.split(key, 9)
    return {
        'conv1': _conv_init(keys[0], C, 3, 7, 7),
        'bn1': _bn_init(C),
        'blocks': [
            _make_residual_params(keys[1], C, C, 1),          # layer2
            _make_residual_params(keys[2], C, C, 1),
            _make_residual_params(keys[3], C, 2 * C, 2),      # layer3
            _make_residual_params(keys[4], 2 * C, 2 * C, 1),
            _make_residual_params(keys[5], 2 * C, 4 * C, 2),  # layer4
            _make_residual_params(keys[6], 4 * C, 4 * C, 1),
        ],
        # fc stored pre-transposed: [4C, num_classes]
        'fc_w': jax.random.normal(keys[7], (4 * C, num_classes), jnp.float32)
                * (1.0 / (4 * C)) ** 0.5,
        'fc_b': jnp.zeros((num_classes,), jnp.float32),
    }


# ----------------------------- forward pass -----------------------------

def residual_block_fwd(x, p, stride):
    out = conv2d_bn_act(x, p['conv1'], p['bn1'],
                        stride=stride, pad=1, relu=True)
    if 'sc_conv' in p:
        sc = conv2d_bn_act(x, p['sc_conv'], p['sc_bn'],
                           stride=stride, pad=0, relu=False)
    else:
        sc = x
    # conv2 + bn2 + residual add + final ReLU fused in one Pallas GEMM
    return conv2d_bn_act(out, p['conv2'], p['bn2'],
                         stride=1, pad=1, relu=True, residual=sc)


def custom_cnn_fwd(params, x_nchw):
    x = jnp.transpose(x_nchw, (0, 2, 3, 1)).astype(jnp.float32)  # NCHW -> NHWC
    # layer1: conv7x7 s2 p3 + BN + ReLU (one GEMM) -> MaxPool 3x3 s2 p1
    x = conv2d_bn_act(x, params['conv1'], params['bn1'],
                      stride=2, pad=3, relu=True)
    x = maxpool_3x3_s2_p1(x)
    # layer2..layer4 (residual blocks)
    for blk, stride in params['blocks']:
        x = residual_block_fwd(x, blk, stride)
    # adaptive avg pool (1,1) + flatten + fc, fused
    return custom_head(params, x)


def custom_head(params, x):
    return gap_fc(x, params['fc_w'], params['fc_b'])


# ----------------------------- main -----------------------------

if __name__ == "__main__":
    key = jax.random.PRNGKey(0)
    k_params, k_x = jax.random.split(key)

    base_channels = 16
    num_classes = 2
    params = init_params(k_params, base_channels=base_channels,
                         num_classes=num_classes)

    # small input consistent with the module: NCHW, 3 input channels
    x = jax.random.normal(k_x, (2, 3, 32, 32), jnp.float32)

    fwd = jax.jit(lambda inp: custom_cnn_fwd(params, inp))
    logits = fwd(x)
    jax.block_until_ready(logits)
    assert logits.shape == (2, num_classes)
    assert bool(jnp.all(jnp.isfinite(logits)))
    print("KERNEL_OK")
</pallas_src>

<mosaic_0001>
module attributes {stable_mosaic.version = 11 : i64} {
  func.func @_gemm_kernel(%arg0: i32, %arg1: i32, %arg2: memref<512x256xbf16, #tpu.memory_space<vmem>>, %arg3: memref<256x16xbf16, #tpu.memory_space<vmem>>, %arg4: memref<1x16xf32, #tpu.memory_space<vmem>>, %arg5: memref<512x16xf32, #tpu.memory_space<vmem>>, %arg6: memref<512x16xf32, #tpu.memory_space<vmem>>) attributes {dimension_semantics = [#tpu.dimension_semantics<parallel>, #tpu.dimension_semantics<arbitrary>], iteration_bounds = array<i64: 1, 1>, scalar_prefetch = 0 : i64, scratch_operands = 1 : i64, tpu.core_type = #tpu.core_type<tc>, window_params = [{transform_indices = @transform_0, window_bounds = array<i64: 512, 256>}, {transform_indices = @transform_1, window_bounds = array<i64: 256, 16>}, {pipeline_mode = #tpu.pipeline_mode<synchronous>, transform_indices = @transform_2, window_bounds = array<i64: 1, 16>}, {transform_indices = @transform_3, window_bounds = array<i64: 512, 16>}]} {
    %c0_i32 = arith.constant 0 : i32
    %0 = arith.cmpi eq, %arg1, %c0_i32 : i32
    %1 = arith.extui %0 : i1 to i32
    %c0_i32_0 = arith.constant 0 : i32
    %2 = arith.cmpi ne, %1, %c0_i32_0 : i32
    scf.if %2 {
      %cst_10 = arith.constant 0.000000e+00 : f32
      %12 = vector.broadcast %cst_10 : f32 to vector<512x16xf32>
      %c0_11 = arith.constant 0 : index
      %c0_12 = arith.constant 0 : index
      %13 = vector.load %arg6[%c0_11, %c0_12] : memref<512x16xf32, #tpu.memory_space<vmem>>, vector<512x16xf32>
      tpu.vector_store %arg6[%c0_11, %c0_12], %12 {strides = array<i32>} : memref<512x16xf32, #tpu.memory_space<vmem>>, vector<512x16xf32>,
    } else {
    }
    %c0 = arith.constant 0 : index
    %c0_1 = arith.constant 0 : index
    %3 = vector.load %arg6[%c0, %c0_1] : memref<512x16xf32, #tpu.memory_space<vmem>>, vector<512x16xf32>
    %c0_2 = arith.constant 0 : index
    %c0_3 = arith.constant 0 : index
    %4 = vector.load %arg2[%c0_2, %c0_3] : memref<512x256xbf16, #tpu.memory_space<vmem>>, vector<512x256xbf16>
    %c0_4 = arith.constant 0 : index
    %c0_5 = arith.constant 0 : index
    %5 = vector.load %arg3[%c0_4, %c0_5] : memref<256x16xbf16, #tpu.memory_space<vmem>>, vector<256x16xbf16>
    %cst = arith.constant dense<0.000000e+00> : vector<512x16xf32>
    %6 = tpu.matmul %4, %5, %cst {dimension_numbers = #tpu.dot_dimension_numbers<[1], [0], [0], [1], [0, 0, 1, 1], [], []>} : vector<512x256xbf16>, vector<256x16xbf16>, vector<512x16xf32> -> vector<512x16xf32>
    %7 = arith.addf %3, %6 : vector<512x16xf32>
    %c0_6 = arith.constant 0 : index
    %c0_7 = arith.constant 0 : index
    %8 = vector.load %arg6[%c0_6, %c0_7] : memref<512x16xf32, #tpu.memory_space<vmem>>, vector<512x16xf32>
    tpu.vector_store %arg6[%c0_6, %c0_7], %7 {strides = array<i32>} : memref<512x16xf32, #tpu.memory_space<vmem>>, vector<512x16xf32>,
    %c0_i32_8 = arith.constant 0 : i32
    %9 = arith.cmpi eq, %arg1, %c0_i32_8 : i32
    %10 = arith.extui %9 : i1 to i32
    %c0_i32_9 = arith.constant 0 : i32
    %11 = arith.cmpi ne, %10, %c0_i32_9 : i32
    scf.if %11 {
      %c0_10 = arith.constant 0 : index
      %c0_11 = arith.constant 0 : index
      %12 = vector.load %arg6[%c0_10, %c0_11] : memref<512x16xf32, #tpu.memory_space<vmem>>, vector<512x16xf32>
      %c0_12 = arith.constant 0 : index
      %c0_13 = arith.constant 0 : index
      %13 = vector.load %arg4[%c0_12, %c0_13] : memref<1x16xf32, #tpu.memory_space<vmem>>, vector<1x16xf32>
      %14 = vector.broadcast %13 : vector<1x16xf32> to vector<512x16xf32>
      %15 = arith.addf %12, %14 : vector<512x16xf32>
      %cst_14 = arith.constant 0.000000e+00 : f32
      %16 = vector.broadcast %cst_14 : f32 to vector<512x16xf32>
      %17 = arith.maximumf %15, %16 : vector<512x16xf32>
      %c0_15 = arith.constant 0 : index
      %c0_16 = arith.constant 0 : index
      %18 = vector.load %arg5[%c0_15, %c0_16] : memref<512x16xf32, #tpu.memory_space<vmem>>, vector<512x16xf32>
      tpu.vector_store %arg5[%c0_15, %c0_16], %17 {strides = array<i32>} : memref<512x16xf32, #tpu.memory_space<vmem>>, vector<512x16xf32>,
    } else {
    }
    return
  }
  func.func @transform_0(%arg0: i32, %arg1: i32) -> (i32, i32) {
    %c0_i32 = arith.constant 0 : i32
    return %arg0, %arg1 : i32, i32
  }
  func.func @transform_1(%arg0: i32, %arg1: i32) -> (i32, i32) {
    %c0_i32 = arith.constant 0 : i32
    %c0_i32_0 = arith.constant 0 : i32
    return %arg1, %c0_i32 : i32, i32
  }
  func.func @transform_2(%arg0: i32, %arg1: i32) -> (i32, i32) {
    %c0_i32 = arith.constant 0 : i32
    %c0_i32_0 = arith.constant 0 : i32
    %c0_i32_1 = arith.constant 0 : i32
    return %c0_i32, %c0_i32_0 : i32, i32
  }
  func.func @transform_3(%arg0: i32, %arg1: i32) -> (i32, i32) {
    %c0_i32 = arith.constant 0 : i32
    %c0_i32_0 = arith.constant 0 : i32
    return %arg0, %c0_i32 : i32, i32
  }
}

module attributes {stable_mosaic.version = 11 : i64} {
  func.func @_maxpool_kernel(%arg0: i32, %arg1: memref<9x128x16xf32, #tpu.memory_space<vmem>>, %arg2: memref<128x16xf32, #tpu.memory_space<vmem>>) attributes {dimension_semantics = [#tpu.dimension_semantics<parallel>], iteration_bounds = array<i64: 1>, scalar_prefetch = 0 : i64, scratch_operands = 0 : i64, tpu.core_type = #tpu.core_type<tc>, window_params = [{transform_indices = @transform_0, window_bounds = array<i64: 9, 128, 16>}, {transform_indices = @transform_1, window_bounds = array<i64: 128, 16>}]} {
    %c0 = arith.constant 0 : index
    %c0_0 = arith.constant 0 : index
    %c0_1 = arith.constant 0 : index
    %0 = vector.load %arg1[%c0, %c0_0, %c0_1] : memref<9x128x16xf32, #tpu.memory_space<vmem>>, vector<9x128x16xf32>
    %cst = arith.constant dense<0xFF800000> : vector<128x16xf32>
    %1 = vector.multi_reduction <maximumf>, %0, %cst [0] : vector<9x128x16xf32> to vector<128x16xf32>
    %c0_2 = arith.constant 0 : index
    %c0_3 = arith.constant 0 : index
    %2 = vector.load %arg2[%c0_2, %c0_3] : memref<128x16xf32, #tpu.memory_space<vmem>>, vector<128x16xf32>
    tpu.vector_store %arg2[%c0_2, %c0_3], %1 {strides = array<i32>} : memref<128x16xf32, #tpu.memory_space<vmem>>, vector<128x16xf32>,
    return
  }
  func.func @transform_0(%arg0: i32) -> (i32, i32, i32) {
    %c0_i32 = arith.constant 0 : i32
    %c0_i32_0 = arith.constant 0 : i32
    %c0_i32_1 = arith.constant 0 : i32
    return %c0_i32, %arg0, %c0_i32_0 : i32, i32, i32
  }
  func.func @transform_1(%arg0: i32) -> (i32, i32) {
    %c0_i32 = arith.constant 0 : i32
    %c0_i32_0 = arith.constant 0 : i32
    return %arg0, %c0_i32 : i32, i32
  }
}

module attributes {stable_mosaic.version = 11 : i64} {
  func.func @_gemm_kernel(%arg0: i32, %arg1: i32, %arg2: memref<128x256xbf16, #tpu.memory_space<vmem>>, %arg3: memref<256x16xbf16, #tpu.memory_space<vmem>>, %arg4: memref<1x16xf32, #tpu.memory_space<vmem>>, %arg5: memref<128x16xf32, #tpu.memory_space<vmem>>, %arg6: memref<128x16xf32, #tpu.memory_space<vmem>>) attributes {dimension_semantics = [#tpu.dimension_semantics<parallel>, #tpu.dimension_semantics<arbitrary>], iteration_bounds = array<i64: 1, 1>, scalar_prefetch = 0 : i64, scratch_operands = 1 : i64, tpu.core_type = #tpu.core_type<tc>, window_params = [{transform_indices = @transform_0, window_bounds = array<i64: 128, 256>}, {transform_indices = @transform_1, window_bounds = array<i64: 256, 16>}, {pipeline_mode = #tpu.pipeline_mode<synchronous>, transform_indices = @transform_2, window_bounds = array<i64: 1, 16>}, {transform_indices = @transform_3, window_bounds = array<i64: 128, 16>}]} {
    %c0_i32 = arith.constant 0 : i32
    %0 = arith.cmpi eq, %arg1, %c0_i32 : i32
    %1 = arith.extui %0 : i1 to i32
    %c0_i32_0 = arith.constant 0 : i32
    %2 = arith.cmpi ne, %1, %c0_i32_0 : i32
    scf.if %2 {
      %cst_10 = arith.constant 0.000000e+00 : f32
      %12 = vector.broadcast %cst_10 : f32 to vector<128x16xf32>
      %c0_11 = arith.constant 0 : index
      %c0_12 = arith.constant 0 : index
      %13 = vector.load %arg6[%c0_11, %c0_12] : memref<128x16xf32, #tpu.memory_space<vmem>>, vector<128x16xf32>
      tpu.vector_store %arg6[%c0_11, %c0_12], %12 {strides = array<i32>} : memref<128x16xf32, #tpu.memory_space<vmem>>, vector<128x16xf32>,
    } else {
    }
    %c0 = arith.constant 0 : index
    %c0_1 = arith.constant 0 : index
    %3 = vector.load %arg6[%c0, %c0_1] : memref<128x16xf32, #tpu.memory_space<vmem>>, vector<128x16xf32>
    %c0_2 = arith.constant 0 : index
    %c0_3 = arith.constant 0 : index
    %4 = vector.load %arg2[%c0_2, %c0_3] : memref<128x256xbf16, #tpu.memory_space<vmem>>, vector<128x256xbf16>
    %c0_4 = arith.constant 0 : index
    %c0_5 = arith.constant 0 : index
    %5 = vector.load %arg3[%c0_4, %c0_5] : memref<256x16xbf16, #tpu.memory_space<vmem>>, vector<256x16xbf16>
    %cst = arith.constant dense<0.000000e+00> : vector<128x16xf32>
    %6 = tpu.matmul %4, %5, %cst {dimension_numbers = #tpu.dot_dimension_numbers<[1], [0], [0], [1], [0, 0, 1, 1], [], []>} : vector<128x256xbf16>, vector<256x16xbf16>, vector<128x16xf32> -> vector<128x16xf32>
    %7 = arith.addf %3, %6 : vector<128x16xf32>
    %c0_6 = arith.constant 0 : index
    %c0_7 = arith.constant 0 : index
    %8 = vector.load %arg6[%c0_6, %c0_7] : memref<128x16xf32, #tpu.memory_space<vmem>>, vector<128x16xf32>
    tpu.vector_store %arg6[%c0_6, %c0_7], %7 {strides = array<i32>} : memref<128x16xf32, #tpu.memory_space<vmem>>, vector<128x16xf32>,
    %c0_i32_8 = arith.constant 0 : i32
    %9 = arith.cmpi eq, %arg1, %c0_i32_8 : i32
    %10 = arith.extui %9 : i1 to i32
    %c0_i32_9 = arith.constant 0 : i32
    %11 = arith.cmpi ne, %10, %c0_i32_9 : i32
    scf.if %11 {
      %c0_10 = arith.constant 0 : index
      %c0_11 = arith.constant 0 : index
      %12 = vector.load %arg6[%c0_10, %c0_11] : memref<128x16xf32, #tpu.memory_space<vmem>>, vector<128x16xf32>
      %c0_12 = arith.constant 0 : index
      %c0_13 = arith.constant 0 : index
      %13 = vector.load %arg4[%c0_12, %c0_13] : memref<1x16xf32, #tpu.memory_space<vmem>>, vector<1x16xf32>
      %14 = vector.broadcast %13 : vector<1x16xf32> to vector<128x16xf32>
      %15 = arith.addf %12, %14 : vector<128x16xf32>
      %cst_14 = arith.constant 0.000000e+00 : f32
      %16 = vector.broadcast %cst_14 : f32 to vector<128x16xf32>
      %17 = arith.maximumf %15, %16 : vector<128x16xf32>
      %c0_15 = arith.constant 0 : index
      %c0_16 = arith.constant 0 : index
      %18 = vector.load %arg5[%c0_15, %c0_16] : memref<128x16xf32, #tpu.memory_space<vmem>>, vector<128x16xf32>
      tpu.vector_store %arg5[%c0_15, %c0_16], %17 {strides = array<i32>} : memref<128x16xf32, #tpu.memory_space<vmem>>, vector<128x16xf32>,
    } else {
    }
    return
  }
  func.func @transform_0(%arg0: i32, %arg1: i32) -> (i32, i32) {
    %c0_i32 = arith.constant 0 : i32
    return %arg0, %arg1 : i32, i32
  }
  func.func @transform_1(%arg0: i32, %arg1: i32) -> (i32, i32) {
    %c0_i32 = arith.constant 0 : i32
    %c0_i32_0 = arith.constant 0 : i32
    return %arg1, %c0_i32 : i32, i32
  }
  func.func @transform_2(%arg0: i32, %arg1: i32) -> (i32, i32) {
    %c0_i32 = arith.constant 0 : i32
    %c0_i32_0 = arith.constant 0 : i32
    %c0_i32_1 = arith.constant 0 : i32
    return %c0_i32, %c0_i32_0 : i32, i32
  }
  func.func @transform_3(%arg0: i32, %arg1: i32) -> (i32, i32) {
    %c0_i32 = arith.constant 0 : i32
    %c0_i32_0 = arith.constant 0 : i32
    return %arg0, %c0_i32 : i32, i32
  }
}

module attributes {stable_mosaic.version = 11 : i64} {
  func.func @_gemm_res_kernel(%arg0: i32, %arg1: i32, %arg2: memref<128x256xbf16, #tpu.memory_space<vmem>>, %arg3: memref<256x16xbf16, #tpu.memory_space<vmem>>, %arg4: memref<1x16xf32, #tpu.memory_space<vmem>>, %arg5: memref<128x16xf32, #tpu.memory_space<vmem>>, %arg6: memref<128x16xf32, #tpu.memory_space<vmem>>, %arg7: memref<128x16xf32, #tpu.memory_space<vmem>>) attributes {dimension_semantics = [#tpu.dimension_semantics<parallel>, #tpu.dimension_semantics<arbitrary>], iteration_bounds = array<i64: 1, 1>, scalar_prefetch = 0 : i64, scratch_operands = 1 : i64, tpu.core_type = #tpu.core_type<tc>, window_params = [{transform_indices = @transform_0, window_bounds = array<i64: 128, 256>}, {transform_indices = @transform_1, window_bounds = array<i64: 256, 16>}, {pipeline_mode = #tpu.pipeline_mode<synchronous>, transform_indices = @transform_2, window_bounds = array<i64: 1, 16>}, {transform_indices = @transform_3, window_bounds = array<i64: 128, 16>}, {transform_indices = @transform_4, window_bounds = array<i64: 128, 16>}]} {
    %c0_i32 = arith.constant 0 : i32
    %0 = arith.cmpi eq, %arg1, %c0_i32 : i32
    %1 = arith.extui %0 : i1 to i32
    %c0_i32_0 = arith.constant 0 : i32
    %2 = arith.cmpi ne, %1, %c0_i32_0 : i32
    scf.if %2 {
      %cst_10 = arith.constant 0.000000e+00 : f32
      %12 = vector.broadcast %cst_10 : f32 to vector<128x16xf32>
      %c0_11 = arith.constant 0 : index
      %c0_12 = arith.constant 0 : index
      %13 = vector.load %arg7[%c0_11, %c0_12] : memref<128x16xf32, #tpu.memory_space<vmem>>, vector<128x16xf32>
      tpu.vector_store %arg7[%c0_11, %c0_12], %12 {strides = array<i32>} : memref<128x16xf32, #tpu.memory_space<vmem>>, vector<128x16xf32>,
    } else {
    }
    %c0 = arith.constant 0 : index
    %c0_1 = arith.constant 0 : index
    %3 = vector.load %arg7[%c0, %c0_1] : memref<128x16xf32, #tpu.memory_space<vmem>>, vector<128x16xf32>
    %c0_2 = arith.constant 0 : index
    %c0_3 = arith.constant 0 : index
    %4 = vector.load %arg2[%c0_2, %c0_3] : memref<128x256xbf16, #tpu.memory_space<vmem>>, vector<128x256xbf16>
    %c0_4 = arith.constant 0 : index
    %c0_5 = arith.constant 0 : index
    %5 = vector.load %arg3[%c0_4, %c0_5] : memref<256x16xbf16, #tpu.memory_space<vmem>>, vector<256x16xbf16>
    %cst = arith.constant dense<0.000000e+00> : vector<128x16xf32>
    %6 = tpu.matmul %4, %5, %cst {dimension_numbers = #tpu.dot_dimension_numbers<[1], [0], [0], [1], [0, 0, 1, 1], [], []>} : vector<128x256xbf16>, vector<256x16xbf16>, vector<128x16xf32> -> vector<128x16xf32>
    %7 = arith.addf %3, %6 : vector<128x16xf32>
    %c0_6 = arith.constant 0 : index
    %c0_7 = arith.constant 0 : index
    %8 = vector.load %arg7[%c0_6, %c0_7] : memref<128x16xf32, #tpu.memory_space<vmem>>, vector<128x16xf32>
    tpu.vector_store %arg7[%c0_6, %c0_7], %7 {strides = array<i32>} : memref<128x16xf32, #tpu.memory_space<vmem>>, vector<128x16xf32>,
    %c0_i32_8 = arith.constant 0 : i32
    %9 = arith.cmpi eq, %arg1, %c0_i32_8 : i32
    %10 = arith.extui %9 : i1 to i32
    %c0_i32_9 = arith.constant 0 : i32
    %11 = arith.cmpi ne, %10, %c0_i32_9 : i32
    scf.if %11 {
      %c0_10 = arith.constant 0 : index
      %c0_11 = arith.constant 0 : index
      %12 = vector.load %arg7[%c0_10, %c0_11] : memref<128x16xf32, #tpu.memory_space<vmem>>, vector<128x16xf32>
      %c0_12 = arith.constant 0 : index
      %c0_13 = arith.constant 0 : index
      %13 = vector.load %arg4[%c0_12, %c0_13] : memref<1x16xf32, #tpu.memory_space<vmem>>, vector<1x16xf32>
      %14 = vector.broadcast %13 : vector<1x16xf32> to vector<128x16xf32>
      %15 = arith.addf %12, %14 : vector<128x16xf32>
      %c0_14 = arith.constant 0 : index
      %c0_15 = arith.constant 0 : index
      %16 = vector.load %arg5[%c0_14, %c0_15] : memref<128x16xf32, #tpu.memory_space<vmem>>, vector<128x16xf32>
      %17 = arith.addf %15, %16 : vector<128x16xf32>
      %cst_16 = arith.constant 0.000000e+00 : f32
      %18 = vector.broadcast %cst_16 : f32 to vector<128x16xf32>
      %19 = arith.maximumf %17, %18 : vector<128x16xf32>
      %c0_17 = arith.constant 0 : index
      %c0_18 = arith.constant 0 : index
      %20 = vector.load %arg6[%c0_17, %c0_18] : memref<128x16xf32, #tpu.memory_space<vmem>>, vector<128x16xf32>
      tpu.vector_store %arg6[%c0_17, %c0_18], %19 {strides = array<i32>} : memref<128x16xf32, #tpu.memory_space<vmem>>, vector<128x16xf32>,
    } else {
    }
    return
  }
  func.func @transform_0(%arg0: i32, %arg1: i32) -> (i32, i32) {
    %c0_i32 = arith.constant 0 : i32
    return %arg0, %arg1 : i32, i32
  }
  func.func @transform_1(%arg0: i32, %arg1: i32) -> (i32, i32) {
    %c0_i32 = arith.constant 0 : i32
    %c0_i32_0 = arith.constant 0 : i32
    return %arg1, %c0_i32 : i32, i32
  }
  func.func @transform_2(%arg0: i32, %arg1: i32) -> (i32, i32) {
    %c0_i32 = arith.constant 0 : i32
    %c0_i32_0 = arith.constant 0 : i32
    %c0_i32_1 = arith.constant 0 : i32
    return %c0_i32, %c0_i32_0 : i32, i32
  }
  func.func @transform_3(%arg0: i32, %arg1: i32) -> (i32, i32) {
    %c0_i32 = arith.constant 0 : i32
    %c0_i32_0 = arith.constant 0 : i32
    return %arg0, %c0_i32 : i32, i32
  }
  func.func @transform_4(%arg0: i32, %arg1: i32) -> (i32, i32) {
    %c0_i32 = arith.constant 0 : i32
    %c0_i32_0 = arith.constant 0 : i32
    return %arg0, %c0_i32 : i32, i32
  }
}

module attributes {stable_mosaic.version = 11 : i64} {
  func.func @_gemm_kernel(%arg0: i32, %arg1: i32, %arg2: memref<32x256xbf16, #tpu.memory_space<vmem>>, %arg3: memref<256x32xbf16, #tpu.memory_space<vmem>>, %arg4: memref<1x32xf32, #tpu.memory_space<vmem>>, %arg5: memref<32x32xf32, #tpu.memory_space<vmem>>, %arg6: memref<32x32xf32, #tpu.memory_space<vmem>>) attributes {dimension_semantics = [#tpu.dimension_semantics<parallel>, #tpu.dimension_semantics<arbitrary>], iteration_bounds = array<i64: 1, 1>, scalar_prefetch = 0 : i64, scratch_operands = 1 : i64, tpu.core_type = #tpu.core_type<tc>, window_params = [{transform_indices = @transform_0, window_bounds = array<i64: 32, 256>}, {transform_indices = @transform_1, window_bounds = array<i64: 256, 32>}, {pipeline_mode = #tpu.pipeline_mode<synchronous>, transform_indices = @transform_2, window_bounds = array<i64: 1, 32>}, {transform_indices = @transform_3, window_bounds = array<i64: 32, 32>}]} {
    %c0_i32 = arith.constant 0 : i32
    %0 = arith.cmpi eq, %arg1, %c0_i32 : i32
    %1 = arith.extui %0 : i1 to i32
    %c0_i32_0 = arith.constant 0 : i32
    %2 = arith.cmpi ne, %1, %c0_i32_0 : i32
    scf.if %2 {
      %cst_10 = arith.constant 0.000000e+00 : f32
      %12 = vector.broadcast %cst_10 : f32 to vector<32x32xf32>
      %c0_11 = arith.constant 0 : index
      %c0_12 = arith.constant 0 : index
      %13 = vector.load %arg6[%c0_11, %c0_12] : memref<32x32xf32, #tpu.memory_space<vmem>>, vector<32x32xf32>
      tpu.vector_store %arg6[%c0_11, %c0_12], %12 {strides = array<i32>} : memref<32x32xf32, #tpu.memory_space<vmem>>, vector<32x32xf32>,
    } else {
    }
    %c0 = arith.constant 0 : index
    %c0_1 = arith.constant 0 : index
    %3 = vector.load %arg6[%c0, %c0_1] : memref<32x32xf32, #tpu.memory_space<vmem>>, vector<32x32xf32>
    %c0_2 = arith.constant 0 : index
    %c0_3 = arith.constant 0 : index
    %4 = vector.load %arg2[%c0_2, %c0_3] : memref<32x256xbf16, #tpu.memory_space<vmem>>, vector<32x256xbf16>
    %c0_4 = arith.constant 0 : index
    %c0_5 = arith.constant 0 : index
    %5 = vector.load %arg3[%c0_4, %c0_5] : memref<256x32xbf16, #tpu.memory_space<vmem>>, vector<256x32xbf16>
    %cst = arith.constant dense<0.000000e+00> : vector<32x32xf32>
    %6 = tpu.matmul %4, %5, %cst {dimension_numbers = #tpu.dot_dimension_numbers<[1], [0], [0], [1], [0, 0, 1, 1], [], []>} : vector<32x256xbf16>, vector<256x32xbf16>, vector<32x32xf32> -> vector<32x32xf32>
    %7 = arith.addf %3, %6 : vector<32x32xf32>
    %c0_6 = arith.constant 0 : index
    %c0_7 = arith.constant 0 : index
    %8 = vector.load %arg6[%c0_6, %c0_7] : memref<32x32xf32, #tpu.memory_space<vmem>>, vector<32x32xf32>
    tpu.vector_store %arg6[%c0_6, %c0_7], %7 {strides = array<i32>} : memref<32x32xf32, #tpu.memory_space<vmem>>, vector<32x32xf32>,
    %c0_i32_8 = arith.constant 0 : i32
    %9 = arith.cmpi eq, %arg1, %c0_i32_8 : i32
    %10 = arith.extui %9 : i1 to i32
    %c0_i32_9 = arith.constant 0 : i32
    %11 = arith.cmpi ne, %10, %c0_i32_9 : i32
    scf.if %11 {
      %c0_10 = arith.constant 0 : index
      %c0_11 = arith.constant 0 : index
      %12 = vector.load %arg6[%c0_10, %c0_11] : memref<32x32xf32, #tpu.memory_space<vmem>>, vector<32x32xf32>
      %c0_12 = arith.constant 0 : index
      %c0_13 = arith.constant 0 : index
      %13 = vector.load %arg4[%c0_12, %c0_13] : memref<1x32xf32, #tpu.memory_space<vmem>>, vector<1x32xf32>
      %14 = vector.broadcast %13 : vector<1x32xf32> to vector<32x32xf32>
      %15 = arith.addf %12, %14 : vector<32x32xf32>
      %cst_14 = arith.constant 0.000000e+00 : f32
      %16 = vector.broadcast %cst_14 : f32 to vector<32x32xf32>
      %17 = arith.maximumf %15, %16 : vector<32x32xf32>
      %c0_15 = arith.constant 0 : index
      %c0_16 = arith.constant 0 : index
      %18 = vector.load %arg5[%c0_15, %c0_16] : memref<32x32xf32, #tpu.memory_space<vmem>>, vector<32x32xf32>
      tpu.vector_store %arg5[%c0_15, %c0_16], %17 {strides = array<i32>} : memref<32x32xf32, #tpu.memory_space<vmem>>, vector<32x32xf32>,
    } else {
    }
    return
  }
  func.func @transform_0(%arg0: i32, %arg1: i32) -> (i32, i32) {
    %c0_i32 = arith.constant 0 : i32
    return %arg0, %arg1 : i32, i32
  }
  func.func @transform_1(%arg0: i32, %arg1: i32) -> (i32, i32) {
    %c0_i32 = arith.constant 0 : i32
    %c0_i32_0 = arith.constant 0 : i32
    return %arg1, %c0_i32 : i32, i32
  }
  func.func @transform_2(%arg0: i32, %arg1: i32) -> (i32, i32) {
    %c0_i32 = arith.constant 0 : i32
    %c0_i32_0 = arith.constant 0 : i32
    %c0_i32_1 = arith.constant 0 : i32
    return %c0_i32, %c0_i32_0 : i32, i32
  }
  func.func @transform_3(%arg0: i32, %arg1: i32) -> (i32, i32) {
    %c0_i32 = arith.constant 0 : i32
    %c0_i32_0 = arith.constant 0 : i32
    return %arg0, %c0_i32 : i32, i32
  }
}

module attributes {stable_mosaic.version = 11 : i64} {
  func.func @_gemm_kernel(%arg0: i32, %arg1: i32, %arg2: memref<32x128xbf16, #tpu.memory_space<vmem>>, %arg3: memref<128x32xbf16, #tpu.memory_space<vmem>>, %arg4: memref<1x32xf32, #tpu.memory_space<vmem>>, %arg5: memref<32x32xf32, #tpu.memory_space<vmem>>, %arg6: memref<32x32xf32, #tpu.memory_space<vmem>>) attributes {dimension_semantics = [#tpu.dimension_semantics<parallel>, #tpu.dimension_semantics<arbitrary>], iteration_bounds = array<i64: 1, 1>, scalar_prefetch = 0 : i64, scratch_operands = 1 : i64, tpu.core_type = #tpu.core_type<tc>, window_params = [{transform_indices = @transform_0, window_bounds = array<i64: 32, 128>}, {transform_indices = @transform_1, window_bounds = array<i64: 128, 32>}, {pipeline_mode = #tpu.pipeline_mode<synchronous>, transform_indices = @transform_2, window_bounds = array<i64: 1, 32>}, {transform_indices = @transform_3, window_bounds = array<i64: 32, 32>}]} {
    %c0_i32 = arith.constant 0 : i32
    %0 = arith.cmpi eq, %arg1, %c0_i32 : i32
    %1 = arith.extui %0 : i1 to i32
    %c0_i32_0 = arith.constant 0 : i32
    %2 = arith.cmpi ne, %1, %c0_i32_0 : i32
    scf.if %2 {
      %cst_10 = arith.constant 0.000000e+00 : f32
      %12 = vector.broadcast %cst_10 : f32 to vector<32x32xf32>
      %c0_11 = arith.constant 0 : index
      %c0_12 = arith.constant 0 : index
      %13 = vector.load %arg6[%c0_11, %c0_12] : memref<32x32xf32, #tpu.memory_space<vmem>>, vector<32x32xf32>
      tpu.vector_store %arg6[%c0_11, %c0_12], %12 {strides = array<i32>} : memref<32x32xf32, #tpu.memory_space<vmem>>, vector<32x32xf32>,
    } else {
    }
    %c0 = arith.constant 0 : index
    %c0_1 = arith.constant 0 : index
    %3 = vector.load %arg6[%c0, %c0_1] : memref<32x32xf32, #tpu.memory_space<vmem>>, vector<32x32xf32>
    %c0_2 = arith.constant 0 : index
    %c0_3 = arith.constant 0 : index
    %4 = vector.load %arg2[%c0_2, %c0_3] : memref<32x128xbf16, #tpu.memory_space<vmem>>, vector<32x128xbf16>
    %c0_4 = arith.constant 0 : index
    %c0_5 = arith.constant 0 : index
    %5 = vector.load %arg3[%c0_4, %c0_5] : memref<128x32xbf16, #tpu.memory_space<vmem>>, vector<128x32xbf16>
    %cst = arith.constant dense<0.000000e+00> : vector<32x32xf32>
    %6 = tpu.matmul %4, %5, %cst {dimension_numbers = #tpu.dot_dimension_numbers<[1], [0], [0], [1], [0, 0, 1, 1], [], []>} : vector<32x128xbf16>, vector<128x32xbf16>, vector<32x32xf32> -> vector<32x32xf32>
    %7 = arith.addf %3, %6 : vector<32x32xf32>
    %c0_6 = arith.constant 0 : index
    %c0_7 = arith.constant 0 : index
    %8 = vector.load %arg6[%c0_6, %c0_7] : memref<32x32xf32, #tpu.memory_space<vmem>>, vector<32x32xf32>
    tpu.vector_store %arg6[%c0_6, %c0_7], %7 {strides = array<i32>} : memref<32x32xf32, #tpu.memory_space<vmem>>, vector<32x32xf32>,
    %c0_i32_8 = arith.constant 0 : i32
    %9 = arith.cmpi eq, %arg1, %c0_i32_8 : i32
    %10 = arith.extui %9 : i1 to i32
    %c0_i32_9 = arith.constant 0 : i32
    %11 = arith.cmpi ne, %10, %c0_i32_9 : i32
    scf.if %11 {
      %c0_10 = arith.constant 0 : index
      %c0_11 = arith.constant 0 : index
      %12 = vector.load %arg6[%c0_10, %c0_11] : memref<32x32xf32, #tpu.memory_space<vmem>>, vector<32x32xf32>
      %c0_12 = arith.constant 0 : index
      %c0_13 = arith.constant 0 : index
      %13 = vector.load %arg4[%c0_12, %c0_13] : memref<1x32xf32, #tpu.memory_space<vmem>>, vector<1x32xf32>
      %14 = vector.broadcast %13 : vector<1x32xf32> to vector<32x32xf32>
      %15 = arith.addf %12, %14 : vector<32x32xf32>
      %c0_14 = arith.constant 0 : index
      %c0_15 = arith.constant 0 : index
      %16 = vector.load %arg5[%c0_14, %c0_15] : memref<32x32xf32, #tpu.memory_space<vmem>>, vector<32x32xf32>
      tpu.vector_store %arg5[%c0_14, %c0_15], %15 {strides = array<i32>} : memref<32x32xf32, #tpu.memory_space<vmem>>, vector<32x32xf32>,
    } else {
    }
    return
  }
  func.func @transform_0(%arg0: i32, %arg1: i32) -> (i32, i32) {
    %c0_i32 = arith.constant 0 : i32
    return %arg0, %arg1 : i32, i32
  }
  func.func @transform_1(%arg0: i32, %arg1: i32) -> (i32, i32) {
    %c0_i32 = arith.constant 0 : i32
    %c0_i32_0 = arith.constant 0 : i32
    return %arg1, %c0_i32 : i32, i32
  }
  func.func @transform_2(%arg0: i32, %arg1: i32) -> (i32, i32) {
    %c0_i32 = arith.constant 0 : i32
    %c0_i32_0 = arith.constant 0 : i32
    %c0_i32_1 = arith.constant 0 : i32
    return %c0_i32, %c0_i32_0 : i32, i32
  }
  func.func @transform_3(%arg0: i32, %arg1: i32) -> (i32, i32) {
    %c0_i32 = arith.constant 0 : i32
    %c0_i32_0 = arith.constant 0 : i32
    return %arg0, %c0_i32 : i32, i32
  }
}

module attributes {stable_mosaic.version = 11 : i64} {
  func.func @_gemm_res_kernel(%arg0: i32, %arg1: i32, %arg2: memref<32x128xbf16, #tpu.memory_space<vmem>>, %arg3: memref<128x32xbf16, #tpu.memory_space<vmem>>, %arg4: memref<1x32xf32, #tpu.memory_space<vmem>>, %arg5: memref<32x32xf32, #tpu.memory_space<vmem>>, %arg6: memref<32x32xf32, #tpu.memory_space<vmem>>, %arg7: memref<32x32xf32, #tpu.memory_space<vmem>>) attributes {dimension_semantics = [#tpu.dimension_semantics<parallel>, #tpu.dimension_semantics<arbitrary>], iteration_bounds = array<i64: 1, 3>, scalar_prefetch = 0 : i64, scratch_operands = 1 : i64, tpu.core_type = #tpu.core_type<tc>, window_params = [{transform_indices = @transform_0, window_bounds = array<i64: 32, 128>}, {transform_indices = @transform_1, window_bounds = array<i64: 128, 32>}, {pipeline_mode = #tpu.pipeline_mode<synchronous>, transform_indices = @transform_2, window_bounds = array<i64: 1, 32>}, {transform_indices = @transform_3, window_bounds = array<i64: 32, 32>}, {transform_indices = @transform_4, window_bounds = array<i64: 32, 32>}]} {
    %c0_i32 = arith.constant 0 : i32
    %0 = arith.cmpi eq, %arg1, %c0_i32 : i32
    %1 = arith.extui %0 : i1 to i32
    %c0_i32_0 = arith.constant 0 : i32
    %2 = arith.cmpi ne, %1, %c0_i32_0 : i32
    scf.if %2 {
      %cst_9 = arith.constant 0.000000e+00 : f32
      %12 = vector.broadcast %cst_9 : f32 to vector<32x32xf32>
      %c0_10 = arith.constant 0 : index
      %c0_11 = arith.constant 0 : index
      %13 = vector.load %arg7[%c0_10, %c0_11] : memref<32x32xf32, #tpu.memory_space<vmem>>, vector<32x32xf32>
      tpu.vector_store %arg7[%c0_10, %c0_11], %12 {strides = array<i32>} : memref<32x32xf32, #tpu.memory_space<vmem>>, vector<32x32xf32>,
    } else {
    }
    %c0 = arith.constant 0 : index
    %c0_1 = arith.constant 0 : index
    %3 = vector.load %arg7[%c0, %c0_1] : memref<32x32xf32, #tpu.memory_space<vmem>>, vector<32x32xf32>
    %c0_2 = arith.constant 0 : index
    %c0_3 = arith.constant 0 : index
    %4 = vector.load %arg2[%c0_2, %c0_3] : memref<32x128xbf16, #tpu.memory_space<vmem>>, vector<32x128xbf16>
    %c0_4 = arith.constant 0 : index
    %c0_5 = arith.constant 0 : index
    %5 = vector.load %arg3[%c0_4, %c0_5] : memref<128x32xbf16, #tpu.memory_space<vmem>>, vector<128x32xbf16>
    %cst = arith.constant dense<0.000000e+00> : vector<32x32xf32>
    %6 = tpu.matmul %4, %5, %cst {dimension_numbers = #tpu.dot_dimension_numbers<[1], [0], [0], [1], [0, 0, 1, 1], [], []>} : vector<32x128xbf16>, vector<128x32xbf16>, vector<32x32xf32> -> vector<32x32xf32>
    %7 = arith.addf %3, %6 : vector<32x32xf32>
    %c0_6 = arith.constant 0 : index
    %c0_7 = arith.constant 0 : index
    %8 = vector.load %arg7[%c0_6, %c0_7] : memref<32x32xf32, #tpu.memory_space<vmem>>, vector<32x32xf32>
    tpu.vector_store %arg7[%c0_6, %c0_7], %7 {strides = array<i32>} : memref<32x32xf32, #tpu.memory_space<vmem>>, vector<32x32xf32>,
    %c2_i32 = arith.constant 2 : i32
    %9 = arith.cmpi eq, %arg1, %c2_i32 : i32
    %10 = arith.extui %9 : i1 to i32
    %c0_i32_8 = arith.constant 0 : i32
    %11 = arith.cmpi ne, %10, %c0_i32_8 : i32
    scf.if %11 {
      %c0_9 = arith.constant 0 : index
      %c0_10 = arith.constant 0 : index
      %12 = vector.load %arg7[%c0_9, %c0_10] : memref<32x32xf32, #tpu.memory_space<vmem>>, vector<32x32xf32>
      %c0_11 = arith.constant 0 : index
      %c0_12 = arith.constant 0 : index
      %13 = vector.load %arg4[%c0_11, %c0_12] : memref<1x32xf32, #tpu.memory_space<vmem>>, vector<1x32xf32>
      %14 = vector.broadcast %13 : vector<1x32xf32> to vector<32x32xf32>
      %15 = arith.addf %12, %14 : vector<32x32xf32>
      %c0_13 = arith.constant 0 : index
      %c0_14 = arith.constant 0 : index
      %16 = vector.load %arg5[%c0_13, %c0_14] : memref<32x32xf32, #tpu.memory_space<vmem>>, vector<32x32xf32>
      %17 = arith.addf %15, %16 : vector<32x32xf32>
      %cst_15 = arith.constant 0.000000e+00 : f32
      %18 = vector.broadcast %cst_15 : f32 to vector<32x32xf32>
      %19 = arith.maximumf %17, %18 : vector<32x32xf32>
      %c0_16 = arith.constant 0 : index
      %c0_17 = arith.constant 0 : index
      %20 = vector.load %arg6[%c0_16, %c0_17] : memref<32x32xf32, #tpu.memory_space<vmem>>, vector<32x32xf32>
      tpu.vector_store %arg6[%c0_16, %c0_17], %19 {strides = array<i32>} : memref<32x32xf32, #tpu.memory_space<vmem>>, vector<32x32xf32>,
    } else {
    }
    return
  }
  func.func @transform_0(%arg0: i32, %arg1: i32) -> (i32, i32) {
    %c0_i32 = arith.constant 0 : i32
    return %arg0, %arg1 : i32, i32
  }
  func.func @transform_1(%arg0: i32, %arg1: i32) -> (i32, i32) {
    %c0_i32 = arith.constant 0 : i32
    %c0_i32_0 = arith.constant 0 : i32
    return %arg1, %c0_i32 : i32, i32
  }
  func.func @transform_2(%arg0: i32, %arg1: i32) -> (i32, i32) {
    %c0_i32 = arith.constant 0 : i32
    %c0_i32_0 = arith.constant 0 : i32
    %c0_i32_1 = arith.constant 0 : i32
    return %c0_i32, %c0_i32_0 : i32, i32
  }
  func.func @transform_3(%arg0: i32, %arg1: i32) -> (i32, i32) {
    %c0_i32 = arith.constant 0 : i32
    %c0_i32_0 = arith.constant 0 : i32
    return %arg0, %c0_i32 : i32, i32
  }
  func.func @transform_4(%arg0: i32, %arg1: i32) -> (i32, i32) {
    %c0_i32 = arith.constant 0 : i32
    %c0_i32_0 = arith.constant 0 : i32
    return %arg0, %c0_i32 : i32, i32
  }
}

module attributes {stable_mosaic.version = 11 : i64} {
  func.func @_gemm_kernel(%arg0: i32, %arg1: i32, %arg2: memref<32x128xbf16, #tpu.memory_space<vmem>>, %arg3: memref<128x32xbf16, #tpu.memory_space<vmem>>, %arg4: memref<1x32xf32, #tpu.memory_space<vmem>>, %arg5: memref<32x32xf32, #tpu.memory_space<vmem>>, %arg6: memref<32x32xf32, #tpu.memory_space<vmem>>) attributes {dimension_semantics = [#tpu.dimension_semantics<parallel>, #tpu.dimension_semantics<arbitrary>], iteration_bounds = array<i64: 1, 3>, scalar_prefetch = 0 : i64, scratch_operands = 1 : i64, tpu.core_type = #tpu.core_type<tc>, window_params = [{transform_indices = @transform_0, window_bounds = array<i64: 32, 128>}, {transform_indices = @transform_1, window_bounds = array<i64: 128, 32>}, {pipeline_mode = #tpu.pipeline_mode<synchronous>, transform_indices = @transform_2, window_bounds = array<i64: 1, 32>}, {transform_indices = @transform_3, window_bounds = array<i64: 32, 32>}]} {
    %c0_i32 = arith.constant 0 : i32
    %0 = arith.cmpi eq, %arg1, %c0_i32 : i32
    %1 = arith.extui %0 : i1 to i32
    %c0_i32_0 = arith.constant 0 : i32
    %2 = arith.cmpi ne, %1, %c0_i32_0 : i32
    scf.if %2 {
      %cst_9 = arith.constant 0.000000e+00 : f32
      %12 = vector.broadcast %cst_9 : f32 to vector<32x32xf32>
      %c0_10 = arith.constant 0 : index
      %c0_11 = arith.constant 0 : index
      %13 = vector.load %arg6[%c0_10, %c0_11] : memref<32x32xf32, #tpu.memory_space<vmem>>, vector<32x32xf32>
      tpu.vector_store %arg6[%c0_10, %c0_11], %12 {strides = array<i32>} : memref<32x32xf32, #tpu.memory_space<vmem>>, vector<32x32xf32>,
    } else {
    }
    %c0 = arith.constant 0 : index
    %c0_1 = arith.constant 0 : index
    %3 = vector.load %arg6[%c0, %c0_1] : memref<32x32xf32, #tpu.memory_space<vmem>>, vector<32x32xf32>
    %c0_2 = arith.constant 0 : index
    %c0_3 = arith.constant 0 : index
    %4 = vector.load %arg2[%c0_2, %c0_3] : memref<32x128xbf16, #tpu.memory_space<vmem>>, vector<32x128xbf16>
    %c0_4 = arith.constant 0 : index
    %c0_5 = arith.constant 0 : index
    %5 = vector.load %arg3[%c0_4, %c0_5] : memref<128x32xbf16, #tpu.memory_space<vmem>>, vector<128x32xbf16>
    %cst = arith.constant dense<0.000000e+00> : vector<32x32xf32>
    %6 = tpu.matmul %4, %5, %cst {dimension_numbers = #tpu.dot_dimension_numbers<[1], [0], [0], [1], [0, 0, 1, 1], [], []>} : vector<32x128xbf16>, vector<128x32xbf16>, vector<32x32xf32> -> vector<32x32xf32>
    %7 = arith.addf %3, %6 : vector<32x32xf32>
    %c0_6 = arith.constant 0 : index
    %c0_7 = arith.constant 0 : index
    %8 = vector.load %arg6[%c0_6, %c0_7] : memref<32x32xf32, #tpu.memory_space<vmem>>, vector<32x32xf32>
    tpu.vector_store %arg6[%c0_6, %c0_7], %7 {strides = array<i32>} : memref<32x32xf32, #tpu.memory_space<vmem>>, vector<32x32xf32>,
    %c2_i32 = arith.constant 2 : i32
    %9 = arith.cmpi eq, %arg1, %c2_i32 : i32
    %10 = arith.extui %9 : i1 to i32
    %c0_i32_8 = arith.constant 0 : i32
    %11 = arith.cmpi ne, %10, %c0_i32_8 : i32
    scf.if %11 {
      %c0_9 = arith.constant 0 : index
      %c0_10 = arith.constant 0 : index
      %12 = vector.load %arg6[%c0_9, %c0_10] : memref<32x32xf32, #tpu.memory_space<vmem>>, vector<32x32xf32>
      %c0_11 = arith.constant 0 : index
      %c0_12 = arith.constant 0 : index
      %13 = vector.load %arg4[%c0_11, %c0_12] : memref<1x32xf32, #tpu.memory_space<vmem>>, vector<1x32xf32>
      %14 = vector.broadcast %13 : vector<1x32xf32> to vector<32x32xf32>
      %15 = arith.addf %12, %14 : vector<32x32xf32>
      %cst_13 = arith.constant 0.000000e+00 : f32
      %16 = vector.broadcast %cst_13 : f32 to vector<32x32xf32>
      %17 = arith.maximumf %15, %16 : vector<32x32xf32>
      %c0_14 = arith.constant 0 : index
      %c0_15 = arith.constant 0 : index
      %18 = vector.load %arg5[%c0_14, %c0_15] : memref<32x32xf32, #tpu.memory_space<vmem>>, vector<32x32xf32>
      tpu.vector_store %arg5[%c0_14, %c0_15], %17 {strides = array<i32>} : memref<32x32xf32, #tpu.memory_space<vmem>>, vector<32x32xf32>,
    } else {
    }
    return
  }
  func.func @transform_0(%arg0: i32, %arg1: i32) -> (i32, i32) {
    %c0_i32 = arith.constant 0 : i32
    return %arg0, %arg1 : i32, i32
  }
  func.func @transform_1(%arg0: i32, %arg1: i32) -> (i32, i32) {
    %c0_i32 = arith.constant 0 : i32
    %c0_i32_0 = arith.constant 0 : i32
    return %arg1, %c0_i32 : i32, i32
  }
  func.func @transform_2(%arg0: i32, %arg1: i32) -> (i32, i32) {
    %c0_i32 = arith.constant 0 : i32
    %c0_i32_0 = arith.constant 0 : i32
    %c0_i32_1 = arith.constant 0 : i32
    return %c0_i32, %c0_i32_0 : i32, i32
  }
  func.func @transform_3(%arg0: i32, %arg1: i32) -> (i32, i32) {
    %c0_i32 = arith.constant 0 : i32
    %c0_i32_0 = arith.constant 0 : i32
    return %arg0, %c0_i32 : i32, i32
  }
}

module attributes {stable_mosaic.version = 11 : i64} {
  func.func @_gemm_kernel(%arg0: i32, %arg1: i32, %arg2: memref<8x128xbf16, #tpu.memory_space<vmem>>, %arg3: memref<128x64xbf16, #tpu.memory_space<vmem>>, %arg4: memref<1x64xf32, #tpu.memory_space<vmem>>, %arg5: memref<8x64xf32, #tpu.memory_space<vmem>>, %arg6: memref<8x64xf32, #tpu.memory_space<vmem>>) attributes {dimension_semantics = [#tpu.dimension_semantics<parallel>, #tpu.dimension_semantics<arbitrary>], iteration_bounds = array<i64: 1, 3>, scalar_prefetch = 0 : i64, scratch_operands = 1 : i64, tpu.core_type = #tpu.core_type<tc>, window_params = [{transform_indices = @transform_0, window_bounds = array<i64: 8, 128>}, {transform_indices = @transform_1, window_bounds = array<i64: 128, 64>}, {pipeline_mode = #tpu.pipeline_mode<synchronous>, transform_indices = @transform_2, window_bounds = array<i64: 1, 64>}, {transform_indices = @transform_3, window_bounds = array<i64: 8, 64>}]} {
    %c0_i32 = arith.constant 0 : i32
    %0 = arith.cmpi eq, %arg1, %c0_i32 : i32
    %1 = arith.extui %0 : i1 to i32
    %c0_i32_0 = arith.constant 0 : i32
    %2 = arith.cmpi ne, %1, %c0_i32_0 : i32
    scf.if %2 {
      %cst_9 = arith.constant 0.000000e+00 : f32
      %12 = vector.broadcast %cst_9 : f32 to vector<8x64xf32>
      %c0_10 = arith.constant 0 : index
      %c0_11 = arith.constant 0 : index
      %13 = vector.load %arg6[%c0_10, %c0_11] : memref<8x64xf32, #tpu.memory_space<vmem>>, vector<8x64xf32>
      tpu.vector_store %arg6[%c0_10, %c0_11], %12 {strides = array<i32>} : memref<8x64xf32, #tpu.memory_space<vmem>>, vector<8x64xf32>,
    } else {
    }
    %c0 = arith.constant 0 : index
    %c0_1 = arith.constant 0 : index
    %3 = vector.load %arg6[%c0, %c0_1] : memref<8x64xf32, #tpu.memory_space<vmem>>, vector<8x64xf32>
    %c0_2 = arith.constant 0 : index
    %c0_3 = arith.constant 0 : index
    %4 = vector.load %arg2[%c0_2, %c0_3] : memref<8x128xbf16, #tpu.memory_space<vmem>>, vector<8x128xbf16>
    %c0_4 = arith.constant 0 : index
    %c0_5 = arith.constant 0 : index
    %5 = vector.load %arg3[%c0_4, %c0_5] : memref<128x64xbf16, #tpu.memory_space<vmem>>, vector<128x64xbf16>
    %cst = arith.constant dense<0.000000e+00> : vector<8x64xf32>
    %6 = tpu.matmul %4, %5, %cst {dimension_numbers = #tpu.dot_dimension_numbers<[1], [0], [0], [1], [0, 0, 1, 1], [], []>} : vector<8x128xbf16>, vector<128x64xbf16>, vector<8x64xf32> -> vector<8x64xf32>
    %7 = arith.addf %3, %6 : vector<8x64xf32>
    %c0_6 = arith.constant 0 : index
    %c0_7 = arith.constant 0 : index
    %8 = vector.load %arg6[%c0_6, %c0_7] : memref<8x64xf32, #tpu.memory_space<vmem>>, vector<8x64xf32>
    tpu.vector_store %arg6[%c0_6, %c0_7], %7 {strides = array<i32>} : memref<8x64xf32, #tpu.memory_space<vmem>>, vector<8x64xf32>,
    %c2_i32 = arith.constant 2 : i32
    %9 = arith.cmpi eq, %arg1, %c2_i32 : i32
    %10 = arith.extui %9 : i1 to i32
    %c0_i32_8 = arith.constant 0 : i32
    %11 = arith.cmpi ne, %10, %c0_i32_8 : i32
    scf.if %11 {
      %c0_9 = arith.constant 0 : index
      %c0_10 = arith.constant 0 : index
      %12 = vector.load %arg6[%c0_9, %c0_10] : memref<8x64xf32, #tpu.memory_space<vmem>>, vector<8x64xf32>
      %c0_11 = arith.constant 0 : index
      %c0_12 = arith.constant 0 : index
      %13 = vector.load %arg4[%c0_11, %c0_12] : memref<1x64xf32, #tpu.memory_space<vmem>>, vector<1x64xf32>
      %14 = vector.broadcast %13 : vector<1x64xf32> to vector<8x64xf32>
      %15 = arith.addf %12, %14 : vector<8x64xf32>
      %cst_13 = arith.constant 0.000000e+00 : f32
      %16 = vector.broadcast %cst_13 : f32 to vector<8x64xf32>
      %17 = arith.maximumf %15, %16 : vector<8x64xf32>
      %c0_14 = arith.constant 0 : index
      %c0_15 = arith.constant 0 : index
      %18 = vector.load %arg5[%c0_14, %c0_15] : memref<8x64xf32, #tpu.memory_space<vmem>>, vector<8x64xf32>
      tpu.vector_store %arg5[%c0_14, %c0_15], %17 {strides = array<i32>} : memref<8x64xf32, #tpu.memory_space<vmem>>, vector<8x64xf32>,
    } else {
    }
    return
  }
  func.func @transform_0(%arg0: i32, %arg1: i32) -> (i32, i32) {
    %c0_i32 = arith.constant 0 : i32
    return %arg0, %arg1 : i32, i32
  }
  func.func @transform_1(%arg0: i32, %arg1: i32) -> (i32, i32) {
    %c0_i32 = arith.constant 0 : i32
    %c0_i32_0 = arith.constant 0 : i32
    return %arg1, %c0_i32 : i32, i32
  }
  func.func @transform_2(%arg0: i32, %arg1: i32) -> (i32, i32) {
    %c0_i32 = arith.constant 0 : i32
    %c0_i32_0 = arith.constant 0 : i32
    %c0_i32_1 = arith.constant 0 : i32
    return %c0_i32, %c0_i32_0 : i32, i32
  }
  func.func @transform_3(%arg0: i32, %arg1: i32) -> (i32, i32) {
    %c0_i32 = arith.constant 0 : i32
    %c0_i32_0 = arith.constant 0 : i32
    return %arg0, %c0_i32 : i32, i32
  }
}

module attributes {stable_mosaic.version = 11 : i64} {
  func.func @_gemm_kernel(%arg0: i32, %arg1: i32, %arg2: memref<8x128xbf16, #tpu.memory_space<vmem>>, %arg3: memref<128x64xbf16, #tpu.memory_space<vmem>>, %arg4: memref<1x64xf32, #tpu.memory_space<vmem>>, %arg5: memref<8x64xf32, #tpu.memory_space<vmem>>, %arg6: memref<8x64xf32, #tpu.memory_space<vmem>>) attributes {dimension_semantics = [#tpu.dimension_semantics<parallel>, #tpu.dimension_semantics<arbitrary>], iteration_bounds = array<i64: 1, 1>, scalar_prefetch = 0 : i64, scratch_operands = 1 : i64, tpu.core_type = #tpu.core_type<tc>, window_params = [{transform_indices = @transform_0, window_bounds = array<i64: 8, 128>}, {transform_indices = @transform_1, window_bounds = array<i64: 128, 64>}, {pipeline_mode = #tpu.pipeline_mode<synchronous>, transform_indices = @transform_2, window_bounds = array<i64: 1, 64>}, {transform_indices = @transform_3, window_bounds = array<i64: 8, 64>}]} {
    %c0_i32 = arith.constant 0 : i32
    %0 = arith.cmpi eq, %arg1, %c0_i32 : i32
    %1 = arith.extui %0 : i1 to i32
    %c0_i32_0 = arith.constant 0 : i32
    %2 = arith.cmpi ne, %1, %c0_i32_0 : i32
    scf.if %2 {
      %cst_10 = arith.constant 0.000000e+00 : f32
      %12 = vector.broadcast %cst_10 : f32 to vector<8x64xf32>
      %c0_11 = arith.constant 0 : index
      %c0_12 = arith.constant 0 : index
      %13 = vector.load %arg6[%c0_11, %c0_12] : memref<8x64xf32, #tpu.memory_space<vmem>>, vector<8x64xf32>
      tpu.vector_store %arg6[%c0_11, %c0_12], %12 {strides = array<i32>} : memref<8x64xf32, #tpu.memory_space<vmem>>, vector<8x64xf32>,
    } else {
    }
    %c0 = arith.constant 0 : index
    %c0_1 = arith.constant 0 : index
    %3 = vector.load %arg6[%c0, %c0_1] : memref<8x64xf32, #tpu.memory_space<vmem>>, vector<8x64xf32>
    %c0_2 = arith.constant 0 : index
    %c0_3 = arith.constant 0 : index
    %4 = vector.load %arg2[%c0_2, %c0_3] : memref<8x128xbf16, #tpu.memory_space<vmem>>, vector<8x128xbf16>
    %c0_4 = arith.constant 0 : index
    %c0_5 = arith.constant 0 : index
    %5 = vector.load %arg3[%c0_4, %c0_5] : memref<128x64xbf16, #tpu.memory_space<vmem>>, vector<128x64xbf16>
    %cst = arith.constant dense<0.000000e+00> : vector<8x64xf32>
    %6 = tpu.matmul %4, %5, %cst {dimension_numbers = #tpu.dot_dimension_numbers<[1], [0], [0], [1], [0, 0, 1, 1], [], []>} : vector<8x128xbf16>, vector<128x64xbf16>, vector<8x64xf32> -> vector<8x64xf32>
    %7 = arith.addf %3, %6 : vector<8x64xf32>
    %c0_6 = arith.constant 0 : index
    %c0_7 = arith.constant 0 : index
    %8 = vector.load %arg6[%c0_6, %c0_7] : memref<8x64xf32, #tpu.memory_space<vmem>>, vector<8x64xf32>
    tpu.vector_store %arg6[%c0_6, %c0_7], %7 {strides = array<i32>} : memref<8x64xf32, #tpu.memory_space<vmem>>, vector<8x64xf32>,
    %c0_i32_8 = arith.constant 0 : i32
    %9 = arith.cmpi eq, %arg1, %c0_i32_8 : i32
    %10 = arith.extui %9 : i1 to i32
    %c0_i32_9 = arith.constant 0 : i32
    %11 = arith.cmpi ne, %10, %c0_i32_9 : i32
    scf.if %11 {
      %c0_10 = arith.constant 0 : index
      %c0_11 = arith.constant 0 : index
      %12 = vector.load %arg6[%c0_10, %c0_11] : memref<8x64xf32, #tpu.memory_space<vmem>>, vector<8x64xf32>
      %c0_12 = arith.constant 0 : index
      %c0_13 = arith.constant 0 : index
      %13 = vector.load %arg4[%c0_12, %c0_13] : memref<1x64xf32, #tpu.memory_space<vmem>>, vector<1x64xf32>
      %14 = vector.broadcast %13 : vector<1x64xf32> to vector<8x64xf32>
      %15 = arith.addf %12, %14 : vector<8x64xf32>
      %c0_14 = arith.constant 0 : index
      %c0_15 = arith.constant 0 : index
      %16 = vector.load %arg5[%c0_14, %c0_15] : memref<8x64xf32, #tpu.memory_space<vmem>>, vector<8x64xf32>
      tpu.vector_store %arg5[%c0_14, %c0_15], %15 {strides = array<i32>} : memref<8x64xf32, #tpu.memory_space<vmem>>, vector<8x64xf32>,
    } else {
    }
    return
  }
  func.func @transform_0(%arg0: i32, %arg1: i32) -> (i32, i32) {
    %c0_i32 = arith.constant 0 : i32
    return %arg0, %arg1 : i32, i32
  }
  func.func @transform_1(%arg0: i32, %arg1: i32) -> (i32, i32) {
    %c0_i32 = arith.constant 0 : i32
    %c0_i32_0 = arith.constant 0 : i32
    return %arg1, %c0_i32 : i32, i32
  }
  func.func @transform_2(%arg0: i32, %arg1: i32) -> (i32, i32) {
    %c0_i32 = arith.constant 0 : i32
    %c0_i32_0 = arith.constant 0 : i32
    %c0_i32_1 = arith.constant 0 : i32
    return %c0_i32, %c0_i32_0 : i32, i32
  }
  func.func @transform_3(%arg0: i32, %arg1: i32) -> (i32, i32) {
    %c0_i32 = arith.constant 0 : i32
    %c0_i32_0 = arith.constant 0 : i32
    return %arg0, %c0_i32 : i32, i32
  }
}

module attributes {stable_mosaic.version = 11 : i64} {
  func.func @_gemm_kernel(%arg0: i32, %arg1: i32, %arg2: memref<8x128xbf16, #tpu.memory_space<vmem>>, %arg3: memref<128x64xbf16, #tpu.memory_space<vmem>>, %arg4: memref<1x64xf32, #tpu.memory_space<vmem>>, %arg5: memref<8x64xf32, #tpu.memory_space<vmem>>, %arg6: memref<8x64xf32, #tpu.memory_space<vmem>>) attributes {dimension_semantics = [#tpu.dimension_semantics<parallel>, #tpu.dimension_semantics<arbitrary>], iteration_bounds = array<i64: 1, 5>, scalar_prefetch = 0 : i64, scratch_operands = 1 : i64, tpu.core_type = #tpu.core_type<tc>, window_params = [{transform_indices = @transform_0, window_bounds = array<i64: 8, 128>}, {transform_indices = @transform_1, window_bounds = array<i64: 128, 64>}, {pipeline_mode = #tpu.pipeline_mode<synchronous>, transform_indices = @transform_2, window_bounds = array<i64: 1, 64>}, {transform_indices = @transform_3, window_bounds = array<i64: 8, 64>}]} {
    %c0_i32 = arith.constant 0 : i32
    %0 = arith.cmpi eq, %arg1, %c0_i32 : i32
    %1 = arith.extui %0 : i1 to i32
    %c0_i32_0 = arith.constant 0 : i32
    %2 = arith.cmpi ne, %1, %c0_i32_0 : i32
    scf.if %2 {
      %cst_9 = arith.constant 0.000000e+00 : f32
      %12 = vector.broadcast %cst_9 : f32 to vector<8x64xf32>
      %c0_10 = arith.constant 0 : index
      %c0_11 = arith.constant 0 : index
      %13 = vector.load %arg6[%c0_10, %c0_11] : memref<8x64xf32, #tpu.memory_space<vmem>>, vector<8x64xf32>
      tpu.vector_store %arg6[%c0_10, %c0_11], %12 {strides = array<i32>} : memref<8x64xf32, #tpu.memory_space<vmem>>, vector<8x64xf32>,
    } else {
    }
    %c0 = arith.constant 0 : index
    %c0_1 = arith.constant 0 : index
    %3 = vector.load %arg6[%c0, %c0_1] : memref<8x64xf32, #tpu.memory_space<vmem>>, vector<8x64xf32>
    %c0_2 = arith.constant 0 : index
    %c0_3 = arith.constant 0 : index
    %4 = vector.load %arg2[%c0_2, %c0_3] : memref<8x128xbf16, #tpu.memory_space<vmem>>, vector<8x128xbf16>
    %c0_4 = arith.constant 0 : index
    %c0_5 = arith.constant 0 : index
    %5 = vector.load %arg3[%c0_4, %c0_5] : memref<128x64xbf16, #tpu.memory_space<vmem>>, vector<128x64xbf16>
    %cst = arith.constant dense<0.000000e+00> : vector<8x64xf32>
    %6 = tpu.matmul %4, %5, %cst {dimension_numbers = #tpu.dot_dimension_numbers<[1], [0], [0], [1], [0, 0, 1, 1], [], []>} : vector<8x128xbf16>, vector<128x64xbf16>, vector<8x64xf32> -> vector<8x64xf32>
    %7 = arith.addf %3, %6 : vector<8x64xf32>
    %c0_6 = arith.constant 0 : index
    %c0_7 = arith.constant 0 : index
    %8 = vector.load %arg6[%c0_6, %c0_7] : memref<8x64xf32, #tpu.memory_space<vmem>>, vector<8x64xf32>
    tpu.vector_store %arg6[%c0_6, %c0_7], %7 {strides = array<i32>} : memref<8x64xf32, #tpu.memory_space<vmem>>, vector<8x64xf32>,
    %c4_i32 = arith.constant 4 : i32
    %9 = arith.cmpi eq, %arg1, %c4_i32 : i32
    %10 = arith.extui %9 : i1 to i32
    %c0_i32_8 = arith.constant 0 : i32
    %11 = arith.cmpi ne, %10, %c0_i32_8 : i32
    scf.if %11 {
      %c0_9 = arith.constant 0 : index
      %c0_10 = arith.constant 0 : index
      %12 = vector.load %arg6[%c0_9, %c0_10] : memref<8x64xf32, #tpu.memory_space<vmem>>, vector<8x64xf32>
      %c0_11 = arith.constant 0 : index
      %c0_12 = arith.constant 0 : index
      %13 = vector.load %arg4[%c0_11, %c0_12] : memref<1x64xf32, #tpu.memory_space<vmem>>, vector<1x64xf32>
      %14 = vector.broadcast %13 : vector<1x64xf32> to vector<8x64xf32>
      %15 = arith.addf %12, %14 : vector<8x64xf32>
      %cst_13 = arith.constant 0.000000e+00 : f32
      %16 = vector.broadcast %cst_13 : f32 to vector<8x64xf32>
      %17 = arith.maximumf %15, %16 : vector<8x64xf32>
      %c0_14 = arith.constant 0 : index
      %c0_15 = arith.constant 0 : index
      %18 = vector.load %arg5[%c0_14, %c0_15] : memref<8x64xf32, #tpu.memory_space<vmem>>, vector<8x64xf32>
      tpu.vector_store %arg5[%c0_14, %c0_15], %17 {strides = array<i32>} : memref<8x64xf32, #tpu.memory_space<vmem>>, vector<8x64xf32>,
    } else {
    }
    return
  }
  func.func @transform_0(%arg0: i32, %arg1: i32) -> (i32, i32) {
    %c0_i32 = arith.constant 0 : i32
    return %arg0, %arg1 : i32, i32
  }
  func.func @transform_1(%arg0: i32, %arg1: i32) -> (i32, i32) {
    %c0_i32 = arith.constant 0 : i32
    %c0_i32_0 = arith.constant 0 : i32
    return %arg1, %c0_i32 : i32, i32
  }
  func.func @transform_2(%arg0: i32, %arg1: i32) -> (i32, i32) {
    %c0_i32 = arith.constant 0 : i32
    %c0_i32_0 = arith.constant 0 : i32
    %c0_i32_1 = arith.constant 0 : i32
    return %c0_i32, %c0_i32_0 : i32, i32
  }
  func.func @transform_3(%arg0: i32, %arg1: i32) -> (i32, i32) {
    %c0_i32 = arith.constant 0 : i32
    %c0_i32_0 = arith.constant 0 : i32
    return %arg0, %c0_i32 : i32, i32
  }
}

module attributes {stable_mosaic.version = 11 : i64} {
  func.func @_gemm_res_kernel(%arg0: i32, %arg1: i32, %arg2: memref<8x128xbf16, #tpu.memory_space<vmem>>, %arg3: memref<128x64xbf16, #tpu.memory_space<vmem>>, %arg4: memref<1x64xf32, #tpu.memory_space<vmem>>, %arg5: memref<8x64xf32, #tpu.memory_space<vmem>>, %arg6: memref<8x64xf32, #tpu.memory_space<vmem>>, %arg7: memref<8x64xf32, #tpu.memory_space<vmem>>) attributes {dimension_semantics = [#tpu.dimension_semantics<parallel>, #tpu.dimension_semantics<arbitrary>], iteration_bounds = array<i64: 1, 5>, scalar_prefetch = 0 : i64, scratch_operands = 1 : i64, tpu.core_type = #tpu.core_type<tc>, window_params = [{transform_indices = @transform_0, window_bounds = array<i64: 8, 128>}, {transform_indices = @transform_1, window_bounds = array<i64: 128, 64>}, {pipeline_mode = #tpu.pipeline_mode<synchronous>, transform_indices = @transform_2, window_bounds = array<i64: 1, 64>}, {transform_indices = @transform_3, window_bounds = array<i64: 8, 64>}, {transform_indices = @transform_4, window_bounds = array<i64: 8, 64>}]} {
    %c0_i32 = arith.constant 0 : i32
    %0 = arith.cmpi eq, %arg1, %c0_i32 : i32
    %1 = arith.extui %0 : i1 to i32
    %c0_i32_0 = arith.constant 0 : i32
    %2 = arith.cmpi ne, %1, %c0_i32_0 : i32
    scf.if %2 {
      %cst_9 = arith.constant 0.000000e+00 : f32
      %12 = vector.broadcast %cst_9 : f32 to vector<8x64xf32>
      %c0_10 = arith.constant 0 : index
      %c0_11 = arith.constant 0 : index
      %13 = vector.load %arg7[%c0_10, %c0_11] : memref<8x64xf32, #tpu.memory_space<vmem>>, vector<8x64xf32>
      tpu.vector_store %arg7[%c0_10, %c0_11], %12 {strides = array<i32>} : memref<8x64xf32, #tpu.memory_space<vmem>>, vector<8x64xf32>,
    } else {
    }
    %c0 = arith.constant 0 : index
    %c0_1 = arith.constant 0 : index
    %3 = vector.load %arg7[%c0, %c0_1] : memref<8x64xf32, #tpu.memory_space<vmem>>, vector<8x64xf32>
    %c0_2 = arith.constant 0 : index
    %c0_3 = arith.constant 0 : index
    %4 = vector.load %arg2[%c0_2, %c0_3] : memref<8x128xbf16, #tpu.memory_space<vmem>>, vector<8x128xbf16>
    %c0_4 = arith.constant 0 : index
    %c0_5 = arith.constant 0 : index
    %5 = vector.load %arg3[%c0_4, %c0_5] : memref<128x64xbf16, #tpu.memory_space<vmem>>, vector<128x64xbf16>
    %cst = arith.constant dense<0.000000e+00> : vector<8x64xf32>
    %6 = tpu.matmul %4, %5, %cst {dimension_numbers = #tpu.dot_dimension_numbers<[1], [0], [0], [1], [0, 0, 1, 1], [], []>} : vector<8x128xbf16>, vector<128x64xbf16>, vector<8x64xf32> -> vector<8x64xf32>
    %7 = arith.addf %3, %6 : vector<8x64xf32>
    %c0_6 = arith.constant 0 : index
    %c0_7 = arith.constant 0 : index
    %8 = vector.load %arg7[%c0_6, %c0_7] : memref<8x64xf32, #tpu.memory_space<vmem>>, vector<8x64xf32>
    tpu.vector_store %arg7[%c0_6, %c0_7], %7 {strides = array<i32>} : memref<8x64xf32, #tpu.memory_space<vmem>>, vector<8x64xf32>,
    %c4_i32 = arith.constant 4 : i32
    %9 = arith.cmpi eq, %arg1, %c4_i32 : i32
    %10 = arith.extui %9 : i1 to i32
    %c0_i32_8 = arith.constant 0 : i32
    %11 = arith.cmpi ne, %10, %c0_i32_8 : i32
    scf.if %11 {
      %c0_9 = arith.constant 0 : index
      %c0_10 = arith.constant 0 : index
      %12 = vector.load %arg7[%c0_9, %c0_10] : memref<8x64xf32, #tpu.memory_space<vmem>>, vector<8x64xf32>
      %c0_11 = arith.constant 0 : index
      %c0_12 = arith.constant 0 : index
      %13 = vector.load %arg4[%c0_11, %c0_12] : memref<1x64xf32, #tpu.memory_space<vmem>>, vector<1x64xf32>
      %14 = vector.broadcast %13 : vector<1x64xf32> to vector<8x64xf32>
      %15 = arith.addf %12, %14 : vector<8x64xf32>
      %c0_13 = arith.constant 0 : index
      %c0_14 = arith.constant 0 : index
      %16 = vector.load %arg5[%c0_13, %c0_14] : memref<8x64xf32, #tpu.memory_space<vmem>>, vector<8x64xf32>
      %17 = arith.addf %15, %16 : vector<8x64xf32>
      %cst_15 = arith.constant 0.000000e+00 : f32
      %18 = vector.broadcast %cst_15 : f32 to vector<8x64xf32>
      %19 = arith.maximumf %17, %18 : vector<8x64xf32>
      %c0_16 = arith.constant 0 : index
      %c0_17 = arith.constant 0 : index
      %20 = vector.load %arg6[%c0_16, %c0_17] : memref<8x64xf32, #tpu.memory_space<vmem>>, vector<8x64xf32>
      tpu.vector_store %arg6[%c0_16, %c0_17], %19 {strides = array<i32>} : memref<8x64xf32, #tpu.memory_space<vmem>>, vector<8x64xf32>,
    } else {
    }
    return
  }
  func.func @transform_0(%arg0: i32, %arg1: i32) -> (i32, i32) {
    %c0_i32 = arith.constant 0 : i32
    return %arg0, %arg1 : i32, i32
  }
  func.func @transform_1(%arg0: i32, %arg1: i32) -> (i32, i32) {
    %c0_i32 = arith.constant 0 : i32
    %c0_i32_0 = arith.constant 0 : i32
    return %arg1, %c0_i32 : i32, i32
  }
  func.func @transform_2(%arg0: i32, %arg1: i32) -> (i32, i32) {
    %c0_i32 = arith.constant 0 : i32
    %c0_i32_0 = arith.constant 0 : i32
    %c0_i32_1 = arith.constant 0 : i32
    return %c0_i32, %c0_i32_0 : i32, i32
  }
  func.func @transform_3(%arg0: i32, %arg1: i32) -> (i32, i32) {
    %c0_i32 = arith.constant 0 : i32
    %c0_i32_0 = arith.constant 0 : i32
    return %arg0, %c0_i32 : i32, i32
  }
  func.func @transform_4(%arg0: i32, %arg1: i32) -> (i32, i32) {
    %c0_i32 = arith.constant 0 : i32
    %c0_i32_0 = arith.constant 0 : i32
    return %arg0, %c0_i32 : i32, i32
  }
}

module attributes {stable_mosaic.version = 11 : i64} {
  func.func @_gemm_kernel(%arg0: i32, %arg1: i32, %arg2: memref<8x256xbf16, #tpu.memory_space<vmem>>, %arg3: memref<256x2xbf16, #tpu.memory_space<vmem>>, %arg4: memref<1x2xf32, #tpu.memory_space<vmem>>, %arg5: memref<8x2xf32, #tpu.memory_space<vmem>>, %arg6: memref<8x2xf32, #tpu.memory_space<vmem>>) attributes {dimension_semantics = [#tpu.dimension_semantics<parallel>, #tpu.dimension_semantics<arbitrary>], iteration_bounds = array<i64: 1, 1>, scalar_prefetch = 0 : i64, scratch_operands = 1 : i64, tpu.core_type = #tpu.core_type<tc>, window_params = [{transform_indices = @transform_0, window_bounds = array<i64: 8, 256>}, {transform_indices = @transform_1, window_bounds = array<i64: 256, 2>}, {pipeline_mode = #tpu.pipeline_mode<synchronous>, transform_indices = @transform_2, window_bounds = array<i64: 1, 2>}, {transform_indices = @transform_3, window_bounds = array<i64: 8, 2>}]} {
    %c0_i32 = arith.constant 0 : i32
    %0 = arith.cmpi eq, %arg1, %c0_i32 : i32
    %1 = arith.extui %0 : i1 to i32
    %c0_i32_0 = arith.constant 0 : i32
    %2 = arith.cmpi ne, %1, %c0_i32_0 : i32
    scf.if %2 {
      %cst_10 = arith.constant 0.000000e+00 : f32
      %12 = vector.broadcast %cst_10 : f32 to vector<8x2xf32>
      %c0_11 = arith.constant 0 : index
      %c0_12 = arith.constant 0 : index
      %13 = vector.load %arg6[%c0_11, %c0_12] : memref<8x2xf32, #tpu.memory_space<vmem>>, vector<8x2xf32>
      tpu.vector_store %arg6[%c0_11, %c0_12], %12 {strides = array<i32>} : memref<8x2xf32, #tpu.memory_space<vmem>>, vector<8x2xf32>,
    } else {
    }
    %c0 = arith.constant 0 : index
    %c0_1 = arith.constant 0 : index
    %3 = vector.load %arg6[%c0, %c0_1] : memref<8x2xf32, #tpu.memory_space<vmem>>, vector<8x2xf32>
    %c0_2 = arith.constant 0 : index
    %c0_3 = arith.constant 0 : index
    %4 = vector.load %arg2[%c0_2, %c0_3] : memref<8x256xbf16, #tpu.memory_space<vmem>>, vector<8x256xbf16>
    %c0_4 = arith.constant 0 : index
    %c0_5 = arith.constant 0 : index
    %5 = vector.load %arg3[%c0_4, %c0_5] : memref<256x2xbf16, #tpu.memory_space<vmem>>, vector<256x2xbf16>
    %cst = arith.constant dense<0.000000e+00> : vector<8x2xf32>
    %6 = tpu.matmul %4, %5, %cst {dimension_numbers = #tpu.dot_dimension_numbers<[1], [0], [0], [1], [0, 0, 1, 1], [], []>} : vector<8x256xbf16>, vector<256x2xbf16>, vector<8x2xf32> -> vector<8x2xf32>
    %7 = arith.addf %3, %6 : vector<8x2xf32>
    %c0_6 = arith.constant 0 : index
    %c0_7 = arith.constant 0 : index
    %8 = vector.load %arg6[%c0_6, %c0_7] : memref<8x2xf32, #tpu.memory_space<vmem>>, vector<8x2xf32>
    tpu.vector_store %arg6[%c0_6, %c0_7], %7 {strides = array<i32>} : memref<8x2xf32, #tpu.memory_space<vmem>>, vector<8x2xf32>,
    %c0_i32_8 = arith.constant 0 : i32
    %9 = arith.cmpi eq, %arg1, %c0_i32_8 : i32
    %10 = arith.extui %9 : i1 to i32
    %c0_i32_9 = arith.constant 0 : i32
    %11 = arith.cmpi ne, %10, %c0_i32_9 : i32
    scf.if %11 {
      %c0_10 = arith.constant 0 : index
      %c0_11 = arith.constant 0 : index
      %12 = vector.load %arg6[%c0_10, %c0_11] : memref<8x2xf32, #tpu.memory_space<vmem>>, vector<8x2xf32>
      %c0_12 = arith.constant 0 : index
      %c0_13 = arith.constant 0 : index
      %13 = vector.load %arg4[%c0_12, %c0_13] : memref<1x2xf32, #tpu.memory_space<vmem>>, vector<1x2xf32>
      %14 = vector.broadcast %13 : vector<1x2xf32> to vector<8x2xf32>
      %15 = arith.addf %12, %14 : vector<8x2xf32>
      %c0_14 = arith.constant 0 : index
      %c0_15 = arith.constant 0 : index
      %16 = vector.load %arg5[%c0_14, %c0_15] : memref<8x2xf32, #tpu.memory_space<vmem>>, vector<8x2xf32>
      tpu.vector_store %arg5[%c0_14, %c0_15], %15 {strides = array<i32>} : memref<8x2xf32, #tpu.memory_space<vmem>>, vector<8x2xf32>,
    } else {
    }
    return
  }
  func.func @transform_0(%arg0: i32, %arg1: i32) -> (i32, i32) {
    %c0_i32 = arith.constant 0 : i32
    return %arg0, %arg1 : i32, i32
  }
  func.func @transform_1(%arg0: i32, %arg1: i32) -> (i32, i32) {
    %c0_i32 = arith.constant 0 : i32
    %c0_i32_0 = arith.constant 0 : i32
    return %arg1, %c0_i32 : i32, i32
  }
  func.func @transform_2(%arg0: i32, %arg1: i32) -> (i32, i32) {
    %c0_i32 = arith.constant 0 : i32
    %c0_i32_0 = arith.constant 0 : i32
    %c0_i32_1 = arith.constant 0 : i32
    return %c0_i32, %c0_i32_0 : i32, i32
  }
  func.func @transform_3(%arg0: i32, %arg1: i32) -> (i32, i32) {
    %c0_i32 = arith.constant 0 : i32
    %c0_i32_0 = arith.constant 0 : i32
    return %arg0, %c0_i32 : i32, i32
  }
}

</mosaic_0001>

<bundles_post_ra>
// kernel: _lambda_.18
= control target key start
LH: loop header
LB: loop body
LE: loop exit
PB: predicated region body
PF: predicated region fallthrough
CT: control target
= control target key end

     0   :  { %vm152_vm0 = vcmask 130048   ;;  %s1095_s0 = inlined_call_operand.vmem [shape: f32[9,128,16], index: 0, kind: input, shape index: {}]   ;;  %s1096_s1 = inlined_call_operand.vmem [shape: f32[128,16], index: 1, kind: output, shape index: {}]  }
   0x1   :  { %v8_v0 = vld [vmem:[%s1095_s0] sm:$0xff]  ;;  %v9_v13 = vld [vmem:[%s1095_s0 + $0x8] sm:$0xff]  ;;  %v10_v32 = vld [vmem:[%s1095_s0 + $0x10] sm:$0xff] }
   0x2   :  { %v24_v1 = vld [vmem:[%s1095_s0 + $0x80] sm:$0xff]  ;;  %v153_v5 = vsel %vm152_vm0, %v8_v0, -inf  ;;  %v25_v14 = vld [vmem:[%s1095_s0 + $0x88] sm:$0xff]  ;;  %v170_v19 = vsel %vm152_vm0, %v9_v13, -inf  ;;  %v26_v33 = vld [vmem:[%s1095_s0 + $0x90] sm:$0xff]  ;;  %v187_v38 = vsel %vm152_vm0, %v10_v32, -inf }
   0x3   :  { %v40_v2 = vld [vmem:[%s1095_s0 + $0x100] sm:$0xff]  ;;  %v154_v6 = vsel %vm152_vm0, %v24_v1, -inf  ;;  %v41_v15 = vld [vmem:[%s1095_s0 + $0x108] sm:$0xff]  ;;  %v171_v20 = vsel %vm152_vm0, %v25_v14, -inf  ;;  %v42_v34 = vld [vmem:[%s1095_s0 + $0x110] sm:$0xff]  ;;  %v188_v39 = vsel %vm152_vm0, %v26_v33, -inf }
   0x4   :  { %v56_v3 = vld [vmem:[%s1095_s0 + $0x180] sm:$0xff]  ;;  %v156_v7 = vsel %vm152_vm0, %v40_v2, -inf  ;;  %v155_v11 = vmax.f32 %v153_v5, %v154_v6  ;;  %v57_v18 = vld [vmem:[%s1095_s0 + $0x188] sm:$0xff]  ;;  %v173_v21 = vsel %vm152_vm0, %v41_v15, -inf  ;;  %v172_v27 = vmax.f32 %v170_v19, %v171_v20  ;;  %v58_v37 = vld [vmem:[%s1095_s0 + $0x190] sm:$0xff] }
   0x5   :  { %v72_v4 = vld [vmem:[%s1095_s0 + $0x200] sm:$0xff]  ;;  %v158_v12 = vsel %vm152_vm0, %v56_v3, -inf  ;;  %v73_v24 = vld [vmem:[%s1095_s0 + $0x208] sm:$0xff]  ;;  %v175_v31 = vsel %vm152_vm0, %v57_v18, -inf  ;;  %v190_v40 = vsel %vm152_vm0, %v42_v34, -inf  ;;  %v74_v45 = vld [vmem:[%s1095_s0 + $0x210] sm:$0xff]  ;;  %v189_v46 = vmax.f32 %v187_v38, %v188_v39 }
   0x6   :  { %v88_v8 = vld [vmem:[%s1095_s0 + $0x280] sm:$0xff]  ;;  %v157_v17 = vmax.f32 %v155_v11, %v156_v7  ;;  %v160_v22 = vsel %vm152_vm0, %v72_v4, -inf  ;;  %v89_v25 = vld [vmem:[%s1095_s0 + $0x288] sm:$0xff]  ;;  %v174_v36 = vmax.f32 %v172_v27, %v173_v21  ;;  %v177_v44 = vsel %vm152_vm0, %v73_v24, -inf  ;;  %v11_v51 = vld [vmem:[%s1095_s0 + $0x18] sm:$0xff] }
   0x7   :  { %v104_v9 = vld [vmem:[%s1095_s0 + $0x300] sm:$0xff]  ;;  %v162_v23 = vsel %vm152_vm0, %v88_v8, -inf  ;;  %v105_v26 = vld [vmem:[%s1095_s0 + $0x308] sm:$0xff]  ;;  %v179_v48 = vsel %vm152_vm0, %v89_v25, -inf  ;;  %v192_v50 = vsel %vm152_vm0, %v58_v37, -inf  ;;  %v27_v52 = vld [vmem:[%s1095_s0 + $0x98] sm:$0xff]  ;;  %v191_v58 = vmax.f32 %v189_v46, %v190_v40 }
   0x8   :  { %v120_v10 = vld [vmem:[%s1095_s0 + $0x380] sm:$0xff]  ;;  %v159_v28 = vmax.f32 %v157_v17, %v158_v12  ;;  %v164_v29 = vsel %vm152_vm0, %v104_v9, -inf  ;;  %v121_v35 = vld [vmem:[%s1095_s0 + $0x388] sm:$0xff]  ;;  %v176_v47 = vmax.f32 %v174_v36, %v175_v31  ;;  %v181_v49 = vsel %vm152_vm0, %v105_v26, -inf  ;;  %v43_v53 = vld [vmem:[%s1095_s0 + $0x118] sm:$0xff] }
   0x9   :  { %v136_v16 = vld [vmem:[%s1095_s0 + $0x400] sm:$0xff]  ;;  %v166_v30 = vsel %vm152_vm0, %v120_v10, -inf  ;;  %v137_v43 = vld [vmem:[%s1095_s0 + $0x408] sm:$0xff]  ;;  %v183_v55 = vsel %vm152_vm0, %v121_v35, -inf  ;;  %v90_v56 = vld [vmem:[%s1095_s0 + $0x290] sm:$0xff]  ;;  %v204_v60 = vsel %vm152_vm0, %v11_v51, -inf  ;;  %v193_v4 = vmax.f32 %v191_v58, %v192_v50 }
   0xa   :  { %v161_v41 = vmax.f32 %v159_v28, %v160_v22  ;;  %v168_v42 = vsel %vm152_vm0, %v136_v16, -inf  ;;  %v106_v57 = vld [vmem:[%s1095_s0 + $0x310] sm:$0xff]  ;;  %v59_v59 = vld [vmem:[%s1095_s0 + $0x198] sm:$0xff]  ;;  %v178_v61 = vmax.f32 %v176_v47, %v177_v44  ;;  %v194_v62 = vsel %vm152_vm0, %v74_v45, -inf  ;;  %v12_v6 = vld [vmem:[%s1095_s0 + $0x20] sm:$0xff] }
   0xb   :  { %v75_v63 = vld [vmem:[%s1095_s0 + $0x218] sm:$0xff]  ;;  %v205_v0 = vsel %vm152_vm0, %v27_v52, -inf  ;;  %v207_v1 = vsel %vm152_vm0, %v43_v53, -inf  ;;  %v185_v3 = vsel %vm152_vm0, %v137_v43, -inf  ;;  %v28_v7 = vld [vmem:[%s1095_s0 + $0xa0] sm:$0xff]  ;;  %v196_v10 = vsel %vm152_vm0, %v90_v56, -inf }
   0xc   :  { %v163_v54 = vmax.f32 %v161_v41, %v162_v23  ;;  %v206_v5 = vmax.f32 %v204_v60, %v205_v0  ;;  %v44_v8 = vld [vmem:[%s1095_s0 + $0x120] sm:$0xff]  ;;  %v180_v9 = vmax.f32 %v178_v61, %v179_v48  ;;  %v198_v11 = vsel %vm152_vm0, %v106_v57, -inf  ;;  %v122_v14 = vld [vmem:[%s1095_s0 + $0x390] sm:$0xff]  ;;  %v91_v16 = vld [vmem:[%s1095_s0 + $0x298] sm:$0xff] }
   0xd   :  { %v209_v12 = vsel %vm152_vm0, %v59_v59, -inf  ;;  %v195_v15 = vmax.f32 %v193_v4, %v194_v62  ;;  %v211_v18 = vsel %vm152_vm0, %v75_v63, -inf  ;;  %v60_v19 = vld [vmem:[%s1095_s0 + $0x1a0] sm:$0xff]  ;;  %v138_v21 = vld [vmem:[%s1095_s0 + $0x410] sm:$0xff]  ;;  %v221_v22 = vsel %vm152_vm0, %v12_v6, -inf  ;;  %v107_v27 = vld [vmem:[%s1095_s0 + $0x318] sm:$0xff] }
   0xe   :  { %v165_v2 = vmax.f32 %v163_v54, %v164_v29  ;;  %v208_v17 = vmax.f32 %v206_v5, %v207_v1  ;;  %v182_v20 = vmax.f32 %v180_v9, %v181_v49  ;;  %v222_v23 = vsel %vm152_vm0, %v28_v7, -inf  ;;  %v76_v29 = vld [vmem:[%s1095_s0 + $0x220] sm:$0xff]  ;;  %v13_v31 = vld [vmem:[%s1095_s0 + $0x28] sm:$0xff]  ;;  %v123_v39 = vld [vmem:[%s1095_s0 + $0x398] sm:$0xff] }
   0xf   :  { %v224_v24 = vsel %vm152_vm0, %v44_v8, -inf  ;;  %v197_v26 = vmax.f32 %v195_v15, %v196_v10  ;;  %v200_v33 = vsel %vm152_vm0, %v122_v14, -inf  ;;  %v213_v34 = vsel %vm152_vm0, %v91_v16, -inf  ;;  %v29_v36 = vld [vmem:[%s1095_s0 + $0xa8] sm:$0xff]  ;;  %v92_v41 = vld [vmem:[%s1095_s0 + $0x2a0] sm:$0xff]  ;;  %v139_v50 = vld [vmem:[%s1095_s0 + $0x418] sm:$0xff] }
  0x10   :  { %v167_v13 = vmax.f32 %v165_v2, %v166_v30  ;;  %v210_v28 = vmax.f32 %v208_v17, %v209_v12  ;;  %v223_v30 = vmax.f32 %v221_v22, %v222_v23  ;;  %v184_v32 = vmax.f32 %v182_v20, %v183_v55  ;;  %v45_v43 = vld [vmem:[%s1095_s0 + $0x128] sm:$0xff]  ;;  %v108_v52 = vld [vmem:[%s1095_s0 + $0x320] sm:$0xff]  ;;  %v14_v60 = vld [vmem:[%s1095_s0 + $0x30] sm:$0xff] }
  0x11   :  { %v226_v35 = vsel %vm152_vm0, %v60_v19, -inf  ;;  %v199_v37 = vmax.f32 %v197_v26, %v198_v11  ;;  %v202_v38 = vsel %vm152_vm0, %v138_v21, -inf  ;;  %v215_v45 = vsel %vm152_vm0, %v107_v27, -inf  ;;  %v61_v47 = vld [vmem:[%s1095_s0 + $0x1a8] sm:$0xff]  ;;  %v30_v61 = vld [vmem:[%s1095_s0 + $0xb0] sm:$0xff]  ;;  %v124_v0 = vld [vmem:[%s1095_s0 + $0x3a0] sm:$0xff] }
  0x12   :  { %v169_v25 = vmax.f32 %v167_v13, %v168_v42  ;;  %v212_v40 = vmax.f32 %v210_v28, %v211_v18  ;;  %v225_v42 = vmax.f32 %v223_v30, %v224_v24  ;;  %v186_v44 = vmax.f32 %v184_v32, %v185_v3  ;;  %v77_v54 = vld [vmem:[%s1095_s0 + $0x228] sm:$0xff]  ;;  %v46_v3 = vld [vmem:[%s1095_s0 + $0x130] sm:$0xff]  ;;  %v140_v11 = vld [vmem:[%s1095_s0 + $0x420] sm:$0xff] }
  0x13   :  { %v228_v46 = vsel %vm152_vm0, %v76_v29, -inf  ;;  %v238_v48 = vsel %vm152_vm0, %v13_v31, -inf  ;;  %v201_v49 = vmax.f32 %v199_v37, %v200_v33  ;;  %v239_v55 = vsel %vm152_vm0, %v29_v36, -inf  ;;  %v93_v6 = vld [vmem:[%s1095_s0 + $0x2a8] sm:$0xff]  ;;  %v62_v9 = vld [vmem:[%s1095_s0 + $0x1b0] sm:$0xff]  ;;  %v15_v21 = vld [vmem:[%s1095_s0 + $0x38] sm:$0xff] }
  0x14   :  { %425 = vst.msk [vmem:[%s1096_s1] sm:$0xff] %vm152_vm0, %v169_v25  ;;  %v214_v51 = vmax.f32 %v212_v40, %v213_v34  ;;  %v227_v53 = vmax.f32 %v225_v42, %v226_v35  ;;  %426 = vst.msk [vmem:[%s1096_s1 + $0x8] sm:$0xff] %vm152_vm0, %v186_v44  ;;  %v217_v56 = vsel %vm152_vm0, %v123_v39, -inf  ;;  %v230_v57 = vsel %vm152_vm0, %v92_v41, -inf  ;;  %v109_v13 = vld [vmem:[%s1095_s0 + $0x328] sm:$0xff]  ;;  %v78_v18 = vld [vmem:[%s1095_s0 + $0x230] sm:$0xff] }
  0x15   :  { %v240_v58 = vmax.f32 %v238_v48, %v239_v55  ;;  %v241_v59 = vsel %vm152_vm0, %v45_v43, -inf  ;;  %v203_v62 = vmax.f32 %v201_v49, %v202_v38  ;;  %v243_v2 = vsel %vm152_vm0, %v61_v47, -inf  ;;  %v31_v22 = vld [vmem:[%s1095_s0 + $0xb8] sm:$0xff]  ;;  %v125_v29 = vld [vmem:[%s1095_s0 + $0x3a8] sm:$0xff]  ;;  %v94_v32 = vld [vmem:[%s1095_s0 + $0x2b0] sm:$0xff] }
  0x16   :  { %v216_v63 = vmax.f32 %v214_v51, %v215_v45  ;;  %v229_v1 = vmax.f32 %v227_v53, %v228_v46  ;;  %v219_v4 = vsel %vm152_vm0, %v139_v50, -inf  ;;  %v232_v5 = vsel %vm152_vm0, %v108_v52, -inf  ;;  %v47_v27 = vld [vmem:[%s1095_s0 + $0x138] sm:$0xff]  ;;  %v141_v36 = vld [vmem:[%s1095_s0 + $0x428] sm:$0xff]  ;;  %v110_v37 = vld [vmem:[%s1095_s0 + $0x330] sm:$0xff] }
  0x17   :  { %v242_v7 = vmax.f32 %v240_v58, %v241_v59  ;;  %v245_v8 = vsel %vm152_vm0, %v77_v54, -inf  ;;  %427 = vst.msk [vmem:[%s1096_s1 + $0x10] sm:$0xff] %vm152_vm0, %v203_v62  ;;  %v255_v14 = vsel %vm152_vm0, %v14_v60, -inf  ;;  %v256_v15 = vsel %vm152_vm0, %v30_v61, -inf  ;;  %v63_v34 = vld [vmem:[%s1095_s0 + $0x1b8] sm:$0xff]  ;;  %v16_v46 = vld [vmem:[%s1095_s0 + $0x40] sm:$0xff] }
  0x18   :  { %v218_v10 = vmax.f32 %v216_v63, %v217_v56  ;;  %v231_v12 = vmax.f32 %v229_v1, %v230_v57  ;;  %v234_v16 = vsel %vm152_vm0, %v124_v0, -inf  ;;  %v257_v19 = vmax.f32 %v255_v14, %v256_v15  ;;  %v79_v43 = vld [vmem:[%s1095_s0 + $0x238] sm:$0xff]  ;;  %v32_v47 = vld [vmem:[%s1095_s0 + $0xc0] sm:$0xff]  ;;  %v126_v50 = vld [vmem:[%s1095_s0 + $0x3b0] sm:$0xff] }
  0x19   :  { %v244_v17 = vmax.f32 %v242_v7, %v243_v2  ;;  %v258_v20 = vsel %vm152_vm0, %v46_v3, -inf  ;;  %v247_v25 = vsel %vm152_vm0, %v93_v6, -inf  ;;  %v260_v26 = vsel %vm152_vm0, %v62_v9, -inf  ;;  %v95_v56 = vld [vmem:[%s1095_s0 + $0x2b8] sm:$0xff]  ;;  %v48_v58 = vld [vmem:[%s1095_s0 + $0x140] sm:$0xff]  ;;  %v142_v60 = vld [vmem:[%s1095_s0 + $0x430] sm:$0xff] }
  0x1a   :  { %v220_v23 = vmax.f32 %v218_v10, %v219_v4  ;;  %v233_v24 = vmax.f32 %v231_v12, %v232_v5  ;;  %v236_v28 = vsel %vm152_vm0, %v140_v11, -inf  ;;  %v249_v31 = vsel %vm152_vm0, %v109_v13, -inf  ;;  %v64_v59 = vld [vmem:[%s1095_s0 + $0x1c0] sm:$0xff]  ;;  %v111_v3 = vld [vmem:[%s1095_s0 + $0x338] sm:$0xff]  ;;  %v17_v7 = vld [vmem:[%s1095_s0 + $0x48] sm:$0xff] }
  0x1b   :  { %v246_v30 = vmax.f32 %v244_v17, %v245_v8  ;;  %v259_v33 = vmax.f32 %v257_v19, %v258_v20  ;;  %v262_v38 = vsel %vm152_vm0, %v78_v18, -inf  ;;  %v272_v39 = vsel %vm152_vm0, %v15_v21, -inf  ;;  %v80_v5 = vld [vmem:[%s1095_s0 + $0x240] sm:$0xff]  ;;  %v33_v12 = vld [vmem:[%s1095_s0 + $0xc8] sm:$0xff]  ;;  %v127_v15 = vld [vmem:[%s1095_s0 + $0x3b8] sm:$0xff] }
  0x1c   :  { %428 = vst.msk [vmem:[%s1096_s1 + $0x18] sm:$0xff] %vm152_vm0, %v220_v23  ;;  %v235_v35 = vmax.f32 %v233_v24, %v234_v16  ;;  %v273_v40 = vsel %vm152_vm0, %v31_v22, -inf  ;;  %v275_v45 = vsel %vm152_vm0, %v47_v27, -inf  ;;  %v251_v49 = vsel %vm152_vm0, %v125_v29, -inf  ;;  %v96_v17 = vld [vmem:[%s1095_s0 + $0x2c0] sm:$0xff]  ;;  %v49_v19 = vld [vmem:[%s1095_s0 + $0x148] sm:$0xff] }
  0x1d   :  { %v248_v41 = vmax.f32 %v246_v30, %v247_v25  ;;  %v261_v42 = vmax.f32 %v259_v33, %v260_v26  ;;  %v274_v44 = vmax.f32 %v272_v39, %v273_v40  ;;  %v264_v51 = vsel %vm152_vm0, %v94_v32, -inf  ;;  %v65_v23 = vld [vmem:[%s1095_s0 + $0x1c8] sm:$0xff]  ;;  %v143_v26 = vld [vmem:[%s1095_s0 + $0x438] sm:$0xff]  ;;  %v128_v40 = vld [vmem:[%s1095_s0 + $0x3c0] sm:$0xff] }
  0x1e   :  { %v237_v48 = vmax.f32 %v235_v35, %v236_v28  ;;  %v277_v52 = vsel %vm152_vm0, %v63_v34, -inf  ;;  %v253_v54 = vsel %vm152_vm0, %v141_v36, -inf  ;;  %v266_v61 = vsel %vm152_vm0, %v110_v37, -inf  ;;  %v112_v28 = vld [vmem:[%s1095_s0 + $0x340] sm:$0xff]  ;;  %v81_v30 = vld [vmem:[%s1095_s0 + $0x248] sm:$0xff]  ;;  %v18_v36 = vld [vmem:[%s1095_s0 + $0x50] sm:$0xff] }
  0x1f   :  { %v250_v53 = vmax.f32 %v248_v41, %v249_v31  ;;  %v263_v55 = vmax.f32 %v261_v42, %v262_v38  ;;  %v276_v57 = vmax.f32 %v274_v44, %v275_v45  ;;  %v279_v62 = vsel %vm152_vm0, %v79_v43, -inf  ;;  %v34_v37 = vld [vmem:[%s1095_s0 + $0xd0] sm:$0xff] }
  0x20   :  { %429 = vst.msk [vmem:[%s1096_s1 + $0x20] sm:$0xff] %vm152_vm0, %v237_v48  ;;  %v289_v63 = vsel %vm152_vm0, %v16_v46, -inf  ;;  %v290_v0 = vsel %vm152_vm0, %v32_v47, -inf  ;;  %v268_v8 = vsel %vm152_vm0, %v126_v50, -inf  ;;  %v281_v9 = vsel %vm152_vm0, %v95_v56, -inf  ;;  %v50_v43 = vld [vmem:[%s1095_s0 + $0x150] sm:$0xff] }
  0x21   :  { %v252_v1 = vmax.f32 %v250_v53, %v251_v49  ;;  %v265_v2 = vmax.f32 %v263_v55, %v264_v51  ;;  %v278_v4 = vmax.f32 %v276_v57, %v277_v52  ;;  %v291_v6 = vmax.f32 %v289_v63, %v290_v0  ;;  %v97_v46 = vld [vmem:[%s1095_s0 + $0x2c8] sm:$0xff]  ;;  %v66_v49 = vld [vmem:[%s1095_s0 + $0x1d0] sm:$0xff]  ;;  %v144_v51 = vld [vmem:[%s1095_s0 + $0x440] sm:$0xff] }
  0x22   :  { %v292_v10 = vsel %vm152_vm0, %v48_v58, -inf  ;;  %v294_v11 = vsel %vm152_vm0, %v64_v59, -inf  ;;  %v270_v20 = vsel %vm152_vm0, %v142_v60, -inf  ;;  %v283_v21 = vsel %vm152_vm0, %v111_v3, -inf  ;;  %v113_v53 = vld [vmem:[%s1095_s0 + $0x348] sm:$0xff]  ;;  %v82_v58 = vld [vmem:[%s1095_s0 + $0x250] sm:$0xff] }
  0x23   :  { %v254_v13 = vmax.f32 %v252_v1, %v253_v54  ;;  %v267_v14 = vmax.f32 %v265_v2, %v266_v61  ;;  %v280_v16 = vmax.f32 %v278_v4, %v279_v62  ;;  %v293_v18 = vmax.f32 %v291_v6, %v292_v10  ;;  %v19_v61 = vld [vmem:[%s1095_s0 + $0x58] sm:$0xff] }
  0x24   :  { %v296_v22 = vsel %vm152_vm0, %v80_v5, -inf  ;;  %v306_v24 = vsel %vm152_vm0, %v17_v7, -inf  ;;  %v307_v31 = vsel %vm152_vm0, %v33_v12, -inf  ;;  %v285_v32 = vsel %vm152_vm0, %v127_v15, -inf  ;;  %v35_v62 = vld [vmem:[%s1095_s0 + $0xd8] sm:$0xff]  ;;  %v129_v5 = vld [vmem:[%s1095_s0 + $0x3c8] sm:$0xff] }
  0x25   :  { %430 = vst.msk [vmem:[%s1096_s1 + $0x28] sm:$0xff] %vm152_vm0, %v254_v13  ;;  %v269_v25 = vmax.f32 %v267_v14, %v268_v8  ;;  %v282_v27 = vmax.f32 %v280_v16, %v281_v9  ;;  %v295_v29 = vmax.f32 %v293_v18, %v294_v11  ;;  %v298_v33 = vsel %vm152_vm0, %v96_v17, -inf  ;;  %v51_v3 = vld [vmem:[%s1095_s0 + $0x158] sm:$0xff]  ;;  %v98_v8 = vld [vmem:[%s1095_s0 + $0x2d0] sm:$0xff]  ;;  %v145_v12 = vld [vmem:[%s1095_s0 + $0x448] sm:$0xff] }
  0x26   :  { %v308_v34 = vmax.f32 %v306_v24, %v307_v31  ;;  %v309_v35 = vsel %vm152_vm0, %v49_v19, -inf  ;;  %v311_v42 = vsel %vm152_vm0, %v65_v23, -inf  ;;  %v287_v44 = vsel %vm152_vm0, %v143_v26, -inf  ;;  %v67_v10 = vld [vmem:[%s1095_s0 + $0x1d8] sm:$0xff]  ;;  %v114_v13 = vld [vmem:[%s1095_s0 + $0x350] sm:$0xff]  ;;  %v36_v23 = vld [vmem:[%s1095_s0 + $0xe0] sm:$0xff] }
  0x27   :  { %v271_v38 = vmax.f32 %v269_v25, %v270_v20  ;;  %v284_v39 = vmax.f32 %v282_v27, %v283_v21  ;;  %v297_v41 = vmax.f32 %v295_v29, %v296_v22  ;;  %v300_v45 = vsel %vm152_vm0, %v112_v28, -inf  ;;  %v83_v19 = vld [vmem:[%s1095_s0 + $0x258] sm:$0xff]  ;;  %v20_v22 = vld [vmem:[%s1095_s0 + $0x60] sm:$0xff]  ;;  %v130_v26 = vld [vmem:[%s1095_s0 + $0x3d0] sm:$0xff] }
  0x28   :  { %v310_v47 = vmax.f32 %v308_v34, %v309_v35  ;;  %v313_v48 = vsel %vm152_vm0, %v81_v30, -inf  ;;  %v323_v54 = vsel %vm152_vm0, %v18_v36, -inf  ;;  %v324_v55 = vsel %vm152_vm0, %v34_v37, -inf  ;;  %v52_v34 = vld [vmem:[%s1095_s0 + $0x160] sm:$0xff]  ;;  %v146_v36 = vld [vmem:[%s1095_s0 + $0x450] sm:$0xff] }
  0x29   :  { %431 = vst.msk [vmem:[%s1096_s1 + $0x30] sm:$0xff] %vm152_vm0, %v271_v38  ;;  %v286_v50 = vmax.f32 %v284_v39, %v285_v32  ;;  %v299_v52 = vmax.f32 %v297_v41, %v298_v33  ;;  %v302_v56 = vsel %vm152_vm0, %v128_v40, -inf  ;;  %v325_v59 = vmax.f32 %v323_v54, %v324_v55  ;;  %v99_v32 = vld [vmem:[%s1095_s0 + $0x2d8] sm:$0xff]  ;;  %v68_v35 = vld [vmem:[%s1095_s0 + $0x1e0] sm:$0xff] }
  0x2a   :  { %v312_v57 = vmax.f32 %v310_v47, %v311_v42  ;;  %v326_v60 = vsel %vm152_vm0, %v50_v43, -inf  ;;  %v315_v1 = vsel %vm152_vm0, %v97_v46, -inf  ;;  %v328_v2 = vsel %vm152_vm0, %v66_v49, -inf  ;;  %v115_v43 = vld [vmem:[%s1095_s0 + $0x358] sm:$0xff]  ;;  %v21_v47 = vld [vmem:[%s1095_s0 + $0x68] sm:$0xff] }
  0x2b   :  { %v288_v63 = vmax.f32 %v286_v50, %v287_v44  ;;  %v301_v0 = vmax.f32 %v299_v52, %v300_v45  ;;  %v304_v4 = vsel %vm152_vm0, %v144_v51, -inf  ;;  %v317_v7 = vsel %vm152_vm0, %v113_v53, -inf  ;;  %v84_v45 = vld [vmem:[%s1095_s0 + $0x260] sm:$0xff]  ;;  %v37_v52 = vld [vmem:[%s1095_s0 + $0xe8] sm:$0xff]  ;;  %v131_v55 = vld [vmem:[%s1095_s0 + $0x3d8] sm:$0xff] }
  0x2c   :  { %v314_v6 = vmax.f32 %v312_v57, %v313_v48  ;;  %v327_v9 = vmax.f32 %v325_v59, %v326_v60  ;;  %v330_v14 = vsel %vm152_vm0, %v82_v58, -inf  ;;  %v340_v15 = vsel %vm152_vm0, %v19_v61, -inf  ;;  %v100_v57 = vld [vmem:[%s1095_s0 + $0x2e0] sm:$0xff]  ;;  %v53_v59 = vld [vmem:[%s1095_s0 + $0x168] sm:$0xff] }
  0x2d   :  { %432 = vst.msk [vmem:[%s1096_s1 + $0x38] sm:$0xff] %vm152_vm0, %v288_v63  ;;  %v303_v11 = vmax.f32 %v301_v0, %v302_v56  ;;  %v341_v16 = vsel %vm152_vm0, %v35_v62, -inf  ;;  %v343_v21 = vsel %vm152_vm0, %v51_v3, -inf  ;;  %v319_v25 = vsel %vm152_vm0, %v129_v5, -inf  ;;  %v69_v63 = vld [vmem:[%s1095_s0 + $0x1e8] sm:$0xff] }
  0x2e   :  { %v316_v17 = vmax.f32 %v314_v6, %v315_v1  ;;  %v329_v18 = vmax.f32 %v327_v9, %v328_v2  ;;  %v342_v20 = vmax.f32 %v340_v15, %v341_v16  ;;  %v332_v27 = vsel %vm152_vm0, %v98_v8, -inf  ;;  %v147_v2 = vld [vmem:[%s1095_s0 + $0x458] sm:$0xff]  ;;  %v85_v6 = vld [vmem:[%s1095_s0 + $0x268] sm:$0xff]  ;;  %v132_v16 = vld [vmem:[%s1095_s0 + $0x3e0] sm:$0xff] }
  0x2f   :  { %v305_v24 = vmax.f32 %v303_v11, %v304_v4  ;;  %v345_v28 = vsel %vm152_vm0, %v67_v10, -inf  ;;  %v321_v30 = vsel %vm152_vm0, %v145_v12, -inf  ;;  %v334_v37 = vsel %vm152_vm0, %v114_v13, -inf  ;;  %v116_v4 = vld [vmem:[%s1095_s0 + $0x360] sm:$0xff]  ;;  %v22_v12 = vld [vmem:[%s1095_s0 + $0x70] sm:$0xff] }
  0x30   :  { %v318_v29 = vmax.f32 %v316_v17, %v317_v7  ;;  %v331_v31 = vmax.f32 %v329_v18, %v330_v14  ;;  %v344_v33 = vmax.f32 %v342_v20, %v343_v21  ;;  %v347_v38 = vsel %vm152_vm0, %v83_v19, -inf  ;;  %v38_v13 = vld [vmem:[%s1095_s0 + $0xf0] sm:$0xff] }
  0x31   :  { %433 = vst.msk [vmem:[%s1096_s1 + $0x40] sm:$0xff] %vm152_vm0, %v305_v24  ;;  %v357_v39 = vsel %vm152_vm0, %v20_v22, -inf  ;;  %v358_v40 = vsel %vm152_vm0, %v36_v23, -inf  ;;  %v336_v48 = vsel %vm152_vm0, %v130_v26, -inf  ;;  %v349_v49 = vsel %vm152_vm0, %v99_v32, -inf  ;;  %v54_v19 = vld [vmem:[%s1095_s0 + $0x170] sm:$0xff] }
  0x32   :  { %v320_v41 = vmax.f32 %v318_v29, %v319_v25  ;;  %v333_v42 = vmax.f32 %v331_v31, %v332_v27  ;;  %v346_v44 = vmax.f32 %v344_v33, %v345_v28  ;;  %v359_v46 = vmax.f32 %v357_v39, %v358_v40  ;;  %v101_v22 = vld [vmem:[%s1095_s0 + $0x2e8] sm:$0xff]  ;;  %v70_v25 = vld [vmem:[%s1095_s0 + $0x1f0] sm:$0xff]  ;;  %v148_v27 = vld [vmem:[%s1095_s0 + $0x460] sm:$0xff] }
  0x33   :  { %v360_v50 = vsel %vm152_vm0, %v52_v34, -inf  ;;  %v362_v51 = vsel %vm152_vm0, %v68_v35, -inf  ;;  %v338_v60 = vsel %vm152_vm0, %v146_v36, -inf  ;;  %v351_v61 = vsel %vm152_vm0, %v115_v43, -inf  ;;  %v117_v29 = vld [vmem:[%s1095_s0 + $0x368] sm:$0xff]  ;;  %v86_v34 = vld [vmem:[%s1095_s0 + $0x270] sm:$0xff] }
  0x34   :  { %v322_v53 = vmax.f32 %v320_v41, %v321_v30  ;;  %v335_v54 = vmax.f32 %v333_v42, %v334_v37  ;;  %v348_v56 = vmax.f32 %v346_v44, %v347_v38  ;;  %v361_v58 = vmax.f32 %v359_v46, %v360_v50  ;;  %v23_v37 = vld [vmem:[%s1095_s0 + $0x78] sm:$0xff] }
  0x35   :  { %v364_v62 = vsel %vm152_vm0, %v84_v45, -inf  ;;  %v374_v0 = vsel %vm152_vm0, %v21_v47, -inf  ;;  %v375_v7 = vsel %vm152_vm0, %v37_v52, -inf  ;;  %v353_v8 = vsel %vm152_vm0, %v131_v55, -inf  ;;  %v39_v38 = vld [vmem:[%s1095_s0 + $0xf8] sm:$0xff]  ;;  %v133_v45 = vld [vmem:[%s1095_s0 + $0x3e8] sm:$0xff] }
  0x36   :  { %434 = vst.msk [vmem:[%s1096_s1 + $0x48] sm:$0xff] %vm152_vm0, %v322_v53  ;;  %v337_v1 = vmax.f32 %v335_v54, %v336_v48  ;;  %v350_v3 = vmax.f32 %v348_v56, %v349_v49  ;;  %v363_v5 = vmax.f32 %v361_v58, %v362_v51  ;;  %v366_v9 = vsel %vm152_vm0, %v100_v57, -inf  ;;  %v55_v43 = vld [vmem:[%s1095_s0 + $0x178] sm:$0xff]  ;;  %v102_v48 = vld [vmem:[%s1095_s0 + $0x2f0] sm:$0xff]  ;;  %v149_v55 = vld [vmem:[%s1095_s0 + $0x468] sm:$0xff] }
  0x37   :  { %v376_v10 = vmax.f32 %v374_v0, %v375_v7  ;;  %v377_v11 = vsel %vm152_vm0, %v53_v59, -inf  ;;  %v379_v18 = vsel %vm152_vm0, %v69_v63, -inf  ;;  %v355_v20 = vsel %vm152_vm0, %v147_v2, -inf  ;;  %v71_v50 = vld [vmem:[%s1095_s0 + $0x1f8] sm:$0xff]  ;;  %v118_v57 = vld [vmem:[%s1095_s0 + $0x370] sm:$0xff] }
  0x38   :  { %v339_v14 = vmax.f32 %v337_v1, %v338_v60  ;;  %v352_v15 = vmax.f32 %v350_v3, %v351_v61  ;;  %v365_v17 = vmax.f32 %v363_v5, %v364_v62  ;;  %v368_v21 = vsel %vm152_vm0, %v116_v4, -inf  ;;  %v87_v59 = vld [vmem:[%s1095_s0 + $0x278] sm:$0xff]  ;;  %v134_v3 = vld [vmem:[%s1095_s0 + $0x3f0] sm:$0xff] }
  0x39   :  { %v378_v23 = vmax.f32 %v376_v10, %v377_v11  ;;  %v381_v24 = vsel %vm152_vm0, %v85_v6, -inf  ;;  %v391_v30 = vsel %vm152_vm0, %v22_v12, -inf  ;;  %v392_v31 = vsel %vm152_vm0, %v38_v13, -inf  ;;  %v103_v5 = vld [vmem:[%s1095_s0 + $0x2f8] sm:$0xff]  ;;  %v150_v11 = vld [vmem:[%s1095_s0 + $0x470] sm:$0xff] }
  0x3a   :  { %435 = vst.msk [vmem:[%s1096_s1 + $0x50] sm:$0xff] %vm152_vm0, %v339_v14  ;;  %v354_v26 = vmax.f32 %v352_v15, %v353_v8  ;;  %v367_v28 = vmax.f32 %v365_v17, %v366_v9  ;;  %v370_v32 = vsel %vm152_vm0, %v132_v16, -inf  ;;  %v393_v35 = vmax.f32 %v391_v30, %v392_v31  ;;  %v119_v13 = vld [vmem:[%s1095_s0 + $0x378] sm:$0xff] }
  0x3b   :  { %v380_v33 = vmax.f32 %v378_v23, %v379_v18  ;;  %v394_v36 = vsel %vm152_vm0, %v54_v19, -inf  ;;  %v383_v41 = vsel %vm152_vm0, %v101_v22, -inf  ;;  %v396_v42 = vsel %vm152_vm0, %v70_v25, -inf  ;;  %v135_v19 = vld [vmem:[%s1095_s0 + $0x3f8] sm:$0xff] }
  0x3c   :  { %v356_v39 = vmax.f32 %v354_v26, %v355_v20  ;;  %v369_v40 = vmax.f32 %v367_v28, %v368_v21  ;;  %v372_v44 = vsel %vm152_vm0, %v148_v27, -inf  ;;  %v385_v47 = vsel %vm152_vm0, %v117_v29, -inf }
  0x3d   :  { %v382_v46 = vmax.f32 %v380_v33, %v381_v24  ;;  %v395_v49 = vmax.f32 %v393_v35, %v394_v36  ;;  %v398_v52 = vsel %vm152_vm0, %v86_v34, -inf  ;;  %v408_v53 = vsel %vm152_vm0, %v23_v37, -inf  ;;  %v151_v24 = vld [vmem:[%s1095_s0 + $0x478] sm:$0xff] }
  0x3e   :  { %436 = vst.msk [vmem:[%s1096_s1 + $0x58] sm:$0xff] %vm152_vm0, %v356_v39  ;;  %v371_v51 = vmax.f32 %v369_v40, %v370_v32  ;;  %v409_v54 = vsel %vm152_vm0, %v39_v38, -inf  ;;  %v411_v61 = vsel %vm152_vm0, %v55_v43, -inf  ;;  %v387_v63 = vsel %vm152_vm0, %v133_v45, -inf }
  0x3f   :  { %v384_v56 = vmax.f32 %v382_v46, %v383_v41  ;;  %v397_v58 = vmax.f32 %v395_v49, %v396_v42  ;;  %v410_v60 = vmax.f32 %v408_v53, %v409_v54  ;;  %v400_v0 = vsel %vm152_vm0, %v102_v48, -inf }
  0x40   :  { %v373_v62 = vmax.f32 %v371_v51, %v372_v44  ;;  %v413_v1 = vsel %vm152_vm0, %v71_v50, -inf  ;;  %v389_v7 = vsel %vm152_vm0, %v149_v55, -inf  ;;  %v402_v8 = vsel %vm152_vm0, %v118_v57, -inf }
  0x41   :  { %v386_v2 = vmax.f32 %v384_v56, %v385_v47  ;;  %v399_v4 = vmax.f32 %v397_v58, %v398_v52  ;;  %v412_v6 = vmax.f32 %v410_v60, %v411_v61  ;;  %v415_v9 = vsel %vm152_vm0, %v87_v59, -inf }
  0x42   :  { %437 = vst.msk [vmem:[%s1096_s1 + $0x60] sm:$0xff] %vm152_vm0, %v373_v62  ;;  %v404_v15 = vsel %vm152_vm0, %v134_v3, -inf  ;;  %v417_v16 = vsel %vm152_vm0, %v103_v5, -inf  ;;  %v406_v21 = vsel %vm152_vm0, %v150_v11, -inf  ;;  %v419_v22 = vsel %vm152_vm0, %v119_v13, -inf }
  0x43   :  { %v388_v10 = vmax.f32 %v386_v2, %v387_v63  ;;  %v401_v12 = vmax.f32 %v399_v4, %v400_v0  ;;  %v414_v14 = vmax.f32 %v412_v6, %v413_v1  ;;  %v421_v26 = vsel %vm152_vm0, %v135_v19, -inf }
  0x44   :  { %v423_v29 = vsel %vm152_vm0, %v151_v24, -inf }
  0x45   :  { %v390_v17 = vmax.f32 %v388_v10, %v389_v7  ;;  %v403_v18 = vmax.f32 %v401_v12, %v402_v8  ;;  %v416_v20 = vmax.f32 %v414_v14, %v415_v9 }
  0x47   :  { %438 = vst.msk [vmem:[%s1096_s1 + $0x68] sm:$0xff] %vm152_vm0, %v390_v17  ;;  %v405_v23 = vmax.f32 %v403_v18, %v404_v15  ;;  %v418_v25 = vmax.f32 %v416_v20, %v417_v16 }
  0x49   :  { %v407_v27 = vmax.f32 %v405_v23, %v406_v21  ;;  %v420_v28 = vmax.f32 %v418_v25, %v419_v22 }
  0x4b   :  { %439 = vst.msk [vmem:[%s1096_s1 + $0x70] sm:$0xff] %vm152_vm0, %v407_v27  ;;  %v422_v30 = vmax.f32 %v420_v28, %v421_v26 }
  0x4d   :  { %v424_v31 = vmax.f32 %v422_v30, %v423_v29 }
  0x4f   :  { %440 = vst.msk [vmem:[%s1096_s1 + $0x78] sm:$0xff] %vm152_vm0, %v424_v31 }

// kernel: _lambda_.17
= control target key start
LH: loop header
LB: loop body
LE: loop exit
PB: predicated region body
PF: predicated region fallthrough
CT: control target
= control target key end

     0   :  { %v1576_v0 = vmov 0   ;;  %vm19_vm0 = vcmask 130048   ;;  %v1577_v19 = vmov 0.0   ;;  %s2386_s1 = inlined_call_operand.vmem [shape: bf16[256,16], index: 1, kind: input, shape index: {}]   ;;  %s2387_s0 = inlined_call_operand.vmem [shape: bf16[512,256], index: 0, kind: input, shape index: {}]   ;;  %s2388_s2 = inlined_call_operand.vmem [shape: f32[1,16], index: 2, kind: input, shape index: {}]   ;;  %s2389_s3 = inlined_call_operand.vmem [shape: f32[512,16], index: 3, kind: output, shape index: {}]  }
   0x1   :  { %660 = vmatprep.subr.bf16.mxu0 %v1576_v0  ;;  %1429 = vmatprep.subr.bf16.mxu1 %v1576_v0  ;;  %v1463_v1 = vld [vmem:[%s2386_s1 + $0x38] sm:$0xff]   ;;  %v1464_v2 = vld [vmem:[%s2386_s1 + $0x30] sm:$0xff]   ;;  %v1465_v3 = vld [vmem:[%s2386_s1 + $0x28] sm:$0xff]   ;;  %20 = vst.msk [vmem:[#allocation2] sm:$0xff] %vm19_vm0, %v1577_v19 }
   0x2   :  { %661 = vmatpush1.bf16.msra.mxu0 %v1463_v1  ;;  %1445 = vmatpush1.bf16.msra.mxu1 %v1463_v1  ;;  %v1466_v4 = vld [vmem:[%s2386_s1 + $0x20] sm:$0xff]   ;;  %v1467_v5 = vld [vmem:[%s2386_s1 + $0x18] sm:$0xff]   ;;  %v1468_v7 = vld [vmem:[%s2386_s1 + $0x10] sm:$0xff]   ;;  %21 = vst.msk [vmem:[#allocation2 + $0x8] sm:$0xff] %vm19_vm0, %v1577_v19 }
   0x3   :  { %662 = vmatprep.subr.bf16.mxu0 %v1576_v0  ;;  %1430 = vmatprep.subr.bf16.mxu1 %v1576_v0  ;;  %v1481_v6 = vld [vmem:[%s2387_s0 + $0x4] ss:$8 sps:$4 sm:$0xff]   ;;  %v1471_v11 = vld [vmem:[%s2386_s1 + $0x78] sm:$0xff]   ;;  %v1472_v12 = vld [vmem:[%s2386_s1 + $0x70] sm:$0xff]   ;;  %22 = vst.msk [vmem:[#allocation2 + $0x10] sm:$0xff] %vm19_vm0, %v1577_v19 }
   0x4   :  { %v1484_v8 = vld [vmem:[%s2387_s0 + $0x104] ss:$8 sps:$4 sm:$0xff]   ;;  %692 = vmatprep.mubr.bf16.mxu0 %v1481_v6  ;;  %v1475_v15 = vld [vmem:[%s2386_s1 + $0x58] sm:$0xff]   ;;  %v1476_v16 = vld [vmem:[%s2386_s1 + $0x50] sm:$0xff]   ;;  %23 = vst.msk [vmem:[#allocation2 + $0x18] sm:$0xff] %vm19_vm0, %v1577_v19 }
   0x5   :  { %820 = vmatprep.mubr.bf16.mxu1 %v1484_v8  ;;  %v1469_v9 = vld [vmem:[%s2386_s1 + $0x8] sm:$0xff]   ;;  %v1470_v10 = vld [vmem:[%s2386_s1] sm:$0xff]   ;;  %24 = vst.msk [vmem:[#allocation2 + $0x20] sm:$0xff] %vm19_vm0, %v1577_v19  ;;  %25 = vst.msk [vmem:[#allocation2 + $0x28] sm:$0xff] %vm19_vm0, %v1577_v19 }
   0x6   :  { %663 = vmatpush1.bf16.msra.mxu0 %v1464_v2  ;;  %1446 = vmatpush1.bf16.msra.mxu1 %v1464_v2  ;;  %v1473_v13 = vld [vmem:[%s2386_s1 + $0x68] sm:$0xff]   ;;  %v1474_v14 = vld [vmem:[%s2386_s1 + $0x60] sm:$0xff]   ;;  %26 = vst.msk [vmem:[#allocation2 + $0x30] sm:$0xff] %vm19_vm0, %v1577_v19  ;;  %27 = vst.msk [vmem:[#allocation2 + $0x38] sm:$0xff] %vm19_vm0, %v1577_v19 }
   0x7   :  { %664 = vmatprep.subr.bf16.mxu0 %v1576_v0  ;;  %1431 = vmatprep.subr.bf16.mxu1 %v1576_v0  ;;  %v1477_v17 = vld [vmem:[%s2386_s1 + $0x48] sm:$0xff]   ;;  %v1682_v18 = vld [vmem:[%s2386_s1 + $0x40] sm:$0xff]   ;;  %28 = vst.msk [vmem:[#allocation2 + $0x40] sm:$0xff] %vm19_vm0, %v1577_v19  ;;  %29 = vst.msk [vmem:[#allocation2 + $0x48] sm:$0xff] %vm19_vm0, %v1577_v19 }
   0x8   :  { %30 = vst.msk [vmem:[#allocation2 + $0x50] sm:$0xff] %vm19_vm0, %v1577_v19  ;;  %31 = vst.msk [vmem:[#allocation2 + $0x58] sm:$0xff] %vm19_vm0, %v1577_v19  ;;  %v1479_v20 = vld [vmem:[%s2387_s0] ss:$8 sps:$4 sm:$0xff]   ;;  %v1485_v22 = vld [vmem:[%s2387_s0 + $0x14] ss:$8 sps:$4 sm:$0xff]  }
   0x9   :  { %32 = vst.msk [vmem:[#allocation2 + $0x60] sm:$0xff] %vm19_vm0, %v1577_v19  ;;  %33 = vst.msk [vmem:[#allocation2 + $0x68] sm:$0xff] %vm19_vm0, %v1577_v19  ;;  %v1482_v21 = vld [vmem:[%s2387_s0 + $0x100] ss:$8 sps:$4 sm:$0xff]   ;;  %v1487_v23 = vld [vmem:[%s2387_s0 + $0x114] ss:$8 sps:$4 sm:$0xff]  }
   0xa   :  { %665 = vmatpush1.bf16.msra.mxu0 %v1465_v3  ;;  %1447 = vmatpush1.bf16.msra.mxu1 %v1465_v3  ;;  %34 = vst.msk [vmem:[#allocation2 + $0x70] sm:$0xff] %vm19_vm0, %v1577_v19  ;;  %35 = vst.msk [vmem:[#allocation2 + $0x78] sm:$0xff] %vm19_vm0, %v1577_v19  ;;  %v1489_v24 = vld [vmem:[%s2387_s0 + $0x10] ss:$8 sps:$4 sm:$0xff]   ;;  %v1491_v26 = vld [vmem:[%s2387_s0 + $0x24] ss:$8 sps:$4 sm:$0xff]  }
   0xb   :  { %666 = vmatprep.subr.bf16.mxu0 %v1576_v0  ;;  %1432 = vmatprep.subr.bf16.mxu1 %v1576_v0  ;;  %36 = vst.msk [vmem:[#allocation2 + $0x80] sm:$0xff] %vm19_vm0, %v1577_v19  ;;  %37 = vst.msk [vmem:[#allocation2 + $0x88] sm:$0xff] %vm19_vm0, %v1577_v19  ;;  %v1490_v25 = vld [vmem:[%s2387_s0 + $0x110] ss:$8 sps:$4 sm:$0xff]   ;;  %v1493_v27 = vld [vmem:[%s2387_s0 + $0x124] ss:$8 sps:$4 sm:$0xff]  }
   0xc   :  { %38 = vst.msk [vmem:[#allocation2 + $0x90] sm:$0xff] %vm19_vm0, %v1577_v19  ;;  %39 = vst.msk [vmem:[#allocation2 + $0x98] sm:$0xff] %vm19_vm0, %v1577_v19  ;;  %v1495_v28 = vld [vmem:[%s2387_s0 + $0x20] ss:$8 sps:$4 sm:$0xff]   ;;  %v1497_v30 = vld [vmem:[%s2387_s0 + $0x34] ss:$8 sps:$4 sm:$0xff]  }
   0xd   :  { %40 = vst.msk [vmem:[#allocation2 + $0xa0] sm:$0xff] %vm19_vm0, %v1577_v19  ;;  %41 = vst.msk [vmem:[#allocation2 + $0xa8] sm:$0xff] %vm19_vm0, %v1577_v19  ;;  %v1496_v29 = vld [vmem:[%s2387_s0 + $0x120] ss:$8 sps:$4 sm:$0xff]   ;;  %v1499_v31 = vld [vmem:[%s2387_s0 + $0x134] ss:$8 sps:$4 sm:$0xff]  }
   0xe   :  { %667 = vmatpush1.bf16.msra.mxu0 %v1466_v4  ;;  %1448 = vmatpush1.bf16.msra.mxu1 %v1466_v4  ;;  %42 = vst.msk [vmem:[#allocation2 + $0xb0] sm:$0xff] %vm19_vm0, %v1577_v19  ;;  %43 = vst.msk [vmem:[#allocation2 + $0xb8] sm:$0xff] %vm19_vm0, %v1577_v19  ;;  %v1501_v32 = vld [vmem:[%s2387_s0 + $0x30] ss:$8 sps:$4 sm:$0xff]   ;;  %v1503_v34 = vld [vmem:[%s2387_s0 + $0x44] ss:$8 sps:$4 sm:$0xff]  }
   0xf   :  { %668 = vmatprep.subr.bf16.mxu0 %v1576_v0  ;;  %1433 = vmatprep.subr.bf16.mxu1 %v1576_v0  ;;  %44 = vst.msk [vmem:[#allocation2 + $0xc0] sm:$0xff] %vm19_vm0, %v1577_v19  ;;  %45 = vst.msk [vmem:[#allocation2 + $0xc8] sm:$0xff] %vm19_vm0, %v1577_v19  ;;  %v1502_v33 = vld [vmem:[%s2387_s0 + $0x130] ss:$8 sps:$4 sm:$0xff]   ;;  %v1505_v35 = vld [vmem:[%s2387_s0 + $0x144] ss:$8 sps:$4 sm:$0xff]  }
  0x10   :  { %46 = vst.msk [vmem:[#allocation2 + $0xd0] sm:$0xff] %vm19_vm0, %v1577_v19  ;;  %47 = vst.msk [vmem:[#allocation2 + $0xd8] sm:$0xff] %vm19_vm0, %v1577_v19  ;;  %v1507_v36 = vld [vmem:[%s2387_s0 + $0x40] ss:$8 sps:$4 sm:$0xff]   ;;  %v1509_v38 = vld [vmem:[%s2387_s0 + $0x54] ss:$8 sps:$4 sm:$0xff]  }
  0x11   :  { %48 = vst.msk [vmem:[#allocation2 + $0xe0] sm:$0xff] %vm19_vm0, %v1577_v19  ;;  %49 = vst.msk [vmem:[#allocation2 + $0xe8] sm:$0xff] %vm19_vm0, %v1577_v19  ;;  %v1508_v37 = vld [vmem:[%s2387_s0 + $0x140] ss:$8 sps:$4 sm:$0xff]   ;;  %v1511_v39 = vld [vmem:[%s2387_s0 + $0x154] ss:$8 sps:$4 sm:$0xff]  }
  0x12   :  { %669 = vmatpush1.bf16.msra.mxu0 %v1467_v5  ;;  %1449 = vmatpush1.bf16.msra.mxu1 %v1467_v5  ;;  %50 = vst.msk [vmem:[#allocation2 + $0xf0] sm:$0xff] %vm19_vm0, %v1577_v19  ;;  %51 = vst.msk [vmem:[#allocation2 + $0xf8] sm:$0xff] %vm19_vm0, %v1577_v19  ;;  %v1513_v40 = vld [vmem:[%s2387_s0 + $0x50] ss:$8 sps:$4 sm:$0xff]   ;;  %v1515_v42 = vld [vmem:[%s2387_s0 + $0x64] ss:$8 sps:$4 sm:$0xff]  }
  0x13   :  { %670 = vmatprep.subr.bf16.mxu0 %v1576_v0  ;;  %1434 = vmatprep.subr.bf16.mxu1 %v1576_v0  ;;  %52 = vst.msk [vmem:[#allocation2 + $0x100] sm:$0xff] %vm19_vm0, %v1577_v19  ;;  %53 = vst.msk [vmem:[#allocation2 + $0x108] sm:$0xff] %vm19_vm0, %v1577_v19  ;;  %v1514_v41 = vld [vmem:[%s2387_s0 + $0x150] ss:$8 sps:$4 sm:$0xff]   ;;  %v1517_v43 = vld [vmem:[%s2387_s0 + $0x164] ss:$8 sps:$4 sm:$0xff]  }
  0x14   :  { %54 = vst.msk [vmem:[#allocation2 + $0x110] sm:$0xff] %vm19_vm0, %v1577_v19  ;;  %55 = vst.msk [vmem:[#allocation2 + $0x118] sm:$0xff] %vm19_vm0, %v1577_v19  ;;  %v1519_v44 = vld [vmem:[%s2387_s0 + $0x60] ss:$8 sps:$4 sm:$0xff]   ;;  %v1521_v46 = vld [vmem:[%s2387_s0 + $0x74] ss:$8 sps:$4 sm:$0xff]  }
  0x15   :  { %56 = vst.msk [vmem:[#allocation2 + $0x120] sm:$0xff] %vm19_vm0, %v1577_v19  ;;  %57 = vst.msk [vmem:[#allocation2 + $0x128] sm:$0xff] %vm19_vm0, %v1577_v19  ;;  %v1520_v45 = vld [vmem:[%s2387_s0 + $0x160] ss:$8 sps:$4 sm:$0xff]   ;;  %v1523_v47 = vld [vmem:[%s2387_s0 + $0x174] ss:$8 sps:$4 sm:$0xff]  }
  0x16   :  { %671 = vmatpush1.bf16.msra.mxu0 %v1468_v7  ;;  %1450 = vmatpush1.bf16.msra.mxu1 %v1468_v7  ;;  %58 = vst.msk [vmem:[#allocation2 + $0x130] sm:$0xff] %vm19_vm0, %v1577_v19  ;;  %59 = vst.msk [vmem:[#allocation2 + $0x138] sm:$0xff] %vm19_vm0, %v1577_v19  ;;  %v1525_v48 = vld [vmem:[%s2387_s0 + $0x70] ss:$8 sps:$4 sm:$0xff]   ;;  %v1527_v50 = vld [vmem:[%s2387_s0 + $0x84] ss:$8 sps:$4 sm:$0xff]  }
  0x17   :  { %672 = vmatprep.subr.bf16.mxu0 %v1576_v0  ;;  %1435 = vmatprep.subr.bf16.mxu1 %v1576_v0  ;;  %60 = vst.msk [vmem:[#allocation2 + $0x140] sm:$0xff] %vm19_vm0, %v1577_v19  ;;  %61 = vst.msk [vmem:[#allocation2 + $0x148] sm:$0xff] %vm19_vm0, %v1577_v19  ;;  %v1526_v49 = vld [vmem:[%s2387_s0 + $0x170] ss:$8 sps:$4 sm:$0xff]   ;;  %v1529_v51 = vld [vmem:[%s2387_s0 + $0x184] ss:$8 sps:$4 sm:$0xff]  }
  0x18   :  { %62 = vst.msk [vmem:[#allocation2 + $0x150] sm:$0xff] %vm19_vm0, %v1577_v19  ;;  %63 = vst.msk [vmem:[#allocation2 + $0x158] sm:$0xff] %vm19_vm0, %v1577_v19  ;;  %v1531_v52 = vld [vmem:[%s2387_s0 + $0x80] ss:$8 sps:$4 sm:$0xff]   ;;  %v1533_v54 = vld [vmem:[%s2387_s0 + $0x94] ss:$8 sps:$4 sm:$0xff]  }
  0x19   :  { %64 = vst.msk [vmem:[#allocation2 + $0x160] sm:$0xff] %vm19_vm0, %v1577_v19  ;;  %65 = vst.msk [vmem:[#allocation2 + $0x168] sm:$0xff] %vm19_vm0, %v1577_v19  ;;  %v1532_v53 = vld [vmem:[%s2387_s0 + $0x180] ss:$8 sps:$4 sm:$0xff]   ;;  %v1535_v55 = vld [vmem:[%s2387_s0 + $0x194] ss:$8 sps:$4 sm:$0xff]  }
  0x1a   :  { %673 = vmatpush1.bf16.msra.mxu0 %v1469_v9  ;;  %1451 = vmatpush1.bf16.msra.mxu1 %v1469_v9  ;;  %66 = vst.msk [vmem:[#allocation2 + $0x170] sm:$0xff] %vm19_vm0, %v1577_v19  ;;  %67 = vst.msk [vmem:[#allocation2 + $0x178] sm:$0xff] %vm19_vm0, %v1577_v19  ;;  %v1537_v56 = vld [vmem:[%s2387_s0 + $0x90] ss:$8 sps:$4 sm:$0xff]   ;;  %v1539_v58 = vld [vmem:[%s2387_s0 + $0xa4] ss:$8 sps:$4 sm:$0xff]  }
  0x1b   :  { %674 = vmatprep.subr.bf16.mxu0 %v1576_v0  ;;  %1436 = vmatprep.subr.bf16.mxu1 %v1576_v0  ;;  %68 = vst.msk [vmem:[#allocation2 + $0x180] sm:$0xff] %vm19_vm0, %v1577_v19  ;;  %69 = vst.msk [vmem:[#allocation2 + $0x188] sm:$0xff] %vm19_vm0, %v1577_v19  ;;  %v1538_v57 = vld [vmem:[%s2387_s0 + $0x190] ss:$8 sps:$4 sm:$0xff]   ;;  %v1541_v59 = vld [vmem:[%s2387_s0 + $0x1a4] ss:$8 sps:$4 sm:$0xff]  }
  0x1c   :  { %70 = vst.msk [vmem:[#allocation2 + $0x190] sm:$0xff] %vm19_vm0, %v1577_v19  ;;  %71 = vst.msk [vmem:[#allocation2 + $0x198] sm:$0xff] %vm19_vm0, %v1577_v19  ;;  %v1543_v60 = vld [vmem:[%s2387_s0 + $0xa0] ss:$8 sps:$4 sm:$0xff]   ;;  %v1545_v62 = vld [vmem:[%s2387_s0 + $0xb4] ss:$8 sps:$4 sm:$0xff]  }
  0x1d   :  { %72 = vst.msk [vmem:[#allocation2 + $0x1a0] sm:$0xff] %vm19_vm0, %v1577_v19  ;;  %73 = vst.msk [vmem:[#allocation2 + $0x1a8] sm:$0xff] %vm19_vm0, %v1577_v19  ;;  %v1544_v61 = vld [vmem:[%s2387_s0 + $0x1a0] ss:$8 sps:$4 sm:$0xff]   ;;  %v1547_v63 = vld [vmem:[%s2387_s0 + $0x1b4] ss:$8 sps:$4 sm:$0xff]  }
  0x1e   :  { %675 = vmatpush1.bf16.msra.mxu0 %v1470_v10  ;;  %1452 = vmatpush1.bf16.msra.mxu1 %v1470_v10  ;;  %74 = vst.msk [vmem:[#allocation2 + $0x1b0] sm:$0xff] %vm19_vm0, %v1577_v19  ;;  %75 = vst.msk [vmem:[#allocation2 + $0x1b8] sm:$0xff] %vm19_vm0, %v1577_v19  ;;  %v1550_v1 = vld [vmem:[%s2387_s0 + $0x1b0] ss:$8 sps:$4 sm:$0xff]   ;;  %v1551_v2 = vld [vmem:[%s2387_s0 + $0xc4] ss:$8 sps:$4 sm:$0xff]  }
  0x1f   :  { %676 = vmatprep.subr.bf16.mxu0 %v1576_v0  ;;  %1437 = vmatprep.subr.bf16.mxu1 %v1576_v0  ;;  %76 = vst.msk [vmem:[#allocation2 + $0x1c0] sm:$0xff] %vm19_vm0, %v1577_v19  ;;  %77 = vst.msk [vmem:[#allocation2 + $0x1c8] sm:$0xff] %vm19_vm0, %v1577_v19  ;;  %v1553_v3 = vld [vmem:[%s2387_s0 + $0x1c4] ss:$8 sps:$4 sm:$0xff]   ;;  %v1555_v4 = vld [vmem:[%s2387_s0 + $0xc0] ss:$8 sps:$4 sm:$0xff]  }
  0x20   :  { %78 = vst.msk [vmem:[#allocation2 + $0x1d0] sm:$0xff] %vm19_vm0, %v1577_v19  ;;  %79 = vst.msk [vmem:[#allocation2 + $0x1d8] sm:$0xff] %vm19_vm0, %v1577_v19  ;;  %v1556_v5 = vld [vmem:[%s2387_s0 + $0x1c0] ss:$8 sps:$4 sm:$0xff]   ;;  %v1557_v6 = vld [vmem:[%s2387_s0 + $0xd4] ss:$8 sps:$4 sm:$0xff]  }
  0x21   :  { %80 = vst.msk [vmem:[#allocation2 + $0x1e0] sm:$0xff] %vm19_vm0, %v1577_v19  ;;  %81 = vst.msk [vmem:[#allocation2 + $0x1e8] sm:$0xff] %vm19_vm0, %v1577_v19  ;;  %v1559_v7 = vld [vmem:[%s2387_s0 + $0x1d4] ss:$8 sps:$4 sm:$0xff]   ;;  %v1561_v8 = vld [vmem:[%s2387_s0 + $0xd0] ss:$8 sps:$4 sm:$0xff]  }
  0x22   :  { %677 = vmatpush2.bf16.msra.mxu0 %v1471_v11  ;;  %1453 = vmatpush2.bf16.msra.mxu1 %v1471_v11  ;;  %82 = vst.msk [vmem:[#allocation2 + $0x1f0] sm:$0xff] %vm19_vm0, %v1577_v19  ;;  %83 = vst.msk [vmem:[#allocation2 + $0x1f8] sm:$0xff] %vm19_vm0, %v1577_v19  ;;  %v1562_v9 = vld [vmem:[%s2387_s0 + $0x1d0] ss:$8 sps:$4 sm:$0xff]   ;;  %v1563_v10 = vld [vmem:[%s2387_s0 + $0xe4] ss:$8 sps:$4 sm:$0xff]  }
  0x23   :  { %678 = vmatprep.subr.bf16.mxu0 %v1576_v0  ;;  %1438 = vmatprep.subr.bf16.mxu1 %v1576_v0  ;;  %v1565_v11 = vld [vmem:[%s2387_s0 + $0x1e4] ss:$8 sps:$4 sm:$0xff]  }
  0x24   :  { %v116_v19 = vld [vmem:[#allocation2 + $0x100] sm:$0xff] }
  0x26   :  { %679 = vmatpush2.bf16.msra.mxu0 %v1472_v12  ;;  %1454 = vmatpush2.bf16.msra.mxu1 %v1472_v12  ;;  %v1567_v12 = vld [vmem:[%s2387_s0 + $0xe0] ss:$8 sps:$4 sm:$0xff]  }
  0x27   :  { %680 = vmatprep.subr.bf16.mxu0 %v1576_v0  ;;  %1439 = vmatprep.subr.bf16.mxu1 %v1576_v0 }
  0x2a   :  { %681 = vmatpush2.bf16.msra.mxu0 %v1473_v13  ;;  %1455 = vmatpush2.bf16.msra.mxu1 %v1473_v13  ;;  %v1568_v13 = vld [vmem:[%s2387_s0 + $0x1e0] ss:$8 sps:$4 sm:$0xff]  }
  0x2b   :  { %682 = vmatprep.subr.bf16.mxu0 %v1576_v0  ;;  %1440 = vmatprep.subr.bf16.mxu1 %v1576_v0 }
  0x2e   :  { %683 = vmatpush2.bf16.msra.mxu0 %v1474_v14  ;;  %1456 = vmatpush2.bf16.msra.mxu1 %v1474_v14  ;;  %v1569_v14 = vld [vmem:[%s2387_s0 + $0xf4] ss:$8 sps:$4 sm:$0xff]  }
  0x2f   :  { %684 = vmatprep.subr.bf16.mxu0 %v1576_v0  ;;  %1441 = vmatprep.subr.bf16.mxu1 %v1576_v0 }
  0x32   :  { %685 = vmatpush2.bf16.msra.mxu0 %v1475_v15  ;;  %1457 = vmatpush2.bf16.msra.mxu1 %v1475_v15  ;;  %v1571_v15 = vld [vmem:[%s2387_s0 + $0x1f4] ss:$8 sps:$4 sm:$0xff]  }
  0x33   :  { %686 = vmatprep.subr.bf16.mxu0 %v1576_v0  ;;  %1442 = vmatprep.subr.bf16.mxu1 %v1576_v0 }
  0x36   :  { %687 = vmatpush2.bf16.msra.mxu0 %v1476_v16  ;;  %1458 = vmatpush2.bf16.msra.mxu1 %v1476_v16  ;;  %v1573_v16 = vld [vmem:[%s2387_s0 + $0xf0] ss:$8 sps:$4 sm:$0xff]  }
  0x37   :  { %688 = vmatprep.subr.bf16.mxu0 %v1576_v0  ;;  %1443 = vmatprep.subr.bf16.mxu1 %v1576_v0 }
  0x3a   :  { %689 = vmatpush2.bf16.msra.mxu0 %v1477_v17  ;;  %1459 = vmatpush2.bf16.msra.mxu1 %v1477_v17  ;;  %v1574_v17 = vld [vmem:[%s2387_s0 + $0x1f0] ss:$8 sps:$4 sm:$0xff]  }
  0x3b   :  { %690 = vmatprep.subr.bf16.mxu0 %v1576_v0  ;;  %1444 = vmatprep.subr.bf16.mxu1 %v1576_v0  ;;  %v1549_v0 = vld [vmem:[%s2387_s0 + $0xb0] ss:$8 sps:$4 sm:$0xff]  }
  0x3e   :  { %691 = vmatpush2.bf16.msra.mxu0 %v1682_v18  ;;  %1460 = vmatpush2.bf16.msra.mxu1 %v1682_v18  ;;  %v84_v18 = vld [vmem:[#allocation2] sm:$0xff] }
  0x41   :  { %693 = vmatmul.mubr.bf16.vlgmr.msra.gmra.mxu0 %v1479_v20  ;;  %821 = vmatmul.mubr.bf16.vlgmr.msra.gmra.mxu1 %v1482_v21 }
  0x42   :  { %700 = vmatprep.mubr.bf16.mxu0 %v1485_v22  ;;  %828 = vmatprep.mubr.bf16.mxu1 %v1487_v23 }
  0x49   :  { %701 = vmatmul.mubr.bf16.gmra.mxu0 %v1489_v24  ;;  %829 = vmatmul.mubr.bf16.gmra.mxu1 %v1490_v25 }
  0x4a   :  { %708 = vmatprep.mubr.bf16.mxu0 %v1491_v26  ;;  %836 = vmatprep.mubr.bf16.mxu1 %v1493_v27  ;;  %v85_v26 = vld [vmem:[#allocation2 + $0x8] sm:$0xff] }
  0x4b   :  { %v117_v27 = vld [vmem:[#allocation2 + $0x108] sm:$0xff] }
  0x51   :  { %709 = vmatmul.mubr.bf16.gmra.mxu0 %v1495_v28  ;;  %837 = vmatmul.mubr.bf16.gmra.mxu1 %v1496_v29 }
  0x52   :  { %716 = vmatprep.mubr.bf16.mxu0 %v1497_v30  ;;  %844 = vmatprep.mubr.bf16.mxu1 %v1499_v31 }
  0x59   :  { %717 = vmatmul.mubr.bf16.gmra.mxu0 %v1501_v32  ;;  %845 = vmatmul.mubr.bf16.gmra.mxu1 %v1502_v33 }
  0x5a   :  { %724 = vmatprep.mubr.bf16.mxu0 %v1503_v34  ;;  %852 = vmatprep.mubr.bf16.mxu1 %v1505_v35  ;;  %v86_v34 = vld [vmem:[#allocation2 + $0x10] sm:$0xff] }
  0x5b   :  { %v118_v35 = vld [vmem:[#allocation2 + $0x110] sm:$0xff] }
  0x61   :  { %725 = vmatmul.mubr.bf16.gmra.mxu0 %v1507_v36  ;;  %853 = vmatmul.mubr.bf16.gmra.mxu1 %v1508_v37  ;;  %v2009_v36 = vld [vmem:[%s2388_s2] ss:$0 sm:$0xff] }
  0x62   :  { %732 = vmatprep.mubr.bf16.mxu0 %v1509_v38  ;;  %860 = vmatprep.mubr.bf16.mxu1 %v1511_v39 }
  0x69   :  { %733 = vmatmul.mubr.bf16.gmra.mxu0 %v1513_v40  ;;  %861 = vmatmul.mubr.bf16.gmra.mxu1 %v1514_v41  ;;  %v87_v41 = vld [vmem:[#allocation2 + $0x18] sm:$0xff] }
  0x6a   :  { %740 = vmatprep.mubr.bf16.mxu0 %v1515_v42  ;;  %868 = vmatprep.mubr.bf16.mxu1 %v1517_v43 }
  0x71   :  { %741 = vmatmul.mubr.bf16.gmra.mxu0 %v1519_v44  ;;  %869 = vmatmul.mubr.bf16.gmra.mxu1 %v1520_v45 }
  0x72   :  { %748 = vmatprep.mubr.bf16.mxu0 %v1521_v46  ;;  %876 = vmatprep.mubr.bf16.mxu1 %v1523_v47  ;;  %v119_v46 = vld [vmem:[#allocation2 + $0x118] sm:$0xff] }
  0x79   :  { %749 = vmatmul.mubr.bf16.gmra.mxu0 %v1525_v48  ;;  %877 = vmatmul.mubr.bf16.gmra.mxu1 %v1526_v49 }
  0x7a   :  { %756 = vmatprep.mubr.bf16.mxu0 %v1527_v50  ;;  %884 = vmatprep.mubr.bf16.mxu1 %v1529_v51 }
  0x81   :  { %757 = vmatmul.mubr.bf16.gmra.mxu0 %v1531_v52  ;;  %885 = vmatmul.mubr.bf16.gmra.mxu1 %v1532_v53 }
  0x82   :  { %764 = vmatprep.mubr.bf16.mxu0 %v1533_v54  ;;  %892 = vmatprep.mubr.bf16.mxu1 %v1535_v55  ;;  %v88_v55 = vld [vmem:[#allocation2 + $0x20] sm:$0xff] }
  0x89   :  { %765 = vmatmul.mubr.bf16.gmra.mxu0 %v1537_v56  ;;  %893 = vmatmul.mubr.bf16.gmra.mxu1 %v1538_v57 }
  0x8a   :  { %772 = vmatprep.mubr.bf16.mxu0 %v1539_v58  ;;  %900 = vmatprep.mubr.bf16.mxu1 %v1541_v59 }
  0x91   :  { %773 = vmatmul.mubr.bf16.gmra.mxu0 %v1543_v60  ;;  %901 = vmatmul.mubr.bf16.gmra.mxu1 %v1544_v61  ;;  %v120_v60 = vld [vmem:[#allocation2 + $0x120] sm:$0xff] }
  0x92   :  { %780 = vmatprep.mubr.bf16.mxu0 %v1545_v62  ;;  %908 = vmatprep.mubr.bf16.mxu1 %v1547_v63 }
  0x99   :  { %781 = vmatmul.mubr.bf16.gmra.mxu0 %v1549_v0  ;;  %909 = vmatmul.mubr.bf16.gmra.mxu1 %v1550_v1 }
  0x9a   :  { %788 = vmatprep.mubr.bf16.mxu0 %v1551_v2  ;;  %916 = vmatprep.mubr.bf16.mxu1 %v1553_v3 }
  0xa1   :  { %789 = vmatmul.mubr.bf16.gmra.mxu0 %v1555_v4  ;;  %917 = vmatmul.mubr.bf16.gmra.mxu1 %v1556_v5  ;;  %v89_v5 = vld [vmem:[#allocation2 + $0x28] sm:$0xff] }
  0xa2   :  { %796 = vmatprep.mubr.bf16.mxu0 %v1557_v6  ;;  %924 = vmatprep.mubr.bf16.mxu1 %v1559_v7 }
  0xa9   :  { %797 = vmatmul.mubr.bf16.gmra.mxu0 %v1561_v8  ;;  %925 = vmatmul.mubr.bf16.gmra.mxu1 %v1562_v9 }
  0xaa   :  { %804 = vmatprep.mubr.bf16.mxu0 %v1563_v10  ;;  %932 = vmatprep.mubr.bf16.mxu1 %v1565_v11  ;;  %v121_v10 = vld [vmem:[#allocation2 + $0x128] sm:$0xff] }
  0xb1   :  { %805 = vmatmul.mubr.bf16.gmra.mxu0 %v1567_v12  ;;  %933 = vmatmul.mubr.bf16.gmra.mxu1 %v1568_v13 }
  0xb2   :  { %812 = vmatprep.mubr.bf16.mxu0 %v1569_v14  ;;  %940 = vmatprep.mubr.bf16.mxu1 %v1571_v15 }
  0xb9   :  { %813 = vmatmul.mubr.bf16.gmra.mxu0 %v1573_v16  ;;  %941 = vmatmul.mubr.bf16.gmra.mxu1 %v1574_v17 }
 0x101   :  { %v694_v20 = vpop.f32.mrf.mxu0  ;;  %v822_v21 = vpop.f32.mrf.mxu1 }
 0x102   :  { %v949_v22 = vadd.f32 %v694_v20, %v84_v18  ;;  %v981_v23 = vadd.f32 %v822_v21, %v116_v19  ;;  %v90_v19 = vld [vmem:[#allocation2 + $0x30] sm:$0xff] }
 0x103   :  { %v696_v24 = vpop.f32.mrf.mxu0  ;;  %v824_v25 = vpop.f32.mrf.mxu1 }
 0x104   :  { %1014 = vst.msk [vmem:[#allocation2] sm:$0xff] %vm19_vm0, %v949_v22  ;;  %1046 = vst.msk [vmem:[#allocation2 + $0x100] sm:$0xff] %vm19_vm0, %v981_v23  ;;  %v122_v24 = vld [vmem:[#allocation2 + $0x130] sm:$0xff] }
 0x105   :  { %v697_v28 = vpop.f32.mrf.mxu0  ;;  %v825_v29 = vpop.f32.mrf.mxu1 }
 0x106   :  { %v950_v30 = vadd.f32 %v697_v28, %v85_v26  ;;  %v982_v31 = vadd.f32 %v825_v29, %v117_v27 }
 0x107   :  { %v699_v32 = vpop.f32.mrf.mxu0  ;;  %v827_v33 = vpop.f32.mrf.mxu1 }
 0x108   :  { %1015 = vst.msk [vmem:[#allocation2 + $0x8] sm:$0xff] %vm19_vm0, %v950_v30  ;;  %1047 = vst.msk [vmem:[#allocation2 + $0x108] sm:$0xff] %vm19_vm0, %v982_v31  ;;  %v91_v33 = vld [vmem:[#allocation2 + $0x38] sm:$0xff] }
 0x109   :  { %v702_v37 = vpop.f32.mrf.mxu0  ;;  %v830_v38 = vpop.f32.mrf.mxu1 }
 0x10a   :  { %v951_v39 = vadd.f32 %v702_v37, %v86_v34  ;;  %v983_v40 = vadd.f32 %v830_v38, %v118_v35 }
 0x10b   :  { %v1081_v42 = vld [vmem:[#allocation2] sm:$0xff]  ;;  %v704_v44 = vpop.f32.mrf.mxu0  ;;  %v832_v45 = vpop.f32.mrf.mxu1 }
 0x10c   :  { %v1113_v43 = vld [vmem:[#allocation2 + $0x100] sm:$0xff]  ;;  %v1152_v47 = vadd.f32 %v2009_v36, %v1081_v42  ;;  %1016 = vst.msk [vmem:[#allocation2 + $0x10] sm:$0xff] %vm19_vm0, %v951_v39  ;;  %1048 = vst.msk [vmem:[#allocation2 + $0x110] sm:$0xff] %vm19_vm0, %v983_v40  ;;  %v123_v39 = vld [vmem:[#allocation2 + $0x138] sm:$0xff] }
 0x10d   :  { %v1184_v48 = vadd.f32 %v2009_v36, %v1113_v43  ;;  %v705_v49 = vpop.f32.mrf.mxu0  ;;  %v833_v50 = vpop.f32.mrf.mxu1 }
 0x10e   :  { %v1216_v51 = vmax.f32 %v1152_v47, 0.0  ;;  %v952_v53 = vadd.f32 %v705_v49, %v87_v41  ;;  %v984_v54 = vadd.f32 %v833_v50, %v119_v46 }
 0x10f   :  { %v1248_v52 = vmax.f32 %v1184_v48, 0.0  ;;  %v1082_v56 = vld [vmem:[#allocation2 + $0x8] sm:$0xff]  ;;  %v707_v58 = vpop.f32.mrf.mxu0  ;;  %v835_v59 = vpop.f32.mrf.mxu1  ;;  %v92_v48 = vld [vmem:[#allocation2 + $0x40] sm:$0xff] }
 0x110   :  { %v1114_v57 = vld [vmem:[#allocation2 + $0x108] sm:$0xff]  ;;  %1280 = vst.msk [vmem:[%s2389_s3] sm:$0xff] %vm19_vm0, %v1216_v51  ;;  %v1153_v61 = vadd.f32 %v2009_v36, %v1082_v56  ;;  %1017 = vst.msk [vmem:[#allocation2 + $0x18] sm:$0xff] %vm19_vm0, %v952_v53  ;;  %v124_v53 = vld [vmem:[#allocation2 + $0x140] sm:$0xff] }
 0x111   :  { %1312 = vst.msk [vmem:[%s2389_s3 + $0x100] sm:$0xff] %vm19_vm0, %v1248_v52  ;;  %v1185_v62 = vadd.f32 %v2009_v36, %v1114_v57  ;;  %1049 = vst.msk [vmem:[#allocation2 + $0x118] sm:$0xff] %vm19_vm0, %v984_v54  ;;  %v710_v63 = vpop.f32.mrf.mxu0  ;;  %v838_v0 = vpop.f32.mrf.mxu1 }
 0x112   :  { %v1217_v1 = vmax.f32 %v1153_v61, 0.0  ;;  %v953_v3 = vadd.f32 %v710_v63, %v88_v55  ;;  %v985_v4 = vadd.f32 %v838_v0, %v120_v60 }
 0x113   :  { %v1249_v2 = vmax.f32 %v1185_v62, 0.0  ;;  %v1083_v6 = vld [vmem:[#allocation2 + $0x10] sm:$0xff]  ;;  %v712_v8 = vpop.f32.mrf.mxu0  ;;  %v840_v9 = vpop.f32.mrf.mxu1  ;;  %v93_v62 = vld [vmem:[#allocation2 + $0x48] sm:$0xff] }
 0x114   :  { %v1115_v7 = vld [vmem:[#allocation2 + $0x110] sm:$0xff]  ;;  %1281 = vst.msk [vmem:[%s2389_s3 + $0x8] sm:$0xff] %vm19_vm0, %v1217_v1  ;;  %v1154_v11 = vadd.f32 %v2009_v36, %v1083_v6  ;;  %1018 = vst.msk [vmem:[#allocation2 + $0x20] sm:$0xff] %vm19_vm0, %v953_v3  ;;  %v125_v3 = vld [vmem:[#allocation2 + $0x148] sm:$0xff] }
 0x115   :  { %1313 = vst.msk [vmem:[%s2389_s3 + $0x108] sm:$0xff] %vm19_vm0, %v1249_v2  ;;  %v1186_v12 = vadd.f32 %v2009_v36, %v1115_v7  ;;  %1050 = vst.msk [vmem:[#allocation2 + $0x120] sm:$0xff] %vm19_vm0, %v985_v4  ;;  %v713_v13 = vpop.f32.mrf.mxu0  ;;  %v841_v14 = vpop.f32.mrf.mxu1 }
 0x116   :  { %v1218_v15 = vmax.f32 %v1154_v11, 0.0  ;;  %v954_v17 = vadd.f32 %v713_v13, %v89_v5  ;;  %v986_v18 = vadd.f32 %v841_v14, %v121_v10 }
 0x117   :  { %v1250_v16 = vmax.f32 %v1186_v12, 0.0  ;;  %v1084_v20 = vld [vmem:[#allocation2 + $0x18] sm:$0xff]  ;;  %v715_v22 = vpop.f32.mrf.mxu0  ;;  %v843_v23 = vpop.f32.mrf.mxu1  ;;  %v94_v12 = vld [vmem:[#allocation2 + $0x50] sm:$0xff] }
 0x118   :  { %v1116_v21 = vld [vmem:[#allocation2 + $0x118] sm:$0xff]  ;;  %1282 = vst.msk [vmem:[%s2389_s3 + $0x10] sm:$0xff] %vm19_vm0, %v1218_v15  ;;  %v1155_v25 = vadd.f32 %v2009_v36, %v1084_v20  ;;  %1019 = vst.msk [vmem:[#allocation2 + $0x28] sm:$0xff] %vm19_vm0, %v954_v17  ;;  %v126_v17 = vld [vmem:[#allocation2 + $0x150] sm:$0xff] }
 0x119   :  { %1314 = vst.msk [vmem:[%s2389_s3 + $0x110] sm:$0xff] %vm19_vm0, %v1250_v16  ;;  %v1187_v26 = vadd.f32 %v2009_v36, %v1116_v21  ;;  %1051 = vst.msk [vmem:[#allocation2 + $0x128] sm:$0xff] %vm19_vm0, %v986_v18  ;;  %v718_v27 = vpop.f32.mrf.mxu0  ;;  %v846_v28 = vpop.f32.mrf.mxu1 }
 0x11a   :  { %v1219_v29 = vmax.f32 %v1155_v25, 0.0  ;;  %v955_v31 = vadd.f32 %v718_v27, %v90_v19  ;;  %v987_v32 = vadd.f32 %v846_v28, %v122_v24 }
 0x11b   :  { %v1251_v30 = vmax.f32 %v1187_v26, 0.0  ;;  %v1085_v34 = vld [vmem:[#allocation2 + $0x20] sm:$0xff]  ;;  %v720_v37 = vpop.f32.mrf.mxu0  ;;  %v848_v38 = vpop.f32.mrf.mxu1  ;;  %v95_v26 = vld [vmem:[#allocation2 + $0x58] sm:$0xff] }
 0x11c   :  { %v1117_v35 = vld [vmem:[#allocation2 + $0x120] sm:$0xff]  ;;  %1283 = vst.msk [vmem:[%s2389_s3 + $0x18] sm:$0xff] %vm19_vm0, %v1219_v29  ;;  %v1156_v40 = vadd.f32 %v2009_v36, %v1085_v34  ;;  %1020 = vst.msk [vmem:[#allocation2 + $0x30] sm:$0xff] %vm19_vm0, %v955_v31  ;;  %v127_v31 = vld [vmem:[#allocation2 + $0x158] sm:$0xff] }
 0x11d   :  { %1315 = vst.msk [vmem:[%s2389_s3 + $0x118] sm:$0xff] %vm19_vm0, %v1251_v30  ;;  %v1188_v41 = vadd.f32 %v2009_v36, %v1117_v35  ;;  %1052 = vst.msk [vmem:[#allocation2 + $0x130] sm:$0xff] %vm19_vm0, %v987_v32  ;;  %v721_v42 = vpop.f32.mrf.mxu0  ;;  %v849_v43 = vpop.f32.mrf.mxu1 }
 0x11e   :  { %v1220_v44 = vmax.f32 %v1156_v40, 0.0  ;;  %v956_v46 = vadd.f32 %v721_v42, %v91_v33  ;;  %v988_v47 = vadd.f32 %v849_v43, %v123_v39 }
 0x11f   :  { %v1252_v45 = vmax.f32 %v1188_v41, 0.0  ;;  %v1086_v49 = vld [vmem:[#allocation2 + $0x28] sm:$0xff]  ;;  %v723_v51 = vpop.f32.mrf.mxu0  ;;  %v851_v52 = vpop.f32.mrf.mxu1  ;;  %v96_v41 = vld [vmem:[#allocation2 + $0x60] sm:$0xff] }
 0x120   :  { %v1118_v50 = vld [vmem:[#allocation2 + $0x128] sm:$0xff]  ;;  %1284 = vst.msk [vmem:[%s2389_s3 + $0x20] sm:$0xff] %vm19_vm0, %v1220_v44  ;;  %v1157_v54 = vadd.f32 %v2009_v36, %v1086_v49  ;;  %1021 = vst.msk [vmem:[#allocation2 + $0x38] sm:$0xff] %vm19_vm0, %v956_v46  ;;  %v128_v46 = vld [vmem:[#allocation2 + $0x160] sm:$0xff] }
 0x121   :  { %1316 = vst.msk [vmem:[%s2389_s3 + $0x120] sm:$0xff] %vm19_vm0, %v1252_v45  ;;  %v1189_v55 = vadd.f32 %v2009_v36, %v1118_v50  ;;  %1053 = vst.msk [vmem:[#allocation2 + $0x138] sm:$0xff] %vm19_vm0, %v988_v47  ;;  %v726_v56 = vpop.f32.mrf.mxu0  ;;  %v854_v57 = vpop.f32.mrf.mxu1 }
 0x122   :  { %v1221_v58 = vmax.f32 %v1157_v54, 0.0  ;;  %v957_v60 = vadd.f32 %v726_v56, %v92_v48  ;;  %v989_v61 = vadd.f32 %v854_v57, %v124_v53 }
 0x123   :  { %v1253_v59 = vmax.f32 %v1189_v55, 0.0  ;;  %v1087_v63 = vld [vmem:[#allocation2 + $0x30] sm:$0xff]  ;;  %v728_v1 = vpop.f32.mrf.mxu0  ;;  %v856_v2 = vpop.f32.mrf.mxu1  ;;  %v97_v55 = vld [vmem:[#allocation2 + $0x68] sm:$0xff] }
 0x124   :  { %v1119_v0 = vld [vmem:[#allocation2 + $0x130] sm:$0xff]  ;;  %1285 = vst.msk [vmem:[%s2389_s3 + $0x28] sm:$0xff] %vm19_vm0, %v1221_v58  ;;  %v1158_v4 = vadd.f32 %v2009_v36, %v1087_v63  ;;  %1022 = vst.msk [vmem:[#allocation2 + $0x40] sm:$0xff] %vm19_vm0, %v957_v60  ;;  %v129_v60 = vld [vmem:[#allocation2 + $0x168] sm:$0xff] }
 0x125   :  { %1317 = vst.msk [vmem:[%s2389_s3 + $0x128] sm:$0xff] %vm19_vm0, %v1253_v59  ;;  %v1190_v5 = vadd.f32 %v2009_v36, %v1119_v0  ;;  %1054 = vst.msk [vmem:[#allocation2 + $0x140] sm:$0xff] %vm19_vm0, %v989_v61  ;;  %v729_v6 = vpop.f32.mrf.mxu0  ;;  %v857_v7 = vpop.f32.mrf.mxu1 }
 0x126   :  { %v1222_v8 = vmax.f32 %v1158_v4, 0.0  ;;  %v958_v10 = vadd.f32 %v729_v6, %v93_v62  ;;  %v990_v11 = vadd.f32 %v857_v7, %v125_v3 }
 0x127   :  { %v1254_v9 = vmax.f32 %v1190_v5, 0.0  ;;  %v1088_v13 = vld [vmem:[#allocation2 + $0x38] sm:$0xff]  ;;  %v731_v15 = vpop.f32.mrf.mxu0  ;;  %v859_v16 = vpop.f32.mrf.mxu1  ;;  %v98_v5 = vld [vmem:[#allocation2 + $0x70] sm:$0xff] }
 0x128   :  { %v1120_v14 = vld [vmem:[#allocation2 + $0x138] sm:$0xff]  ;;  %1286 = vst.msk [vmem:[%s2389_s3 + $0x30] sm:$0xff] %vm19_vm0, %v1222_v8  ;;  %v1159_v18 = vadd.f32 %v2009_v36, %v1088_v13  ;;  %1023 = vst.msk [vmem:[#allocation2 + $0x48] sm:$0xff] %vm19_vm0, %v958_v10  ;;  %v130_v10 = vld [vmem:[#allocation2 + $0x170] sm:$0xff] }
 0x129   :  { %1318 = vst.msk [vmem:[%s2389_s3 + $0x130] sm:$0xff] %vm19_vm0, %v1254_v9  ;;  %v1191_v19 = vadd.f32 %v2009_v36, %v1120_v14  ;;  %1055 = vst.msk [vmem:[#allocation2 + $0x148] sm:$0xff] %vm19_vm0, %v990_v11  ;;  %v734_v20 = vpop.f32.mrf.mxu0  ;;  %v862_v21 = vpop.f32.mrf.mxu1 }
 0x12a   :  { %v1223_v22 = vmax.f32 %v1159_v18, 0.0  ;;  %v959_v24 = vadd.f32 %v734_v20, %v94_v12  ;;  %v991_v25 = vadd.f32 %v862_v21, %v126_v17 }
 0x12b   :  { %v1255_v23 = vmax.f32 %v1191_v19, 0.0  ;;  %v1089_v27 = vld [vmem:[#allocation2 + $0x40] sm:$0xff]  ;;  %v736_v29 = vpop.f32.mrf.mxu0  ;;  %v864_v30 = vpop.f32.mrf.mxu1  ;;  %v99_v19 = vld [vmem:[#allocation2 + $0x78] sm:$0xff] }
 0x12c   :  { %v1121_v28 = vld [vmem:[#allocation2 + $0x140] sm:$0xff]  ;;  %1287 = vst.msk [vmem:[%s2389_s3 + $0x38] sm:$0xff] %vm19_vm0, %v1223_v22  ;;  %v1160_v32 = vadd.f32 %v2009_v36, %v1089_v27  ;;  %1024 = vst.msk [vmem:[#allocation2 + $0x50] sm:$0xff] %vm19_vm0, %v959_v24  ;;  %v131_v24 = vld [vmem:[#allocation2 + $0x178] sm:$0xff] }
 0x12d   :  { %1319 = vst.msk [vmem:[%s2389_s3 + $0x138] sm:$0xff] %vm19_vm0, %v1255_v23  ;;  %v1192_v33 = vadd.f32 %v2009_v36, %v1121_v28  ;;  %1056 = vst.msk [vmem:[#allocation2 + $0x150] sm:$0xff] %vm19_vm0, %v991_v25  ;;  %v737_v34 = vpop.f32.mrf.mxu0  ;;  %v865_v35 = vpop.f32.mrf.mxu1 }
 0x12e   :  { %v1224_v37 = vmax.f32 %v1160_v32, 0.0  ;;  %v960_v39 = vadd.f32 %v737_v34, %v95_v26  ;;  %v992_v40 = vadd.f32 %v865_v35, %v127_v31 }
 0x12f   :  { %v1256_v38 = vmax.f32 %v1192_v33, 0.0  ;;  %v1090_v42 = vld [vmem:[#allocation2 + $0x48] sm:$0xff]  ;;  %v739_v44 = vpop.f32.mrf.mxu0  ;;  %v867_v45 = vpop.f32.mrf.mxu1  ;;  %v100_v33 = vld [vmem:[#allocation2 + $0x80] sm:$0xff] }
 0x130   :  { %v1122_v43 = vld [vmem:[#allocation2 + $0x148] sm:$0xff]  ;;  %1288 = vst.msk [vmem:[%s2389_s3 + $0x40] sm:$0xff] %vm19_vm0, %v1224_v37  ;;  %v1161_v47 = vadd.f32 %v2009_v36, %v1090_v42  ;;  %1025 = vst.msk [vmem:[#allocation2 + $0x58] sm:$0xff] %vm19_vm0, %v960_v39  ;;  %v132_v39 = vld [vmem:[#allocation2 + $0x180] sm:$0xff] }
 0x131   :  { %1320 = vst.msk [vmem:[%s2389_s3 + $0x140] sm:$0xff] %vm19_vm0, %v1256_v38  ;;  %v1193_v48 = vadd.f32 %v2009_v36, %v1122_v43  ;;  %1057 = vst.msk [vmem:[#allocation2 + $0x158] sm:$0xff] %vm19_vm0, %v992_v40  ;;  %v742_v49 = vpop.f32.mrf.mxu0  ;;  %v870_v50 = vpop.f32.mrf.mxu1 }
 0x132   :  { %v1225_v51 = vmax.f32 %v1161_v47, 0.0  ;;  %v961_v53 = vadd.f32 %v742_v49, %v96_v41  ;;  %v993_v54 = vadd.f32 %v870_v50, %v128_v46 }
 0x133   :  { %v1257_v52 = vmax.f32 %v1193_v48, 0.0  ;;  %v1091_v56 = vld [vmem:[#allocation2 + $0x50] sm:$0xff]  ;;  %v744_v58 = vpop.f32.mrf.mxu0  ;;  %v872_v59 = vpop.f32.mrf.mxu1  ;;  %v101_v48 = vld [vmem:[#allocation2 + $0x88] sm:$0xff] }
 0x134   :  { %v1123_v57 = vld [vmem:[#allocation2 + $0x150] sm:$0xff]  ;;  %1289 = vst.msk [vmem:[%s2389_s3 + $0x48] sm:$0xff] %vm19_vm0, %v1225_v51  ;;  %v1162_v61 = vadd.f32 %v2009_v36, %v1091_v56  ;;  %1026 = vst.msk [vmem:[#allocation2 + $0x60] sm:$0xff] %vm19_vm0, %v961_v53  ;;  %v133_v53 = vld [vmem:[#allocation2 + $0x188] sm:$0xff] }
 0x135   :  { %1321 = vst.msk [vmem:[%s2389_s3 + $0x148] sm:$0xff] %vm19_vm0, %v1257_v52  ;;  %v1194_v62 = vadd.f32 %v2009_v36, %v1123_v57  ;;  %1058 = vst.msk [vmem:[#allocation2 + $0x160] sm:$0xff] %vm19_vm0, %v993_v54  ;;  %v745_v63 = vpop.f32.mrf.mxu0  ;;  %v873_v0 = vpop.f32.mrf.mxu1 }
 0x136   :  { %v1226_v1 = vmax.f32 %v1162_v61, 0.0  ;;  %v962_v3 = vadd.f32 %v745_v63, %v97_v55  ;;  %v994_v4 = vadd.f32 %v873_v0, %v129_v60 }
 0x137   :  { %v1258_v2 = vmax.f32 %v1194_v62, 0.0  ;;  %v1092_v6 = vld [vmem:[#allocation2 + $0x58] sm:$0xff]  ;;  %v747_v8 = vpop.f32.mrf.mxu0  ;;  %v875_v9 = vpop.f32.mrf.mxu1  ;;  %v102_v62 = vld [vmem:[#allocation2 + $0x90] sm:$0xff] }
 0x138   :  { %v1124_v7 = vld [vmem:[#allocation2 + $0x158] sm:$0xff]  ;;  %1290 = vst.msk [vmem:[%s2389_s3 + $0x50] sm:$0xff] %vm19_vm0, %v1226_v1  ;;  %v1163_v11 = vadd.f32 %v2009_v36, %v1092_v6  ;;  %1027 = vst.msk [vmem:[#allocation2 + $0x68] sm:$0xff] %vm19_vm0, %v962_v3  ;;  %v134_v3 = vld [vmem:[#allocation2 + $0x190] sm:$0xff] }
 0x139   :  { %1322 = vst.msk [vmem:[%s2389_s3 + $0x150] sm:$0xff] %vm19_vm0, %v1258_v2  ;;  %v1195_v12 = vadd.f32 %v2009_v36, %v1124_v7  ;;  %1059 = vst.msk [vmem:[#allocation2 + $0x168] sm:$0xff] %vm19_vm0, %v994_v4  ;;  %v750_v13 = vpop.f32.mrf.mxu0  ;;  %v878_v14 = vpop.f32.mrf.mxu1 }
 0x13a   :  { %v1227_v15 = vmax.f32 %v1163_v11, 0.0  ;;  %v963_v17 = vadd.f32 %v750_v13, %v98_v5  ;;  %v995_v18 = vadd.f32 %v878_v14, %v130_v10 }
 0x13b   :  { %v1259_v16 = vmax.f32 %v1195_v12, 0.0  ;;  %v1093_v20 = vld [vmem:[#allocation2 + $0x60] sm:$0xff]  ;;  %v752_v22 = vpop.f32.mrf.mxu0  ;;  %v880_v23 = vpop.f32.mrf.mxu1  ;;  %v103_v12 = vld [vmem:[#allocation2 + $0x98] sm:$0xff] }
 0x13c   :  { %v1125_v21 = vld [vmem:[#allocation2 + $0x160] sm:$0xff]  ;;  %1291 = vst.msk [vmem:[%s2389_s3 + $0x58] sm:$0xff] %vm19_vm0, %v1227_v15  ;;  %v1164_v25 = vadd.f32 %v2009_v36, %v1093_v20  ;;  %1028 = vst.msk [vmem:[#allocation2 + $0x70] sm:$0xff] %vm19_vm0, %v963_v17  ;;  %v135_v17 = vld [vmem:[#allocation2 + $0x198] sm:$0xff] }
 0x13d   :  { %1323 = vst.msk [vmem:[%s2389_s3 + $0x158] sm:$0xff] %vm19_vm0, %v1259_v16  ;;  %v1196_v26 = vadd.f32 %v2009_v36, %v1125_v21  ;;  %1060 = vst.msk [vmem:[#allocation2 + $0x170] sm:$0xff] %vm19_vm0, %v995_v18  ;;  %v753_v27 = vpop.f32.mrf.mxu0  ;;  %v881_v28 = vpop.f32.mrf.mxu1 }
 0x13e   :  { %v1228_v29 = vmax.f32 %v1164_v25, 0.0  ;;  %v964_v31 = vadd.f32 %v753_v27, %v99_v19  ;;  %v996_v32 = vadd.f32 %v881_v28, %v131_v24 }
 0x13f   :  { %v1260_v30 = vmax.f32 %v1196_v26, 0.0  ;;  %v1094_v34 = vld [vmem:[#allocation2 + $0x68] sm:$0xff]  ;;  %v755_v37 = vpop.f32.mrf.mxu0  ;;  %v883_v38 = vpop.f32.mrf.mxu1  ;;  %v104_v26 = vld [vmem:[#allocation2 + $0xa0] sm:$0xff] }
 0x140   :  { %v1126_v35 = vld [vmem:[#allocation2 + $0x168] sm:$0xff]  ;;  %1292 = vst.msk [vmem:[%s2389_s3 + $0x60] sm:$0xff] %vm19_vm0, %v1228_v29  ;;  %v1165_v40 = vadd.f32 %v2009_v36, %v1094_v34  ;;  %1029 = vst.msk [vmem:[#allocation2 + $0x78] sm:$0xff] %vm19_vm0, %v964_v31  ;;  %v136_v31 = vld [vmem:[#allocation2 + $0x1a0] sm:$0xff] }
 0x141   :  { %1324 = vst.msk [vmem:[%s2389_s3 + $0x160] sm:$0xff] %vm19_vm0, %v1260_v30  ;;  %v1197_v41 = vadd.f32 %v2009_v36, %v1126_v35  ;;  %1061 = vst.msk [vmem:[#allocation2 + $0x178] sm:$0xff] %vm19_vm0, %v996_v32  ;;  %v758_v42 = vpop.f32.mrf.mxu0  ;;  %v886_v43 = vpop.f32.mrf.mxu1 }
 0x142   :  { %v1229_v44 = vmax.f32 %v1165_v40, 0.0  ;;  %v965_v46 = vadd.f32 %v758_v42, %v100_v33  ;;  %v997_v47 = vadd.f32 %v886_v43, %v132_v39 }
 0x143   :  { %v1261_v45 = vmax.f32 %v1197_v41, 0.0  ;;  %v1095_v49 = vld [vmem:[#allocation2 + $0x70] sm:$0xff]  ;;  %v760_v51 = vpop.f32.mrf.mxu0  ;;  %v888_v52 = vpop.f32.mrf.mxu1  ;;  %v105_v41 = vld [vmem:[#allocation2 + $0xa8] sm:$0xff] }
 0x144   :  { %v1127_v50 = vld [vmem:[#allocation2 + $0x170] sm:$0xff]  ;;  %1293 = vst.msk [vmem:[%s2389_s3 + $0x68] sm:$0xff] %vm19_vm0, %v1229_v44  ;;  %v1166_v54 = vadd.f32 %v2009_v36, %v1095_v49  ;;  %1030 = vst.msk [vmem:[#allocation2 + $0x80] sm:$0xff] %vm19_vm0, %v965_v46  ;;  %v137_v46 = vld [vmem:[#allocation2 + $0x1a8] sm:$0xff] }
 0x145   :  { %1325 = vst.msk [vmem:[%s2389_s3 + $0x168] sm:$0xff] %vm19_vm0, %v1261_v45  ;;  %v1198_v55 = vadd.f32 %v2009_v36, %v1127_v50  ;;  %1062 = vst.msk [vmem:[#allocation2 + $0x180] sm:$0xff] %vm19_vm0, %v997_v47  ;;  %v761_v56 = vpop.f32.mrf.mxu0  ;;  %v889_v57 = vpop.f32.mrf.mxu1 }
 0x146   :  { %v1230_v58 = vmax.f32 %v1166_v54, 0.0  ;;  %v966_v60 = vadd.f32 %v761_v56, %v101_v48  ;;  %v998_v61 = vadd.f32 %v889_v57, %v133_v53 }
 0x147   :  { %v1262_v59 = vmax.f32 %v1198_v55, 0.0  ;;  %v1096_v63 = vld [vmem:[#allocation2 + $0x78] sm:$0xff]  ;;  %v763_v1 = vpop.f32.mrf.mxu0  ;;  %v891_v2 = vpop.f32.mrf.mxu1  ;;  %v106_v55 = vld [vmem:[#allocation2 + $0xb0] sm:$0xff] }
 0x148   :  { %v1128_v0 = vld [vmem:[#allocation2 + $0x178] sm:$0xff]  ;;  %1294 = vst.msk [vmem:[%s2389_s3 + $0x70] sm:$0xff] %vm19_vm0, %v1230_v58  ;;  %v1167_v4 = vadd.f32 %v2009_v36, %v1096_v63  ;;  %1031 = vst.msk [vmem:[#allocation2 + $0x88] sm:$0xff] %vm19_vm0, %v966_v60  ;;  %v138_v60 = vld [vmem:[#allocation2 + $0x1b0] sm:$0xff] }
 0x149   :  { %1326 = vst.msk [vmem:[%s2389_s3 + $0x170] sm:$0xff] %vm19_vm0, %v1262_v59  ;;  %v1199_v5 = vadd.f32 %v2009_v36, %v1128_v0  ;;  %1063 = vst.msk [vmem:[#allocation2 + $0x188] sm:$0xff] %vm19_vm0, %v998_v61  ;;  %v766_v6 = vpop.f32.mrf.mxu0  ;;  %v894_v7 = vpop.f32.mrf.mxu1 }
 0x14a   :  { %v1231_v8 = vmax.f32 %v1167_v4, 0.0  ;;  %v967_v10 = vadd.f32 %v766_v6, %v102_v62  ;;  %v999_v11 = vadd.f32 %v894_v7, %v134_v3 }
 0x14b   :  { %v1263_v9 = vmax.f32 %v1199_v5, 0.0  ;;  %v1097_v13 = vld [vmem:[#allocation2 + $0x80] sm:$0xff]  ;;  %v768_v15 = vpop.f32.mrf.mxu0  ;;  %v896_v16 = vpop.f32.mrf.mxu1  ;;  %v107_v5 = vld [vmem:[#allocation2 + $0xb8] sm:$0xff] }
 0x14c   :  { %v1129_v14 = vld [vmem:[#allocation2 + $0x180] sm:$0xff]  ;;  %1295 = vst.msk [vmem:[%s2389_s3 + $0x78] sm:$0xff] %vm19_vm0, %v1231_v8  ;;  %v1168_v18 = vadd.f32 %v2009_v36, %v1097_v13  ;;  %1032 = vst.msk [vmem:[#allocation2 + $0x90] sm:$0xff] %vm19_vm0, %v967_v10  ;;  %v139_v10 = vld [vmem:[#allocation2 + $0x1b8] sm:$0xff] }
 0x14d   :  { %1327 = vst.msk [vmem:[%s2389_s3 + $0x178] sm:$0xff] %vm19_vm0, %v1263_v9  ;;  %v1200_v19 = vadd.f32 %v2009_v36, %v1129_v14  ;;  %1064 = vst.msk [vmem:[#allocation2 + $0x190] sm:$0xff] %vm19_vm0, %v999_v11  ;;  %v769_v20 = vpop.f32.mrf.mxu0  ;;  %v897_v21 = vpop.f32.mrf.mxu1 }
 0x14e   :  { %v1232_v22 = vmax.f32 %v1168_v18, 0.0  ;;  %v968_v24 = vadd.f32 %v769_v20, %v103_v12  ;;  %v1000_v25 = vadd.f32 %v897_v21, %v135_v17 }
 0x14f   :  { %v1264_v23 = vmax.f32 %v1200_v19, 0.0  ;;  %v1098_v27 = vld [vmem:[#allocation2 + $0x88] sm:$0xff]  ;;  %v771_v29 = vpop.f32.mrf.mxu0  ;;  %v899_v30 = vpop.f32.mrf.mxu1  ;;  %v108_v19 = vld [vmem:[#allocation2 + $0xc0] sm:$0xff] }
 0x150   :  { %v1130_v28 = vld [vmem:[#allocation2 + $0x188] sm:$0xff]  ;;  %1296 = vst.msk [vmem:[%s2389_s3 + $0x80] sm:$0xff] %vm19_vm0, %v1232_v22  ;;  %v1169_v32 = vadd.f32 %v2009_v36, %v1098_v27  ;;  %1033 = vst.msk [vmem:[#allocation2 + $0x98] sm:$0xff] %vm19_vm0, %v968_v24  ;;  %v140_v24 = vld [vmem:[#allocation2 + $0x1c0] sm:$0xff] }
 0x151   :  { %1328 = vst.msk [vmem:[%s2389_s3 + $0x180] sm:$0xff] %vm19_vm0, %v1264_v23  ;;  %v1201_v33 = vadd.f32 %v2009_v36, %v1130_v28  ;;  %1065 = vst.msk [vmem:[#allocation2 + $0x198] sm:$0xff] %vm19_vm0, %v1000_v25  ;;  %v774_v34 = vpop.f32.mrf.mxu0  ;;  %v902_v35 = vpop.f32.mrf.mxu1 }
 0x152   :  { %v1233_v37 = vmax.f32 %v1169_v32, 0.0  ;;  %v969_v39 = vadd.f32 %v774_v34, %v104_v26  ;;  %v1001_v40 = vadd.f32 %v902_v35, %v136_v31 }
 0x153   :  { %v1265_v38 = vmax.f32 %v1201_v33, 0.0  ;;  %v1099_v42 = vld [vmem:[#allocation2 + $0x90] sm:$0xff]  ;;  %v776_v44 = vpop.f32.mrf.mxu0  ;;  %v904_v45 = vpop.f32.mrf.mxu1  ;;  %v109_v33 = vld [vmem:[#allocation2 + $0xc8] sm:$0xff] }
 0x154   :  { %v1131_v43 = vld [vmem:[#allocation2 + $0x190] sm:$0xff]  ;;  %1297 = vst.msk [vmem:[%s2389_s3 + $0x88] sm:$0xff] %vm19_vm0, %v1233_v37  ;;  %v1170_v47 = vadd.f32 %v2009_v36, %v1099_v42  ;;  %1034 = vst.msk [vmem:[#allocation2 + $0xa0] sm:$0xff] %vm19_vm0, %v969_v39  ;;  %v141_v39 = vld [vmem:[#allocation2 + $0x1c8] sm:$0xff] }
 0x155   :  { %1329 = vst.msk [vmem:[%s2389_s3 + $0x188] sm:$0xff] %vm19_vm0, %v1265_v38  ;;  %v1202_v48 = vadd.f32 %v2009_v36, %v1131_v43  ;;  %1066 = vst.msk [vmem:[#allocation2 + $0x1a0] sm:$0xff] %vm19_vm0, %v1001_v40  ;;  %v777_v49 = vpop.f32.mrf.mxu0  ;;  %v905_v50 = vpop.f32.mrf.mxu1 }
 0x156   :  { %v1234_v51 = vmax.f32 %v1170_v47, 0.0  ;;  %v970_v53 = vadd.f32 %v777_v49, %v105_v41  ;;  %v1002_v54 = vadd.f32 %v905_v50, %v137_v46 }
 0x157   :  { %v1266_v52 = vmax.f32 %v1202_v48, 0.0  ;;  %v1100_v56 = vld [vmem:[#allocation2 + $0x98] sm:$0xff]  ;;  %v779_v58 = vpop.f32.mrf.mxu0  ;;  %v907_v59 = vpop.f32.mrf.mxu1  ;;  %v110_v48 = vld [vmem:[#allocation2 + $0xd0] sm:$0xff] }
 0x158   :  { %v1132_v57 = vld [vmem:[#allocation2 + $0x198] sm:$0xff]  ;;  %1298 = vst.msk [vmem:[%s2389_s3 + $0x90] sm:$0xff] %vm19_vm0, %v1234_v51  ;;  %v1171_v61 = vadd.f32 %v2009_v36, %v1100_v56  ;;  %1035 = vst.msk [vmem:[#allocation2 + $0xa8] sm:$0xff] %vm19_vm0, %v970_v53  ;;  %v142_v53 = vld [vmem:[#allocation2 + $0x1d0] sm:$0xff] }
 0x159   :  { %1330 = vst.msk [vmem:[%s2389_s3 + $0x190] sm:$0xff] %vm19_vm0, %v1266_v52  ;;  %v1203_v62 = vadd.f32 %v2009_v36, %v1132_v57  ;;  %1067 = vst.msk [vmem:[#allocation2 + $0x1a8] sm:$0xff] %vm19_vm0, %v1002_v54  ;;  %v782_v63 = vpop.f32.mrf.mxu0  ;;  %v910_v0 = vpop.f32.mrf.mxu1 }
 0x15a   :  { %v1235_v1 = vmax.f32 %v1171_v61, 0.0  ;;  %v971_v3 = vadd.f32 %v782_v63, %v106_v55  ;;  %v1003_v4 = vadd.f32 %v910_v0, %v138_v60 }
 0x15b   :  { %v1267_v2 = vmax.f32 %v1203_v62, 0.0  ;;  %v1101_v6 = vld [vmem:[#allocation2 + $0xa0] sm:$0xff]  ;;  %v784_v8 = vpop.f32.mrf.mxu0  ;;  %v912_v9 = vpop.f32.mrf.mxu1  ;;  %v111_v62 = vld [vmem:[#allocation2 + $0xd8] sm:$0xff] }
 0x15c   :  { %v1133_v7 = vld [vmem:[#allocation2 + $0x1a0] sm:$0xff]  ;;  %1299 = vst.msk [vmem:[%s2389_s3 + $0x98] sm:$0xff] %vm19_vm0, %v1235_v1  ;;  %v1172_v11 = vadd.f32 %v2009_v36, %v1101_v6  ;;  %1036 = vst.msk [vmem:[#allocation2 + $0xb0] sm:$0xff] %vm19_vm0, %v971_v3  ;;  %v143_v3 = vld [vmem:[#allocation2 + $0x1d8] sm:$0xff] }
 0x15d   :  { %1331 = vst.msk [vmem:[%s2389_s3 + $0x198] sm:$0xff] %vm19_vm0, %v1267_v2  ;;  %v1204_v12 = vadd.f32 %v2009_v36, %v1133_v7  ;;  %1068 = vst.msk [vmem:[#allocation2 + $0x1b0] sm:$0xff] %vm19_vm0, %v1003_v4  ;;  %v785_v13 = vpop.f32.mrf.mxu0  ;;  %v913_v14 = vpop.f32.mrf.mxu1 }
 0x15e   :  { %v1236_v15 = vmax.f32 %v1172_v11, 0.0  ;;  %v972_v17 = vadd.f32 %v785_v13, %v107_v5  ;;  %v1004_v18 = vadd.f32 %v913_v14, %v139_v10 }
 0x15f   :  { %v1268_v16 = vmax.f32 %v1204_v12, 0.0  ;;  %v1102_v20 = vld [vmem:[#allocation2 + $0xa8] sm:$0xff]  ;;  %v787_v22 = vpop.f32.mrf.mxu0  ;;  %v915_v23 = vpop.f32.mrf.mxu1  ;;  %v112_v12 = vld [vmem:[#allocation2 + $0xe0] sm:$0xff] }
 0x160   :  { %v1134_v21 = vld [vmem:[#allocation2 + $0x1a8] sm:$0xff]  ;;  %1300 = vst.msk [vmem:[%s2389_s3 + $0xa0] sm:$0xff] %vm19_vm0, %v1236_v15  ;;  %v1173_v25 = vadd.f32 %v2009_v36, %v1102_v20  ;;  %1037 = vst.msk [vmem:[#allocation2 + $0xb8] sm:$0xff] %vm19_vm0, %v972_v17  ;;  %v144_v17 = vld [vmem:[#allocation2 + $0x1e0] sm:$0xff] }
 0x161   :  { %1332 = vst.msk [vmem:[%s2389_s3 + $0x1a0] sm:$0xff] %vm19_vm0, %v1268_v16  ;;  %v1205_v26 = vadd.f32 %v2009_v36, %v1134_v21  ;;  %1069 = vst.msk [vmem:[#allocation2 + $0x1b8] sm:$0xff] %vm19_vm0, %v1004_v18  ;;  %v790_v27 = vpop.f32.mrf.mxu0  ;;  %v918_v28 = vpop.f32.mrf.mxu1 }
 0x162   :  { %v1237_v29 = vmax.f32 %v1173_v25, 0.0  ;;  %v973_v31 = vadd.f32 %v790_v27, %v108_v19  ;;  %v1005_v32 = vadd.f32 %v918_v28, %v140_v24 }
 0x163   :  { %v1269_v30 = vmax.f32 %v1205_v26, 0.0  ;;  %v1103_v34 = vld [vmem:[#allocation2 + $0xb0] sm:$0xff]  ;;  %v792_v37 = vpop.f32.mrf.mxu0  ;;  %v920_v38 = vpop.f32.mrf.mxu1  ;;  %v113_v26 = vld [vmem:[#allocation2 + $0xe8] sm:$0xff] }
 0x164   :  { %v1135_v35 = vld [vmem:[#allocation2 + $0x1b0] sm:$0xff]  ;;  %1301 = vst.msk [vmem:[%s2389_s3 + $0xa8] sm:$0xff] %vm19_vm0, %v1237_v29  ;;  %v1174_v40 = vadd.f32 %v2009_v36, %v1103_v34  ;;  %1038 = vst.msk [vmem:[#allocation2 + $0xc0] sm:$0xff] %vm19_vm0, %v973_v31  ;;  %v145_v31 = vld [vmem:[#allocation2 + $0x1e8] sm:$0xff] }
 0x165   :  { %1333 = vst.msk [vmem:[%s2389_s3 + $0x1a8] sm:$0xff] %vm19_vm0, %v1269_v30  ;;  %v1206_v41 = vadd.f32 %v2009_v36, %v1135_v35  ;;  %1070 = vst.msk [vmem:[#allocation2 + $0x1c0] sm:$0xff] %vm19_vm0, %v1005_v32  ;;  %v793_v42 = vpop.f32.mrf.mxu0  ;;  %v921_v43 = vpop.f32.mrf.mxu1 }
 0x166   :  { %v1238_v44 = vmax.f32 %v1174_v40, 0.0  ;;  %v974_v46 = vadd.f32 %v793_v42, %v109_v33  ;;  %v1006_v47 = vadd.f32 %v921_v43, %v141_v39 }
 0x167   :  { %v1270_v45 = vmax.f32 %v1206_v41, 0.0  ;;  %v1104_v49 = vld [vmem:[#allocation2 + $0xb8] sm:$0xff]  ;;  %v795_v51 = vpop.f32.mrf.mxu0  ;;  %v923_v52 = vpop.f32.mrf.mxu1  ;;  %v114_v41 = vld [vmem:[#allocation2 + $0xf0] sm:$0xff] }
 0x168   :  { %v1136_v50 = vld [vmem:[#allocation2 + $0x1b8] sm:$0xff]  ;;  %1302 = vst.msk [vmem:[%s2389_s3 + $0xb0] sm:$0xff] %vm19_vm0, %v1238_v44  ;;  %v1175_v54 = vadd.f32 %v2009_v36, %v1104_v49  ;;  %1039 = vst.msk [vmem:[#allocation2 + $0xc8] sm:$0xff] %vm19_vm0, %v974_v46  ;;  %v146_v46 = vld [vmem:[#allocation2 + $0x1f0] sm:$0xff] }
 0x169   :  { %1334 = vst.msk [vmem:[%s2389_s3 + $0x1b0] sm:$0xff] %vm19_vm0, %v1270_v45  ;;  %v1207_v55 = vadd.f32 %v2009_v36, %v1136_v50  ;;  %1071 = vst.msk [vmem:[#allocation2 + $0x1c8] sm:$0xff] %vm19_vm0, %v1006_v47  ;;  %v798_v56 = vpop.f32.mrf.mxu0  ;;  %v926_v57 = vpop.f32.mrf.mxu1 }
 0x16a   :  { %v1239_v58 = vmax.f32 %v1175_v54, 0.0  ;;  %v975_v60 = vadd.f32 %v798_v56, %v110_v48  ;;  %v1007_v61 = vadd.f32 %v926_v57, %v142_v53 }
 0x16b   :  { %v1271_v59 = vmax.f32 %v1207_v55, 0.0  ;;  %v1105_v63 = vld [vmem:[#allocation2 + $0xc0] sm:$0xff]  ;;  %v800_v1 = vpop.f32.mrf.mxu0  ;;  %v928_v2 = vpop.f32.mrf.mxu1  ;;  %v115_v55 = vld [vmem:[#allocation2 + $0xf8] sm:$0xff] }
 0x16c   :  { %v1137_v0 = vld [vmem:[#allocation2 + $0x1c0] sm:$0xff]  ;;  %1303 = vst.msk [vmem:[%s2389_s3 + $0xb8] sm:$0xff] %vm19_vm0, %v1239_v58  ;;  %v1176_v4 = vadd.f32 %v2009_v36, %v1105_v63  ;;  %1040 = vst.msk [vmem:[#allocation2 + $0xd0] sm:$0xff] %vm19_vm0, %v975_v60  ;;  %v147_v60 = vld [vmem:[#allocation2 + $0x1f8] sm:$0xff] }
 0x16d   :  { %1335 = vst.msk [vmem:[%s2389_s3 + $0x1b8] sm:$0xff] %vm19_vm0, %v1271_v59  ;;  %v1208_v5 = vadd.f32 %v2009_v36, %v1137_v0  ;;  %1072 = vst.msk [vmem:[#allocation2 + $0x1d0] sm:$0xff] %vm19_vm0, %v1007_v61  ;;  %v801_v6 = vpop.f32.mrf.mxu0  ;;  %v929_v7 = vpop.f32.mrf.mxu1 }
 0x16e   :  { %v1240_v8 = vmax.f32 %v1176_v4, 0.0  ;;  %v976_v10 = vadd.f32 %v801_v6, %v111_v62  ;;  %v1008_v11 = vadd.f32 %v929_v7, %v143_v3 }
 0x16f   :  { %v1272_v9 = vmax.f32 %v1208_v5, 0.0  ;;  %v1106_v13 = vld [vmem:[#allocation2 + $0xc8] sm:$0xff]  ;;  %v803_v15 = vpop.f32.mrf.mxu0  ;;  %v931_v16 = vpop.f32.mrf.mxu1 }
 0x170   :  { %v1138_v14 = vld [vmem:[#allocation2 + $0x1c8] sm:$0xff]  ;;  %1304 = vst.msk [vmem:[%s2389_s3 + $0xc0] sm:$0xff] %vm19_vm0, %v1240_v8  ;;  %v1177_v18 = vadd.f32 %v2009_v36, %v1106_v13  ;;  %1041 = vst.msk [vmem:[#allocation2 + $0xd8] sm:$0xff] %vm19_vm0, %v976_v10 }
 0x171   :  { %1336 = vst.msk [vmem:[%s2389_s3 + $0x1c0] sm:$0xff] %vm19_vm0, %v1272_v9  ;;  %v1209_v19 = vadd.f32 %v2009_v36, %v1138_v14  ;;  %1073 = vst.msk [vmem:[#allocation2 + $0x1d8] sm:$0xff] %vm19_vm0, %v1008_v11  ;;  %v806_v20 = vpop.f32.mrf.mxu0  ;;  %v934_v21 = vpop.f32.mrf.mxu1 }
 0x172   :  { %v1241_v22 = vmax.f32 %v1177_v18, 0.0  ;;  %v977_v24 = vadd.f32 %v806_v20, %v112_v12  ;;  %v1009_v25 = vadd.f32 %v934_v21, %v144_v17 }
 0x173   :  { %v1273_v23 = vmax.f32 %v1209_v19, 0.0  ;;  %v1107_v27 = vld [vmem:[#allocation2 + $0xd0] sm:$0xff]  ;;  %v808_v29 = vpop.f32.mrf.mxu0  ;;  %v936_v30 = vpop.f32.mrf.mxu1 }
 0x174   :  { %v1139_v28 = vld [vmem:[#allocation2 + $0x1d0] sm:$0xff]  ;;  %1305 = vst.msk [vmem:[%s2389_s3 + $0xc8] sm:$0xff] %vm19_vm0, %v1241_v22  ;;  %v1178_v32 = vadd.f32 %v2009_v36, %v1107_v27  ;;  %1042 = vst.msk [vmem:[#allocation2 + $0xe0] sm:$0xff] %vm19_vm0, %v977_v24 }
 0x175   :  { %1337 = vst.msk [vmem:[%s2389_s3 + $0x1c8] sm:$0xff] %vm19_vm0, %v1273_v23  ;;  %v1210_v33 = vadd.f32 %v2009_v36, %v1139_v28  ;;  %1074 = vst.msk [vmem:[#allocation2 + $0x1e0] sm:$0xff] %vm19_vm0, %v1009_v25  ;;  %v809_v34 = vpop.f32.mrf.mxu0  ;;  %v937_v35 = vpop.f32.mrf.mxu1 }
 0x176   :  { %v1242_v37 = vmax.f32 %v1178_v32, 0.0  ;;  %v978_v39 = vadd.f32 %v809_v34, %v113_v26  ;;  %v1010_v40 = vadd.f32 %v937_v35, %v145_v31 }
 0x177   :  { %v1274_v38 = vmax.f32 %v1210_v33, 0.0  ;;  %v1108_v42 = vld [vmem:[#allocation2 + $0xd8] sm:$0xff]  ;;  %v811_v44 = vpop.f32.mrf.mxu0  ;;  %v939_v45 = vpop.f32.mrf.mxu1 }
 0x178   :  { %v1140_v43 = vld [vmem:[#allocation2 + $0x1d8] sm:$0xff]  ;;  %1306 = vst.msk [vmem:[%s2389_s3 + $0xd0] sm:$0xff] %vm19_vm0, %v1242_v37  ;;  %v1179_v47 = vadd.f32 %v2009_v36, %v1108_v42  ;;  %1043 = vst.msk [vmem:[#allocation2 + $0xe8] sm:$0xff] %vm19_vm0, %v978_v39 }
 0x179   :  { %1338 = vst.msk [vmem:[%s2389_s3 + $0x1d0] sm:$0xff] %vm19_vm0, %v1274_v38  ;;  %v1211_v48 = vadd.f32 %v2009_v36, %v1140_v43  ;;  %1075 = vst.msk [vmem:[#allocation2 + $0x1e8] sm:$0xff] %vm19_vm0, %v1010_v40  ;;  %v814_v49 = vpop.f32.mrf.mxu0  ;;  %v942_v50 = vpop.f32.mrf.mxu1  ;;  %v1575_v36 = vld [vmem:[%s2388_s2] ss:$0 sm:$0xff] }
 0x17a   :  { %v1243_v51 = vmax.f32 %v1179_v47, 0.0  ;;  %v979_v53 = vadd.f32 %v814_v49, %v114_v41  ;;  %v1011_v54 = vadd.f32 %v942_v50, %v146_v46 }
 0x17b   :  { %v1275_v52 = vmax.f32 %v1211_v48, 0.0  ;;  %v1109_v56 = vld [vmem:[#allocation2 + $0xe0] sm:$0xff]  ;;  %v816_v58 = vpop.f32.mrf.mxu0  ;;  %v944_v59 = vpop.f32.mrf.mxu1 }
 0x17c   :  { %v1141_v57 = vld [vmem:[#allocation2 + $0x1e0] sm:$0xff]  ;;  %1307 = vst.msk [vmem:[%s2389_s3 + $0xd8] sm:$0xff] %vm19_vm0, %v1243_v51  ;;  %v1180_v61 = vadd.f32 %v1575_v36, %v1109_v56  ;;  %1044 = vst.msk [vmem:[#allocation2 + $0xf0] sm:$0xff] %vm19_vm0, %v979_v53 }
 0x17d   :  { %1339 = vst.msk [vmem:[%s2389_s3 + $0x1d8] sm:$0xff] %vm19_vm0, %v1275_v52  ;;  %v1212_v62 = vadd.f32 %v1575_v36, %v1141_v57  ;;  %1076 = vst.msk [vmem:[#allocation2 + $0x1f0] sm:$0xff] %vm19_vm0, %v1011_v54  ;;  %v817_v63 = vpop.f32.mrf.mxu0  ;;  %v945_v0 = vpop.f32.mrf.mxu1 }
 0x17e   :  { %v1244_v1 = vmax.f32 %v1180_v61, 0.0  ;;  %v980_v3 = vadd.f32 %v817_v63, %v115_v55  ;;  %v1012_v4 = vadd.f32 %v945_v0, %v147_v60 }
 0x17f   :  { %v1276_v2 = vmax.f32 %v1212_v62, 0.0  ;;  %v1110_v5 = vld [vmem:[#allocation2 + $0xe8] sm:$0xff]  ;;  %v819_v7 = vpop.f32.mrf.mxu0  ;;  %v947_v8 = vpop.f32.mrf.mxu1 }
 0x180   :  { %v1142_v6 = vld [vmem:[#allocation2 + $0x1e8] sm:$0xff]  ;;  %1308 = vst.msk [vmem:[%s2389_s3 + $0xe0] sm:$0xff] %vm19_vm0, %v1244_v1  ;;  %v1181_v9 = vadd.f32 %v1575_v36, %v1110_v5  ;;  %1045 = vst.msk [vmem:[#allocation2 + $0xf8] sm:$0xff] %vm19_vm0, %v980_v3 }
 0x181   :  { %1340 = vst.msk [vmem:[%s2389_s3 + $0x1e0] sm:$0xff] %vm19_vm0, %v1276_v2  ;;  %v1213_v10 = vadd.f32 %v1575_v36, %v1142_v6  ;;  %1077 = vst.msk [vmem:[#allocation2 + $0x1f8] sm:$0xff] %vm19_vm0, %v1012_v4 }
 0x182   :  { %v1245_v11 = vmax.f32 %v1181_v9, 0.0 }
 0x183   :  { %v1277_v12 = vmax.f32 %v1213_v10, 0.0  ;;  %v1111_v13 = vld [vmem:[#allocation2 + $0xf0] sm:$0xff] }
 0x184   :  { %v1143_v14 = vld [vmem:[#allocation2 + $0x1f0] sm:$0xff]  ;;  %1309 = vst.msk [vmem:[%s2389_s3 + $0xe8] sm:$0xff] %vm19_vm0, %v1245_v11  ;;  %v1182_v15 = vadd.f32 %v1575_v36, %v1111_v13 }
 0x185   :  { %1341 = vst.msk [vmem:[%s2389_s3 + $0x1e8] sm:$0xff] %vm19_vm0, %v1277_v12  ;;  %v1214_v16 = vadd.f32 %v1575_v36, %v1143_v14 }
 0x186   :  { %v1246_v17 = vmax.f32 %v1182_v15, 0.0 }
 0x187   :  { %v1278_v18 = vmax.f32 %v1214_v16, 0.0  ;;  %v1112_v19 = vld [vmem:[#allocation2 + $0xf8] sm:$0xff] }
 0x188   :  { %v1144_v20 = vld [vmem:[#allocation2 + $0x1f8] sm:$0xff]  ;;  %1310 = vst.msk [vmem:[%s2389_s3 + $0xf0] sm:$0xff] %vm19_vm0, %v1246_v17  ;;  %v1183_v21 = vadd.f32 %v1575_v36, %v1112_v19 }
 0x189   :  { %1342 = vst.msk [vmem:[%s2389_s3 + $0x1f0] sm:$0xff] %vm19_vm0, %v1278_v18  ;;  %v1215_v22 = vadd.f32 %v1575_v36, %v1144_v20 }
 0x18a   :  { %v1247_v23 = vmax.f32 %v1183_v21, 0.0 }
 0x18b   :  { %v1279_v24 = vmax.f32 %v1215_v22, 0.0 }
 0x18c   :  { %1311 = vst.msk [vmem:[%s2389_s3 + $0xf8] sm:$0xff] %vm19_vm0, %v1247_v23 }
 0x18d   :  { %1343 = vst.msk [vmem:[%s2389_s3 + $0x1f8] sm:$0xff] %vm19_vm0, %v1279_v24 }

// kernel: _lambda_.19
= control target key start
LH: loop header
LB: loop body
LE: loop exit
PB: predicated region body
PF: predicated region fallthrough
CT: control target
= control target key end

     0   :  { %vm19_vm0 = vcmask 130048   ;;  %v638_v32 = vmov 0.0   ;;  %s872_s1 = inlined_call_operand.vmem [shape: bf16[256,16], index: 1, kind: input, shape index: {}]   ;;  %s873_s0 = inlined_call_operand.vmem [shape: bf16[128,256], index: 0, kind: input, shape index: {}]   ;;  %s874_s2 = inlined_call_operand.vmem [shape: f32[1,16], index: 2, kind: input, shape index: {}]   ;;  %s875_s3 = inlined_call_operand.vmem [shape: f32[128,16], index: 3, kind: output, shape index: {}]  }
   0x1   :  { %v598_v0 = vld [vmem:[%s872_s1 + $0x78] sm:$0xff]   ;;  %v600_v2 = vld [vmem:[%s872_s1 + $0x70] sm:$0xff]   ;;  %v602_v4 = vld [vmem:[%s872_s1 + $0x68] sm:$0xff]   ;;  %20 = vst.msk [vmem:[#allocation2] sm:$0xff] %vm19_vm0, %v638_v32 }
   0x2   :  { %v599_v1 = vld [vmem:[%s872_s1 + $0x38] sm:$0xff]   ;;  %517 = vmatprep.subr.bf16.mxu0 %v598_v0  ;;  %581 = vmatprep.subr.bf16.mxu1 %v598_v0  ;;  %v601_v3 = vld [vmem:[%s872_s1 + $0x30] sm:$0xff]   ;;  %v603_v5 = vld [vmem:[%s872_s1 + $0x28] sm:$0xff]   ;;  %21 = vst.msk [vmem:[#allocation2 + $0x8] sm:$0xff] %vm19_vm0, %v638_v32 }
   0x3   :  { %518 = vmatpush3.bf16.msra.mxu0 %v599_v1  ;;  %589 = vmatpush3.bf16.msra.mxu1 %v599_v1  ;;  %v604_v6 = vld [vmem:[%s872_s1 + $0x60] sm:$0xff]   ;;  %v606_v8 = vld [vmem:[%s872_s1 + $0x58] sm:$0xff]   ;;  %v608_v10 = vld [vmem:[%s872_s1 + $0x50] sm:$0xff]   ;;  %22 = vst.msk [vmem:[#allocation2 + $0x10] sm:$0xff] %vm19_vm0, %v638_v32 }
   0x4   :  { %519 = vmatprep.subr.bf16.mxu0 %v600_v2  ;;  %582 = vmatprep.subr.bf16.mxu1 %v600_v2  ;;  %v605_v7 = vld [vmem:[%s872_s1 + $0x20] sm:$0xff]   ;;  %v607_v9 = vld [vmem:[%s872_s1 + $0x18] sm:$0xff]   ;;  %v609_v13 = vld [vmem:[%s872_s1 + $0x10] sm:$0xff]   ;;  %23 = vst.msk [vmem:[#allocation2 + $0x18] sm:$0xff] %vm19_vm0, %v638_v32 }
   0x5   :  { %v616_v11 = vld [vmem:[%s873_s0 + $0x4] ss:$8 sps:$4 sm:$0xff]   ;;  %v614_v18 = vld [vmem:[%s873_s0] ss:$8 sps:$4 sm:$0xff]   ;;  %v620_v20 = vld [vmem:[%s873_s0 + $0x14] ss:$8 sps:$4 sm:$0xff]  }
   0x6   :  { %v619_v12 = vld [vmem:[%s873_s0 + $0x44] ss:$8 sps:$4 sm:$0xff]   ;;  %308 = vmatprep.mubr.bf16.mxu0 %v616_v11  ;;  %v617_v19 = vld [vmem:[%s873_s0 + $0x40] ss:$8 sps:$4 sm:$0xff]   ;;  %v622_v21 = vld [vmem:[%s873_s0 + $0x54] ss:$8 sps:$4 sm:$0xff]  }
   0x7   :  { %520 = vmatpush3.bf16.msra.mxu0 %v601_v3  ;;  %590 = vmatpush3.bf16.msra.mxu1 %v601_v3  ;;  %v610_v14 = vld [vmem:[%s872_s1 + $0x48] sm:$0xff]   ;;  %v612_v16 = vld [vmem:[%s872_s1 + $0x40] sm:$0xff]   ;;  %v624_v22 = vld [vmem:[%s873_s0 + $0x10] ss:$8 sps:$4 sm:$0xff]   ;;  %24 = vst.msk [vmem:[#allocation2 + $0x20] sm:$0xff] %vm19_vm0, %v638_v32 }
   0x8   :  { %521 = vmatprep.subr.bf16.mxu0 %v602_v4  ;;  %583 = vmatprep.subr.bf16.mxu1 %v602_v4  ;;  %v611_v15 = vld [vmem:[%s872_s1 + $0x8] sm:$0xff]   ;;  %v613_v17 = vld [vmem:[%s872_s1] sm:$0xff]   ;;  %v625_v23 = vld [vmem:[%s873_s0 + $0x50] ss:$8 sps:$4 sm:$0xff]   ;;  %25 = vst.msk [vmem:[#allocation2 + $0x28] sm:$0xff] %vm19_vm0, %v638_v32 }
   0x9   :  { %340 = vmatprep.mubr.bf16.mxu1 %v619_v12  ;;  %v626_v24 = vld [vmem:[%s873_s0 + $0x24] ss:$8 sps:$4 sm:$0xff]   ;;  %v630_v26 = vld [vmem:[%s873_s0 + $0x20] ss:$8 sps:$4 sm:$0xff]   ;;  %v632_v28 = vld [vmem:[%s873_s0 + $0x34] ss:$8 sps:$4 sm:$0xff]  }
   0xa   :  { %v628_v25 = vld [vmem:[%s873_s0 + $0x64] ss:$8 sps:$4 sm:$0xff]   ;;  %v631_v27 = vld [vmem:[%s873_s0 + $0x60] ss:$8 sps:$4 sm:$0xff]   ;;  %v634_v29 = vld [vmem:[%s873_s0 + $0x74] ss:$8 sps:$4 sm:$0xff]  }
   0xb   :  { %522 = vmatpush3.bf16.msra.mxu0 %v603_v5  ;;  %591 = vmatpush3.bf16.msra.mxu1 %v603_v5  ;;  %v636_v30 = vld [vmem:[%s873_s0 + $0x30] ss:$8 sps:$4 sm:$0xff]   ;;  %26 = vst.msk [vmem:[#allocation2 + $0x30] sm:$0xff] %vm19_vm0, %v638_v32  ;;  %27 = vst.msk [vmem:[#allocation2 + $0x38] sm:$0xff] %vm19_vm0, %v638_v32  ;;  %v36_v35 = vld [vmem:[#allocation2] sm:$0xff] }
   0xc   :  { %523 = vmatprep.subr.bf16.mxu0 %v604_v6  ;;  %584 = vmatprep.subr.bf16.mxu1 %v604_v6  ;;  %v637_v31 = vld [vmem:[%s873_s0 + $0x70] ss:$8 sps:$4 sm:$0xff]   ;;  %28 = vst.msk [vmem:[#allocation2 + $0x40] sm:$0xff] %vm19_vm0, %v638_v32  ;;  %29 = vst.msk [vmem:[#allocation2 + $0x48] sm:$0xff] %vm19_vm0, %v638_v32  ;;  %v37_v45 = vld [vmem:[#allocation2 + $0x8] sm:$0xff] }
   0xd   :  { %30 = vst.msk [vmem:[#allocation2 + $0x50] sm:$0xff] %vm19_vm0, %v638_v32  ;;  %31 = vst.msk [vmem:[#allocation2 + $0x58] sm:$0xff] %vm19_vm0, %v638_v32  ;;  %v38_v55 = vld [vmem:[#allocation2 + $0x10] sm:$0xff]  ;;  %v778_v61 = vld [vmem:[%s874_s2] ss:$0 sm:$0xff] }
   0xe   :  { %32 = vst.msk [vmem:[#allocation2 + $0x60] sm:$0xff] %vm19_vm0, %v638_v32  ;;  %33 = vst.msk [vmem:[#allocation2 + $0x68] sm:$0xff] %vm19_vm0, %v638_v32  ;;  %v39_v2 = vld [vmem:[#allocation2 + $0x18] sm:$0xff] }
   0xf   :  { %524 = vmatpush3.bf16.msra.mxu0 %v605_v7  ;;  %592 = vmatpush3.bf16.msra.mxu1 %v605_v7  ;;  %34 = vst.msk [vmem:[#allocation2 + $0x70] sm:$0xff] %vm19_vm0, %v638_v32  ;;  %35 = vst.msk [vmem:[#allocation2 + $0x78] sm:$0xff] %vm19_vm0, %v638_v32 }
  0x10   :  { %525 = vmatprep.subr.bf16.mxu0 %v606_v8  ;;  %585 = vmatprep.subr.bf16.mxu1 %v606_v8 }
  0x13   :  { %526 = vmatpush3.bf16.msra.mxu0 %v607_v9  ;;  %593 = vmatpush3.bf16.msra.mxu1 %v607_v9  ;;  %v44_v37 = vld [vmem:[#allocation2 + $0x40] sm:$0xff]  ;;  %v45_v47 = vld [vmem:[#allocation2 + $0x48] sm:$0xff] }
  0x14   :  { %527 = vmatprep.subr.bf16.mxu0 %v608_v10  ;;  %586 = vmatprep.subr.bf16.mxu1 %v608_v10  ;;  %v46_v57 = vld [vmem:[#allocation2 + $0x50] sm:$0xff]  ;;  %v47_v6 = vld [vmem:[#allocation2 + $0x58] sm:$0xff] }
  0x17   :  { %528 = vmatpush3.bf16.msra.mxu0 %v609_v13  ;;  %594 = vmatpush3.bf16.msra.mxu1 %v609_v13 }
  0x18   :  { %529 = vmatprep.subr.bf16.mxu0 %v610_v14  ;;  %587 = vmatprep.subr.bf16.mxu1 %v610_v14 }
  0x1b   :  { %530 = vmatpush3.bf16.msra.mxu0 %v611_v15  ;;  %595 = vmatpush3.bf16.msra.mxu1 %v611_v15 }
  0x1c   :  { %531 = vmatprep.subr.bf16.mxu0 %v612_v16  ;;  %588 = vmatprep.subr.bf16.mxu1 %v612_v16 }
  0x1f   :  { %532 = vmatpush3.bf16.msra.mxu0 %v613_v17  ;;  %596 = vmatpush3.bf16.msra.mxu1 %v613_v17 }
  0x22   :  { %309 = vmatmul.mubr.bf16.vlgmr.msra.gmra.mxu0 %v614_v18  ;;  %341 = vmatmul.mubr.bf16.vlgmr.msra.gmra.mxu1 %v617_v19  ;;  %v40_v18 = vld [vmem:[#allocation2 + $0x20] sm:$0xff] }
  0x23   :  { %316 = vmatprep.mubr.bf16.mxu0 %v620_v20  ;;  %348 = vmatprep.mubr.bf16.mxu1 %v622_v21 }
  0x2a   :  { %317 = vmatmul.mubr.bf16.gmra.mxu0 %v624_v22  ;;  %349 = vmatmul.mubr.bf16.gmra.mxu1 %v625_v23  ;;  %v48_v22 = vld [vmem:[#allocation2 + $0x60] sm:$0xff] }
  0x2b   :  { %324 = vmatprep.mubr.bf16.mxu0 %v626_v24  ;;  %356 = vmatprep.mubr.bf16.mxu1 %v628_v25 }
  0x32   :  { %325 = vmatmul.mubr.bf16.gmra.mxu0 %v630_v26  ;;  %357 = vmatmul.mubr.bf16.gmra.mxu1 %v631_v27 }
  0x33   :  { %332 = vmatprep.mubr.bf16.mxu0 %v632_v28  ;;  %364 = vmatprep.mubr.bf16.mxu1 %v634_v29 }
  0x3a   :  { %333 = vmatmul.mubr.bf16.gmra.mxu0 %v636_v30  ;;  %365 = vmatmul.mubr.bf16.gmra.mxu1 %v637_v31 }
  0xe2   :  { %v533_v33 = vpop.f32.mrf.mxu0  ;;  %v557_v34 = vpop.f32.mrf.mxu1 }
  0xe4   :  { %v534_v36 = vpop.f32.mrf.mxu0  ;;  %v558_v38 = vpop.f32.mrf.mxu1 }
  0xe5   :  { %v535_v39 = vadd.f32 %v534_v36, %v533_v33  ;;  %v559_v40 = vadd.f32 %v558_v38, %v557_v34  ;;  %v41_v34 = vld [vmem:[#allocation2 + $0x28] sm:$0xff] }
  0xe6   :  { %v536_v41 = vpop.f32.mrf.mxu0  ;;  %v560_v42 = vpop.f32.mrf.mxu1  ;;  %v49_v38 = vld [vmem:[#allocation2 + $0x68] sm:$0xff] }
  0xe7   :  { %v373_v43 = vadd.f32 %v535_v39, %v36_v35  ;;  %v381_v44 = vadd.f32 %v559_v40, %v44_v37 }
  0xe8   :  { %v537_v46 = vpop.f32.mrf.mxu0  ;;  %v561_v48 = vpop.f32.mrf.mxu1 }
  0xe9   :  { %390 = vst.msk [vmem:[#allocation2] sm:$0xff] %vm19_vm0, %v373_v43  ;;  %398 = vst.msk [vmem:[#allocation2 + $0x40] sm:$0xff] %vm19_vm0, %v381_v44  ;;  %v538_v49 = vadd.f32 %v537_v46, %v536_v41  ;;  %v562_v50 = vadd.f32 %v561_v48, %v560_v42 }
  0xea   :  { %v539_v51 = vpop.f32.mrf.mxu0  ;;  %v563_v52 = vpop.f32.mrf.mxu1 }
  0xeb   :  { %v374_v53 = vadd.f32 %v538_v49, %v37_v45  ;;  %v382_v54 = vadd.f32 %v562_v50, %v45_v47  ;;  %v42_v50 = vld [vmem:[#allocation2 + $0x30] sm:$0xff] }
  0xec   :  { %v540_v56 = vpop.f32.mrf.mxu0  ;;  %v564_v58 = vpop.f32.mrf.mxu1 }
  0xed   :  { %391 = vst.msk [vmem:[#allocation2 + $0x8] sm:$0xff] %vm19_vm0, %v374_v53  ;;  %399 = vst.msk [vmem:[#allocation2 + $0x48] sm:$0xff] %vm19_vm0, %v382_v54  ;;  %v541_v59 = vadd.f32 %v540_v56, %v539_v51  ;;  %v565_v60 = vadd.f32 %v564_v58, %v563_v52  ;;  %v50_v54 = vld [vmem:[#allocation2 + $0x70] sm:$0xff] }
  0xee   :  { %v542_v62 = vpop.f32.mrf.mxu0  ;;  %v566_v63 = vpop.f32.mrf.mxu1 }
  0xef   :  { %v375_v0 = vadd.f32 %v541_v59, %v38_v55  ;;  %v383_v1 = vadd.f32 %v565_v60, %v46_v57 }
  0xf0   :  { %v409_v3 = vld [vmem:[#allocation2] sm:$0xff]  ;;  %v543_v5 = vpop.f32.mrf.mxu0  ;;  %v567_v7 = vpop.f32.mrf.mxu1 }
  0xf1   :  { %v417_v4 = vld [vmem:[#allocation2 + $0x40] sm:$0xff]  ;;  %v432_v8 = vadd.f32 %v778_v61, %v409_v3  ;;  %392 = vst.msk [vmem:[#allocation2 + $0x10] sm:$0xff] %vm19_vm0, %v375_v0  ;;  %400 = vst.msk [vmem:[#allocation2 + $0x50] sm:$0xff] %vm19_vm0, %v383_v1  ;;  %v544_v10 = vadd.f32 %v543_v5, %v542_v62  ;;  %v568_v11 = vadd.f32 %v567_v7, %v566_v63  ;;  %v43_v3 = vld [vmem:[#allocation2 + $0x38] sm:$0xff] }
  0xf2   :  { %v440_v9 = vadd.f32 %v778_v61, %v417_v4  ;;  %v545_v12 = vpop.f32.mrf.mxu0  ;;  %v569_v13 = vpop.f32.mrf.mxu1  ;;  %v51_v7 = vld [vmem:[#allocation2 + $0x78] sm:$0xff] }
  0xf3   :  { %v448_v14 = vmax.f32 %v432_v8, 0.0  ;;  %v376_v16 = vadd.f32 %v544_v10, %v39_v2  ;;  %v384_v17 = vadd.f32 %v568_v11, %v47_v6 }
  0xf4   :  { %v456_v15 = vmax.f32 %v440_v9, 0.0  ;;  %v410_v19 = vld [vmem:[#allocation2 + $0x8] sm:$0xff]  ;;  %v546_v21 = vpop.f32.mrf.mxu0  ;;  %v570_v23 = vpop.f32.mrf.mxu1 }
  0xf5   :  { %v418_v20 = vld [vmem:[#allocation2 + $0x48] sm:$0xff]  ;;  %464 = vst.msk [vmem:[%s875_s3] sm:$0xff] %vm19_vm0, %v448_v14  ;;  %v433_v24 = vadd.f32 %v778_v61, %v410_v19  ;;  %393 = vst.msk [vmem:[#allocation2 + $0x18] sm:$0xff] %vm19_vm0, %v376_v16  ;;  %v547_v26 = vadd.f32 %v546_v21, %v545_v12  ;;  %v571_v27 = vadd.f32 %v570_v23, %v569_v13 }
  0xf6   :  { %472 = vst.msk [vmem:[%s875_s3 + $0x40] sm:$0xff] %vm19_vm0, %v456_v15  ;;  %v441_v25 = vadd.f32 %v778_v61, %v418_v20  ;;  %401 = vst.msk [vmem:[#allocation2 + $0x58] sm:$0xff] %vm19_vm0, %v384_v17  ;;  %v548_v28 = vpop.f32.mrf.mxu0  ;;  %v572_v29 = vpop.f32.mrf.mxu1 }
  0xf7   :  { %v449_v30 = vmax.f32 %v433_v24, 0.0  ;;  %v377_v32 = vadd.f32 %v547_v26, %v40_v18  ;;  %v385_v33 = vadd.f32 %v571_v27, %v48_v22 }
  0xf8   :  { %v457_v31 = vmax.f32 %v441_v25, 0.0  ;;  %v411_v35 = vld [vmem:[#allocation2 + $0x10] sm:$0xff]  ;;  %v549_v37 = vpop.f32.mrf.mxu0  ;;  %v573_v39 = vpop.f32.mrf.mxu1 }
  0xf9   :  { %v419_v36 = vld [vmem:[#allocation2 + $0x50] sm:$0xff]  ;;  %465 = vst.msk [vmem:[%s875_s3 + $0x8] sm:$0xff] %vm19_vm0, %v449_v30  ;;  %v434_v40 = vadd.f32 %v778_v61, %v411_v35  ;;  %394 = vst.msk [vmem:[#allocation2 + $0x20] sm:$0xff] %vm19_vm0, %v377_v32  ;;  %v550_v42 = vadd.f32 %v549_v37, %v548_v28  ;;  %v574_v43 = vadd.f32 %v573_v39, %v572_v29 }
  0xfa   :  { %473 = vst.msk [vmem:[%s875_s3 + $0x48] sm:$0xff] %vm19_vm0, %v457_v31  ;;  %v442_v41 = vadd.f32 %v778_v61, %v419_v36  ;;  %402 = vst.msk [vmem:[#allocation2 + $0x60] sm:$0xff] %vm19_vm0, %v385_v33  ;;  %v551_v44 = vpop.f32.mrf.mxu0  ;;  %v575_v45 = vpop.f32.mrf.mxu1 }
  0xfb   :  { %v450_v46 = vmax.f32 %v434_v40, 0.0  ;;  %v378_v48 = vadd.f32 %v550_v42, %v41_v34  ;;  %v386_v49 = vadd.f32 %v574_v43, %v49_v38 }
  0xfc   :  { %v458_v47 = vmax.f32 %v442_v41, 0.0  ;;  %v412_v51 = vld [vmem:[#allocation2 + $0x18] sm:$0xff]  ;;  %v552_v53 = vpop.f32.mrf.mxu0  ;;  %v576_v55 = vpop.f32.mrf.mxu1 }
  0xfd   :  { %v420_v52 = vld [vmem:[#allocation2 + $0x58] sm:$0xff]  ;;  %466 = vst.msk [vmem:[%s875_s3 + $0x10] sm:$0xff] %vm19_vm0, %v450_v46  ;;  %v435_v56 = vadd.f32 %v778_v61, %v412_v51  ;;  %395 = vst.msk [vmem:[#allocation2 + $0x28] sm:$0xff] %vm19_vm0, %v378_v48  ;;  %v553_v58 = vadd.f32 %v552_v53, %v551_v44  ;;  %v577_v59 = vadd.f32 %v576_v55, %v575_v45 }
  0xfe   :  { %474 = vst.msk [vmem:[%s875_s3 + $0x50] sm:$0xff] %vm19_vm0, %v458_v47  ;;  %v443_v57 = vadd.f32 %v778_v61, %v420_v52  ;;  %403 = vst.msk [vmem:[#allocation2 + $0x68] sm:$0xff] %vm19_vm0, %v386_v49  ;;  %v554_v60 = vpop.f32.mrf.mxu0  ;;  %v578_v62 = vpop.f32.mrf.mxu1 }
  0xff   :  { %v451_v63 = vmax.f32 %v435_v56, 0.0  ;;  %v379_v1 = vadd.f32 %v553_v58, %v42_v50  ;;  %v387_v2 = vadd.f32 %v577_v59, %v50_v54 }
 0x100   :  { %v459_v0 = vmax.f32 %v443_v57, 0.0  ;;  %v413_v4 = vld [vmem:[#allocation2 + $0x20] sm:$0xff]  ;;  %v555_v6 = vpop.f32.mrf.mxu0  ;;  %v579_v8 = vpop.f32.mrf.mxu1 }
 0x101   :  { %v421_v5 = vld [vmem:[#allocation2 + $0x60] sm:$0xff]  ;;  %467 = vst.msk [vmem:[%s875_s3 + $0x18] sm:$0xff] %vm19_vm0, %v451_v63  ;;  %v436_v9 = vadd.f32 %v778_v61, %v413_v4  ;;  %396 = vst.msk [vmem:[#allocation2 + $0x30] sm:$0xff] %vm19_vm0, %v379_v1  ;;  %v556_v11 = vadd.f32 %v555_v6, %v554_v60  ;;  %v580_v12 = vadd.f32 %v579_v8, %v578_v62 }
 0x102   :  { %475 = vst.msk [vmem:[%s875_s3 + $0x58] sm:$0xff] %vm19_vm0, %v459_v0  ;;  %v444_v10 = vadd.f32 %v778_v61, %v421_v5  ;;  %404 = vst.msk [vmem:[#allocation2 + $0x70] sm:$0xff] %vm19_vm0, %v387_v2 }
 0x103   :  { %v452_v13 = vmax.f32 %v436_v9, 0.0  ;;  %v380_v15 = vadd.f32 %v556_v11, %v43_v3  ;;  %v388_v16 = vadd.f32 %v580_v12, %v51_v7 }
 0x104   :  { %v460_v14 = vmax.f32 %v444_v10, 0.0  ;;  %v414_v17 = vld [vmem:[#allocation2 + $0x28] sm:$0xff] }
 0x105   :  { %v422_v18 = vld [vmem:[#allocation2 + $0x68] sm:$0xff]  ;;  %468 = vst.msk [vmem:[%s875_s3 + $0x20] sm:$0xff] %vm19_vm0, %v452_v13  ;;  %v437_v19 = vadd.f32 %v778_v61, %v414_v17  ;;  %397 = vst.msk [vmem:[#allocation2 + $0x38] sm:$0xff] %vm19_vm0, %v380_v15 }
 0x106   :  { %476 = vst.msk [vmem:[%s875_s3 + $0x60] sm:$0xff] %vm19_vm0, %v460_v14  ;;  %v445_v20 = vadd.f32 %v778_v61, %v422_v18  ;;  %405 = vst.msk [vmem:[#allocation2 + $0x78] sm:$0xff] %vm19_vm0, %v388_v16 }
 0x107   :  { %v453_v21 = vmax.f32 %v437_v19, 0.0 }
 0x108   :  { %v461_v22 = vmax.f32 %v445_v20, 0.0  ;;  %v415_v23 = vld [vmem:[#allocation2 + $0x30] sm:$0xff] }
 0x109   :  { %v423_v24 = vld [vmem:[#allocation2 + $0x70] sm:$0xff]  ;;  %469 = vst.msk [vmem:[%s875_s3 + $0x28] sm:$0xff] %vm19_vm0, %v453_v21  ;;  %v438_v25 = vadd.f32 %v778_v61, %v415_v23 }
 0x10a   :  { %477 = vst.msk [vmem:[%s875_s3 + $0x68] sm:$0xff] %vm19_vm0, %v461_v22  ;;  %v446_v26 = vadd.f32 %v778_v61, %v423_v24 }
 0x10b   :  { %v454_v27 = vmax.f32 %v438_v25, 0.0 }
 0x10c   :  { %v462_v28 = vmax.f32 %v446_v26, 0.0  ;;  %v416_v29 = vld [vmem:[#allocation2 + $0x38] sm:$0xff] }
 0x10d   :  { %v424_v30 = vld [vmem:[#allocation2 + $0x78] sm:$0xff]  ;;  %470 = vst.msk [vmem:[%s875_s3 + $0x30] sm:$0xff] %vm19_vm0, %v454_v27  ;;  %v439_v31 = vadd.f32 %v778_v61, %v416_v29 }
 0x10e   :  { %478 = vst.msk [vmem:[%s875_s3 + $0x70] sm:$0xff] %vm19_vm0, %v462_v28  ;;  %v447_v32 = vadd.f32 %v778_v61, %v424_v30 }
 0x10f   :  { %v455_v33 = vmax.f32 %v439_v31, 0.0 }
 0x110   :  { %v463_v34 = vmax.f32 %v447_v32, 0.0 }
 0x111   :  { %471 = vst.msk [vmem:[%s875_s3 + $0x38] sm:$0xff] %vm19_vm0, %v455_v33 }
 0x112   :  { %479 = vst.msk [vmem:[%s875_s3 + $0x78] sm:$0xff] %vm19_vm0, %v463_v34 }

// kernel: _lambda_.20
= control target key start
LH: loop header
LB: loop body
LE: loop exit
PB: predicated region body
PF: predicated region fallthrough
CT: control target
= control target key end

     0   :  { %vm22_vm0 = vcmask 130048   ;;  %v673_v32 = vmov 0.0   ;;  %s960_s1 = inlined_call_operand.vmem [shape: bf16[256,16], index: 1, kind: input, shape index: {}]   ;;  %s961_s0 = inlined_call_operand.vmem [shape: bf16[128,256], index: 0, kind: input, shape index: {}]   ;;  %s962_s2 = inlined_call_operand.vmem [shape: f32[1,16], index: 2, kind: input, shape index: {}]   ;;  %s963_s3 = inlined_call_operand.vmem [shape: f32[128,16], index: 3, kind: input, shape index: {}]   ;;  %s964_s4 = inlined_call_operand.vmem [shape: f32[128,16], index: 4, kind: output, shape index: {}]  }
   0x1   :  { %v633_v0 = vld [vmem:[%s960_s1 + $0x78] sm:$0xff]   ;;  %v635_v2 = vld [vmem:[%s960_s1 + $0x70] sm:$0xff]   ;;  %v637_v4 = vld [vmem:[%s960_s1 + $0x68] sm:$0xff]   ;;  %23 = vst.msk [vmem:[#allocation2] sm:$0xff] %vm22_vm0, %v673_v32 }
   0x2   :  { %v634_v1 = vld [vmem:[%s960_s1 + $0x38] sm:$0xff]   ;;  %552 = vmatprep.subr.bf16.mxu0 %v633_v0  ;;  %616 = vmatprep.subr.bf16.mxu1 %v633_v0  ;;  %v636_v3 = vld [vmem:[%s960_s1 + $0x30] sm:$0xff]   ;;  %v638_v5 = vld [vmem:[%s960_s1 + $0x28] sm:$0xff]   ;;  %24 = vst.msk [vmem:[#allocation2 + $0x8] sm:$0xff] %vm22_vm0, %v673_v32 }
   0x3   :  { %553 = vmatpush3.bf16.msra.mxu0 %v634_v1  ;;  %624 = vmatpush3.bf16.msra.mxu1 %v634_v1  ;;  %v639_v6 = vld [vmem:[%s960_s1 + $0x60] sm:$0xff]   ;;  %v641_v8 = vld [vmem:[%s960_s1 + $0x58] sm:$0xff]   ;;  %v643_v10 = vld [vmem:[%s960_s1 + $0x50] sm:$0xff]   ;;  %25 = vst.msk [vmem:[#allocation2 + $0x10] sm:$0xff] %vm22_vm0, %v673_v32 }
   0x4   :  { %554 = vmatprep.subr.bf16.mxu0 %v635_v2  ;;  %617 = vmatprep.subr.bf16.mxu1 %v635_v2  ;;  %v640_v7 = vld [vmem:[%s960_s1 + $0x20] sm:$0xff]   ;;  %v642_v9 = vld [vmem:[%s960_s1 + $0x18] sm:$0xff]   ;;  %v644_v13 = vld [vmem:[%s960_s1 + $0x10] sm:$0xff]   ;;  %26 = vst.msk [vmem:[#allocation2 + $0x18] sm:$0xff] %vm22_vm0, %v673_v32 }
   0x5   :  { %v651_v11 = vld [vmem:[%s961_s0 + $0x4] ss:$8 sps:$4 sm:$0xff]   ;;  %v649_v18 = vld [vmem:[%s961_s0] ss:$8 sps:$4 sm:$0xff]   ;;  %v655_v20 = vld [vmem:[%s961_s0 + $0x14] ss:$8 sps:$4 sm:$0xff]  }
   0x6   :  { %v654_v12 = vld [vmem:[%s961_s0 + $0x44] ss:$8 sps:$4 sm:$0xff]   ;;  %311 = vmatprep.mubr.bf16.mxu0 %v651_v11  ;;  %v652_v19 = vld [vmem:[%s961_s0 + $0x40] ss:$8 sps:$4 sm:$0xff]   ;;  %v657_v21 = vld [vmem:[%s961_s0 + $0x54] ss:$8 sps:$4 sm:$0xff]  }
   0x7   :  { %555 = vmatpush3.bf16.msra.mxu0 %v636_v3  ;;  %625 = vmatpush3.bf16.msra.mxu1 %v636_v3  ;;  %v645_v14 = vld [vmem:[%s960_s1 + $0x48] sm:$0xff]   ;;  %v647_v16 = vld [vmem:[%s960_s1 + $0x40] sm:$0xff]   ;;  %v659_v22 = vld [vmem:[%s961_s0 + $0x10] ss:$8 sps:$4 sm:$0xff]   ;;  %27 = vst.msk [vmem:[#allocation2 + $0x20] sm:$0xff] %vm22_vm0, %v673_v32 }
   0x8   :  { %556 = vmatprep.subr.bf16.mxu0 %v637_v4  ;;  %618 = vmatprep.subr.bf16.mxu1 %v637_v4  ;;  %v646_v15 = vld [vmem:[%s960_s1 + $0x8] sm:$0xff]   ;;  %v648_v17 = vld [vmem:[%s960_s1] sm:$0xff]   ;;  %v660_v23 = vld [vmem:[%s961_s0 + $0x50] ss:$8 sps:$4 sm:$0xff]   ;;  %28 = vst.msk [vmem:[#allocation2 + $0x28] sm:$0xff] %vm22_vm0, %v673_v32 }
   0x9   :  { %343 = vmatprep.mubr.bf16.mxu1 %v654_v12  ;;  %v661_v24 = vld [vmem:[%s961_s0 + $0x24] ss:$8 sps:$4 sm:$0xff]   ;;  %v665_v26 = vld [vmem:[%s961_s0 + $0x20] ss:$8 sps:$4 sm:$0xff]   ;;  %v667_v28 = vld [vmem:[%s961_s0 + $0x34] ss:$8 sps:$4 sm:$0xff]  }
   0xa   :  { %v663_v25 = vld [vmem:[%s961_s0 + $0x64] ss:$8 sps:$4 sm:$0xff]   ;;  %v666_v27 = vld [vmem:[%s961_s0 + $0x60] ss:$8 sps:$4 sm:$0xff]   ;;  %v669_v29 = vld [vmem:[%s961_s0 + $0x74] ss:$8 sps:$4 sm:$0xff]  }
   0xb   :  { %557 = vmatpush3.bf16.msra.mxu0 %v638_v5  ;;  %626 = vmatpush3.bf16.msra.mxu1 %v638_v5  ;;  %v671_v30 = vld [vmem:[%s961_s0 + $0x30] ss:$8 sps:$4 sm:$0xff]   ;;  %29 = vst.msk [vmem:[#allocation2 + $0x30] sm:$0xff] %vm22_vm0, %v673_v32  ;;  %30 = vst.msk [vmem:[#allocation2 + $0x38] sm:$0xff] %vm22_vm0, %v673_v32  ;;  %v39_v35 = vld [vmem:[#allocation2] sm:$0xff] }
   0xc   :  { %558 = vmatprep.subr.bf16.mxu0 %v639_v6  ;;  %619 = vmatprep.subr.bf16.mxu1 %v639_v6  ;;  %v672_v31 = vld [vmem:[%s961_s0 + $0x70] ss:$8 sps:$4 sm:$0xff]   ;;  %31 = vst.msk [vmem:[#allocation2 + $0x40] sm:$0xff] %vm22_vm0, %v673_v32  ;;  %32 = vst.msk [vmem:[#allocation2 + $0x48] sm:$0xff] %vm22_vm0, %v673_v32  ;;  %v40_v45 = vld [vmem:[#allocation2 + $0x8] sm:$0xff] }
   0xd   :  { %33 = vst.msk [vmem:[#allocation2 + $0x50] sm:$0xff] %vm22_vm0, %v673_v32  ;;  %34 = vst.msk [vmem:[#allocation2 + $0x58] sm:$0xff] %vm22_vm0, %v673_v32  ;;  %v41_v55 = vld [vmem:[#allocation2 + $0x10] sm:$0xff]  ;;  %v818_v61 = vld [vmem:[%s962_s2] ss:$0 sm:$0xff] }
   0xe   :  { %35 = vst.msk [vmem:[#allocation2 + $0x60] sm:$0xff] %vm22_vm0, %v673_v32  ;;  %36 = vst.msk [vmem:[#allocation2 + $0x68] sm:$0xff] %vm22_vm0, %v673_v32  ;;  %v451_v0 = vld [vmem:[%s963_s3] sm:$0xff]  ;;  %v42_v4 = vld [vmem:[#allocation2 + $0x18] sm:$0xff] }
   0xf   :  { %559 = vmatpush3.bf16.msra.mxu0 %v640_v7  ;;  %627 = vmatpush3.bf16.msra.mxu1 %v640_v7  ;;  %37 = vst.msk [vmem:[#allocation2 + $0x70] sm:$0xff] %vm22_vm0, %v673_v32  ;;  %38 = vst.msk [vmem:[#allocation2 + $0x78] sm:$0xff] %vm22_vm0, %v673_v32  ;;  %v459_v1 = vld [vmem:[%s963_s3 + $0x40] sm:$0xff] }
  0x10   :  { %560 = vmatprep.subr.bf16.mxu0 %v641_v8  ;;  %620 = vmatprep.subr.bf16.mxu1 %v641_v8 }
  0x13   :  { %561 = vmatpush3.bf16.msra.mxu0 %v642_v9  ;;  %628 = vmatpush3.bf16.msra.mxu1 %v642_v9  ;;  %v47_v37 = vld [vmem:[#allocation2 + $0x40] sm:$0xff]  ;;  %v48_v47 = vld [vmem:[#allocation2 + $0x48] sm:$0xff] }
  0x14   :  { %562 = vmatprep.subr.bf16.mxu0 %v643_v10  ;;  %621 = vmatprep.subr.bf16.mxu1 %v643_v10  ;;  %v49_v57 = vld [vmem:[#allocation2 + $0x50] sm:$0xff]  ;;  %v50_v8 = vld [vmem:[#allocation2 + $0x58] sm:$0xff] }
  0x17   :  { %563 = vmatpush3.bf16.msra.mxu0 %v644_v13  ;;  %629 = vmatpush3.bf16.msra.mxu1 %v644_v13 }
  0x18   :  { %564 = vmatprep.subr.bf16.mxu0 %v645_v14  ;;  %622 = vmatprep.subr.bf16.mxu1 %v645_v14 }
  0x1b   :  { %565 = vmatpush3.bf16.msra.mxu0 %v646_v15  ;;  %630 = vmatpush3.bf16.msra.mxu1 %v646_v15 }
  0x1c   :  { %566 = vmatprep.subr.bf16.mxu0 %v647_v16  ;;  %623 = vmatprep.subr.bf16.mxu1 %v647_v16 }
  0x1f   :  { %567 = vmatpush3.bf16.msra.mxu0 %v648_v17  ;;  %631 = vmatpush3.bf16.msra.mxu1 %v648_v17 }
  0x22   :  { %312 = vmatmul.mubr.bf16.vlgmr.msra.gmra.mxu0 %v649_v18  ;;  %344 = vmatmul.mubr.bf16.vlgmr.msra.gmra.mxu1 %v652_v19  ;;  %v452_v18 = vld [vmem:[%s963_s3 + $0x8] sm:$0xff] }
  0x23   :  { %319 = vmatprep.mubr.bf16.mxu0 %v655_v20  ;;  %351 = vmatprep.mubr.bf16.mxu1 %v657_v21 }
  0x2a   :  { %320 = vmatmul.mubr.bf16.gmra.mxu0 %v659_v22  ;;  %352 = vmatmul.mubr.bf16.gmra.mxu1 %v660_v23  ;;  %v460_v23 = vld [vmem:[%s963_s3 + $0x48] sm:$0xff] }
  0x2b   :  { %327 = vmatprep.mubr.bf16.mxu0 %v661_v24  ;;  %359 = vmatprep.mubr.bf16.mxu1 %v663_v25 }
  0x32   :  { %328 = vmatmul.mubr.bf16.gmra.mxu0 %v665_v26  ;;  %360 = vmatmul.mubr.bf16.gmra.mxu1 %v666_v27 }
  0x33   :  { %335 = vmatprep.mubr.bf16.mxu0 %v667_v28  ;;  %367 = vmatprep.mubr.bf16.mxu1 %v669_v29 }
  0x3a   :  { %336 = vmatmul.mubr.bf16.gmra.mxu0 %v671_v30  ;;  %368 = vmatmul.mubr.bf16.gmra.mxu1 %v672_v31  ;;  %v43_v30 = vld [vmem:[#allocation2 + $0x20] sm:$0xff] }
  0x3b   :  { %v51_v31 = vld [vmem:[#allocation2 + $0x60] sm:$0xff] }
  0xe2   :  { %v568_v33 = vpop.f32.mrf.mxu0  ;;  %v592_v34 = vpop.f32.mrf.mxu1 }
  0xe4   :  { %v569_v36 = vpop.f32.mrf.mxu0  ;;  %v593_v38 = vpop.f32.mrf.mxu1 }
  0xe5   :  { %v570_v39 = vadd.f32 %v569_v36, %v568_v33  ;;  %v594_v40 = vadd.f32 %v593_v38, %v592_v34  ;;  %v453_v38 = vld [vmem:[%s963_s3 + $0x10] sm:$0xff] }
  0xe6   :  { %v571_v41 = vpop.f32.mrf.mxu0  ;;  %v595_v42 = vpop.f32.mrf.mxu1 }
  0xe7   :  { %v376_v43 = vadd.f32 %v570_v39, %v39_v35  ;;  %v384_v44 = vadd.f32 %v594_v40, %v47_v37 }
  0xe8   :  { %v572_v46 = vpop.f32.mrf.mxu0  ;;  %v596_v48 = vpop.f32.mrf.mxu1 }
  0xe9   :  { %393 = vst.msk [vmem:[#allocation2] sm:$0xff] %vm22_vm0, %v376_v43  ;;  %401 = vst.msk [vmem:[#allocation2 + $0x40] sm:$0xff] %vm22_vm0, %v384_v44  ;;  %v573_v49 = vadd.f32 %v572_v46, %v571_v41  ;;  %v597_v50 = vadd.f32 %v596_v48, %v595_v42  ;;  %v461_v41 = vld [vmem:[%s963_s3 + $0x50] sm:$0xff] }
  0xea   :  { %v574_v51 = vpop.f32.mrf.mxu0  ;;  %v598_v52 = vpop.f32.mrf.mxu1 }
  0xeb   :  { %v377_v53 = vadd.f32 %v573_v49, %v40_v45  ;;  %v385_v54 = vadd.f32 %v597_v50, %v48_v47  ;;  %v44_v50 = vld [vmem:[#allocation2 + $0x28] sm:$0xff] }
  0xec   :  { %v575_v56 = vpop.f32.mrf.mxu0  ;;  %v599_v58 = vpop.f32.mrf.mxu1 }
  0xed   :  { %394 = vst.msk [vmem:[#allocation2 + $0x8] sm:$0xff] %vm22_vm0, %v377_v53  ;;  %402 = vst.msk [vmem:[#allocation2 + $0x48] sm:$0xff] %vm22_vm0, %v385_v54  ;;  %v576_v59 = vadd.f32 %v575_v56, %v574_v51  ;;  %v600_v60 = vadd.f32 %v599_v58, %v598_v52  ;;  %v52_v51 = vld [vmem:[#allocation2 + $0x68] sm:$0xff]  ;;  %v454_v58 = vld [vmem:[%s963_s3 + $0x18] sm:$0xff] }
  0xee   :  { %v577_v62 = vpop.f32.mrf.mxu0  ;;  %v601_v63 = vpop.f32.mrf.mxu1 }
  0xef   :  { %v378_v2 = vadd.f32 %v576_v59, %v41_v55  ;;  %v386_v3 = vadd.f32 %v600_v60, %v49_v57 }
  0xf0   :  { %v412_v5 = vld [vmem:[#allocation2] sm:$0xff]  ;;  %v578_v7 = vpop.f32.mrf.mxu0  ;;  %v602_v9 = vpop.f32.mrf.mxu1 }
  0xf1   :  { %v420_v6 = vld [vmem:[#allocation2 + $0x40] sm:$0xff]  ;;  %v435_v10 = vadd.f32 %v818_v61, %v412_v5  ;;  %395 = vst.msk [vmem:[#allocation2 + $0x10] sm:$0xff] %vm22_vm0, %v378_v2  ;;  %403 = vst.msk [vmem:[#allocation2 + $0x50] sm:$0xff] %vm22_vm0, %v386_v3  ;;  %v579_v12 = vadd.f32 %v578_v7, %v577_v62  ;;  %v603_v13 = vadd.f32 %v602_v9, %v601_v63  ;;  %v462_v62 = vld [vmem:[%s963_s3 + $0x58] sm:$0xff] }
  0xf2   :  { %v443_v11 = vadd.f32 %v818_v61, %v420_v6  ;;  %v580_v14 = vpop.f32.mrf.mxu0  ;;  %v604_v15 = vpop.f32.mrf.mxu1  ;;  %v45_v7 = vld [vmem:[#allocation2 + $0x30] sm:$0xff] }
  0xf3   :  { %v467_v16 = vadd.f32 %v451_v0, %v435_v10  ;;  %v379_v19 = vadd.f32 %v579_v12, %v42_v4  ;;  %v387_v20 = vadd.f32 %v603_v13, %v50_v8  ;;  %v53_v8 = vld [vmem:[#allocation2 + $0x70] sm:$0xff] }
  0xf4   :  { %v475_v17 = vadd.f32 %v459_v1, %v443_v11  ;;  %v413_v21 = vld [vmem:[#allocation2 + $0x8] sm:$0xff]  ;;  %v581_v24 = vpop.f32.mrf.mxu0  ;;  %v605_v25 = vpop.f32.mrf.mxu1 }
  0xf5   :  { %v421_v22 = vld [vmem:[#allocation2 + $0x48] sm:$0xff]  ;;  %v483_v26 = vmax.f32 %v467_v16, 0.0  ;;  %v436_v28 = vadd.f32 %v818_v61, %v413_v21  ;;  %396 = vst.msk [vmem:[#allocation2 + $0x18] sm:$0xff] %vm22_vm0, %v379_v19  ;;  %404 = vst.msk [vmem:[#allocation2 + $0x58] sm:$0xff] %vm22_vm0, %v387_v20  ;;  %v582_v32 = vadd.f32 %v581_v24, %v580_v14  ;;  %v606_v33 = vadd.f32 %v605_v25, %v604_v15  ;;  %v455_v15 = vld [vmem:[%s963_s3 + $0x20] sm:$0xff] }
  0xf6   :  { %v491_v27 = vmax.f32 %v475_v17, 0.0  ;;  %v444_v29 = vadd.f32 %v818_v61, %v421_v22  ;;  %v583_v34 = vpop.f32.mrf.mxu0  ;;  %v607_v35 = vpop.f32.mrf.mxu1  ;;  %v54_v20 = vld [vmem:[#allocation2 + $0x78] sm:$0xff] }
  0xf7   :  { %499 = vst.msk [vmem:[%s964_s4] sm:$0xff] %vm22_vm0, %v483_v26  ;;  %v468_v36 = vadd.f32 %v452_v18, %v436_v28  ;;  %v380_v42 = vadd.f32 %v582_v32, %v43_v30  ;;  %v388_v43 = vadd.f32 %v606_v33, %v51_v31  ;;  %v46_v18 = vld [vmem:[#allocation2 + $0x38] sm:$0xff]  ;;  %v463_v26 = vld [vmem:[%s963_s3 + $0x60] sm:$0xff] }
  0xf8   :  { %507 = vst.msk [vmem:[%s964_s4 + $0x40] sm:$0xff] %vm22_vm0, %v491_v27  ;;  %v476_v37 = vadd.f32 %v460_v23, %v444_v29  ;;  %v414_v39 = vld [vmem:[#allocation2 + $0x10] sm:$0xff]  ;;  %v584_v44 = vpop.f32.mrf.mxu0  ;;  %v608_v45 = vpop.f32.mrf.mxu1 }
  0xf9   :  { %v422_v40 = vld [vmem:[#allocation2 + $0x50] sm:$0xff]  ;;  %v484_v46 = vmax.f32 %v468_v36, 0.0  ;;  %v437_v48 = vadd.f32 %v818_v61, %v414_v39  ;;  %397 = vst.msk [vmem:[#allocation2 + $0x20] sm:$0xff] %vm22_vm0, %v380_v42  ;;  %405 = vst.msk [vmem:[#allocation2 + $0x60] sm:$0xff] %vm22_vm0, %v388_v43  ;;  %v585_v52 = vadd.f32 %v584_v44, %v583_v34  ;;  %v609_v53 = vadd.f32 %v608_v45, %v607_v35  ;;  %v456_v35 = vld [vmem:[%s963_s3 + $0x28] sm:$0xff] }
  0xfa   :  { %v492_v47 = vmax.f32 %v476_v37, 0.0  ;;  %v445_v49 = vadd.f32 %v818_v61, %v422_v40  ;;  %v586_v54 = vpop.f32.mrf.mxu0  ;;  %v610_v55 = vpop.f32.mrf.mxu1  ;;  %v457_v45 = vld [vmem:[%s963_s3 + $0x30] sm:$0xff] }
  0xfb   :  { %500 = vst.msk [vmem:[%s964_s4 + $0x8] sm:$0xff] %vm22_vm0, %v484_v46  ;;  %v469_v56 = vadd.f32 %v453_v38, %v437_v48  ;;  %v381_v63 = vadd.f32 %v585_v52, %v44_v50  ;;  %v389_v0 = vadd.f32 %v609_v53, %v52_v51  ;;  %v464_v38 = vld [vmem:[%s963_s3 + $0x68] sm:$0xff]  ;;  %v465_v48 = vld [vmem:[%s963_s3 + $0x70] sm:$0xff]  ;;  %v458_v53 = vld [vmem:[%s963_s3 + $0x38] sm:$0xff] }
  0xfc   :  { %508 = vst.msk [vmem:[%s964_s4 + $0x48] sm:$0xff] %vm22_vm0, %v492_v47  ;;  %v477_v57 = vadd.f32 %v461_v41, %v445_v49  ;;  %v415_v59 = vld [vmem:[#allocation2 + $0x18] sm:$0xff]  ;;  %v587_v1 = vpop.f32.mrf.mxu0  ;;  %v611_v2 = vpop.f32.mrf.mxu1 }
  0xfd   :  { %v423_v60 = vld [vmem:[#allocation2 + $0x58] sm:$0xff]  ;;  %v485_v3 = vmax.f32 %v469_v56, 0.0  ;;  %v438_v5 = vadd.f32 %v818_v61, %v415_v59  ;;  %398 = vst.msk [vmem:[#allocation2 + $0x28] sm:$0xff] %vm22_vm0, %v381_v63  ;;  %406 = vst.msk [vmem:[#allocation2 + $0x68] sm:$0xff] %vm22_vm0, %v389_v0  ;;  %v588_v9 = vadd.f32 %v587_v1, %v586_v54  ;;  %v612_v10 = vadd.f32 %v611_v2, %v610_v55 }
  0xfe   :  { %v493_v4 = vmax.f32 %v477_v57, 0.0  ;;  %v446_v6 = vadd.f32 %v818_v61, %v423_v60  ;;  %v589_v11 = vpop.f32.mrf.mxu0  ;;  %v613_v12 = vpop.f32.mrf.mxu1 }
  0xff   :  { %501 = vst.msk [vmem:[%s964_s4 + $0x10] sm:$0xff] %vm22_vm0, %v485_v3  ;;  %v470_v13 = vadd.f32 %v454_v58, %v438_v5  ;;  %v382_v16 = vadd.f32 %v588_v9, %v45_v7  ;;  %v390_v17 = vadd.f32 %v612_v10, %v53_v8  ;;  %v466_v58 = vld [vmem:[%s963_s3 + $0x78] sm:$0xff] }
 0x100   :  { %509 = vst.msk [vmem:[%s964_s4 + $0x50] sm:$0xff] %vm22_vm0, %v493_v4  ;;  %v478_v14 = vadd.f32 %v462_v62, %v446_v6  ;;  %v590_v19 = vpop.f32.mrf.mxu0  ;;  %v614_v21 = vpop.f32.mrf.mxu1  ;;  %v416_v24 = vld [vmem:[#allocation2 + $0x20] sm:$0xff] }
 0x101   :  { %v486_v22 = vmax.f32 %v470_v13, 0.0  ;;  %v424_v25 = vld [vmem:[#allocation2 + $0x60] sm:$0xff]  ;;  %v591_v27 = vadd.f32 %v590_v19, %v589_v11  ;;  %v615_v28 = vadd.f32 %v614_v21, %v613_v12  ;;  %v439_v29 = vadd.f32 %v818_v61, %v416_v24  ;;  %399 = vst.msk [vmem:[#allocation2 + $0x30] sm:$0xff] %vm22_vm0, %v382_v16  ;;  %407 = vst.msk [vmem:[#allocation2 + $0x70] sm:$0xff] %vm22_vm0, %v390_v17 }
 0x102   :  { %v494_v23 = vmax.f32 %v478_v14, 0.0  ;;  %v447_v30 = vadd.f32 %v818_v61, %v424_v25 }
 0x103   :  { %502 = vst.msk [vmem:[%s964_s4 + $0x18] sm:$0xff] %vm22_vm0, %v486_v22  ;;  %v383_v31 = vadd.f32 %v591_v27, %v46_v18  ;;  %v391_v32 = vadd.f32 %v615_v28, %v54_v20  ;;  %v471_v33 = vadd.f32 %v455_v15, %v439_v29 }
 0x104   :  { %510 = vst.msk [vmem:[%s964_s4 + $0x58] sm:$0xff] %vm22_vm0, %v494_v23  ;;  %v479_v34 = vadd.f32 %v463_v26, %v447_v30  ;;  %v417_v36 = vld [vmem:[#allocation2 + $0x28] sm:$0xff] }
 0x105   :  { %v425_v37 = vld [vmem:[#allocation2 + $0x68] sm:$0xff]  ;;  %400 = vst.msk [vmem:[#allocation2 + $0x38] sm:$0xff] %vm22_vm0, %v383_v31  ;;  %408 = vst.msk [vmem:[#allocation2 + $0x78] sm:$0xff] %vm22_vm0, %v391_v32  ;;  %v487_v39 = vmax.f32 %v471_v33, 0.0  ;;  %v440_v41 = vadd.f32 %v818_v61, %v417_v36 }
 0x106   :  { %v495_v40 = vmax.f32 %v479_v34, 0.0  ;;  %v448_v42 = vadd.f32 %v818_v61, %v425_v37 }
 0x107   :  { %503 = vst.msk [vmem:[%s964_s4 + $0x20] sm:$0xff] %vm22_vm0, %v487_v39  ;;  %v472_v43 = vadd.f32 %v456_v35, %v440_v41 }
 0x108   :  { %511 = vst.msk [vmem:[%s964_s4 + $0x60] sm:$0xff] %vm22_vm0, %v495_v40  ;;  %v480_v44 = vadd.f32 %v464_v38, %v448_v42  ;;  %v418_v46 = vld [vmem:[#allocation2 + $0x30] sm:$0xff] }
 0x109   :  { %v426_v47 = vld [vmem:[#allocation2 + $0x70] sm:$0xff]  ;;  %v488_v49 = vmax.f32 %v472_v43, 0.0  ;;  %v441_v51 = vadd.f32 %v818_v61, %v418_v46 }
 0x10a   :  { %v496_v50 = vmax.f32 %v480_v44, 0.0  ;;  %v449_v52 = vadd.f32 %v818_v61, %v426_v47 }
 0x10b   :  { %504 = vst.msk [vmem:[%s964_s4 + $0x28] sm:$0xff] %vm22_vm0, %v488_v49  ;;  %v473_v54 = vadd.f32 %v457_v45, %v441_v51 }
 0x10c   :  { %512 = vst.msk [vmem:[%s964_s4 + $0x68] sm:$0xff] %vm22_vm0, %v496_v50  ;;  %v481_v55 = vadd.f32 %v465_v48, %v449_v52  ;;  %v419_v56 = vld [vmem:[#allocation2 + $0x38] sm:$0xff] }
 0x10d   :  { %v427_v57 = vld [vmem:[#allocation2 + $0x78] sm:$0xff]  ;;  %v442_v59 = vadd.f32 %v818_v61, %v419_v56  ;;  %v489_v62 = vmax.f32 %v473_v54, 0.0 }
 0x10e   :  { %v450_v60 = vadd.f32 %v818_v61, %v427_v57  ;;  %v497_v63 = vmax.f32 %v481_v55, 0.0 }
 0x10f   :  { %v474_v0 = vadd.f32 %v458_v53, %v442_v59  ;;  %505 = vst.msk [vmem:[%s964_s4 + $0x30] sm:$0xff] %vm22_vm0, %v489_v62 }
 0x110   :  { %v482_v1 = vadd.f32 %v466_v58, %v450_v60  ;;  %513 = vst.msk [vmem:[%s964_s4 + $0x70] sm:$0xff] %vm22_vm0, %v497_v63 }
 0x111   :  { %v490_v2 = vmax.f32 %v474_v0, 0.0 }
 0x112   :  { %v498_v3 = vmax.f32 %v482_v1, 0.0 }
 0x113   :  { %506 = vst.msk [vmem:[%s964_s4 + $0x38] sm:$0xff] %vm22_vm0, %v490_v2 }
 0x114   :  { %514 = vst.msk [vmem:[%s964_s4 + $0x78] sm:$0xff] %vm22_vm0, %v498_v3 }

// kernel: _lambda_.23
= control target key start
LH: loop header
LB: loop body
LE: loop exit
PB: predicated region body
PF: predicated region fallthrough
CT: control target
= control target key end

     0   :  { %vm19_vm0 = vcmask 261120   ;;  %v356_v20 = vmov 0.0   ;;  %s464_s1 = inlined_call_operand.vmem [shape: bf16[256,32], index: 1, kind: input, shape index: {}]   ;;  %s465_s0 = inlined_call_operand.vmem [shape: bf16[32,256], index: 0, kind: input, shape index: {}]   ;;  %s466_s2 = inlined_call_operand.vmem [shape: f32[1,32], index: 2, kind: input, shape index: {}]   ;;  %s467_s3 = inlined_call_operand.vmem [shape: f32[32,32], index: 3, kind: output, shape index: {}]  }
   0x1   :  { %v334_v0 = vld [vmem:[%s464_s1 + $0x78] sm:$0xff]   ;;  %v336_v2 = vld [vmem:[%s464_s1 + $0x70] sm:$0xff]   ;;  %v338_v4 = vld [vmem:[%s464_s1 + $0x68] sm:$0xff]   ;;  %20 = vst.msk [vmem:[#allocation2] sm:$0xff] %vm19_vm0, %v356_v20 }
   0x2   :  { %v335_v1 = vld [vmem:[%s464_s1 + $0x38] sm:$0xff]   ;;  %289 = vmatprep.subr.bf16.mxu0 %v334_v0  ;;  %317 = vmatprep.subr.bf16.mxu1 %v334_v0  ;;  %v337_v3 = vld [vmem:[%s464_s1 + $0x30] sm:$0xff]   ;;  %v339_v5 = vld [vmem:[%s464_s1 + $0x28] sm:$0xff]   ;;  %21 = vst.msk [vmem:[#allocation2 + $0x8] sm:$0xff] %vm19_vm0, %v356_v20 }
   0x3   :  { %290 = vmatpush3.bf16.msra.mxu0 %v335_v1  ;;  %325 = vmatpush3.bf16.msra.mxu1 %v335_v1  ;;  %v340_v6 = vld [vmem:[%s464_s1 + $0x60] sm:$0xff]   ;;  %v342_v8 = vld [vmem:[%s464_s1 + $0x58] sm:$0xff]   ;;  %v344_v10 = vld [vmem:[%s464_s1 + $0x50] sm:$0xff]   ;;  %22 = vst.msk [vmem:[#allocation2 + $0x10] sm:$0xff] %vm19_vm0, %v356_v20 }
   0x4   :  { %291 = vmatprep.subr.bf16.mxu0 %v336_v2  ;;  %318 = vmatprep.subr.bf16.mxu1 %v336_v2  ;;  %v341_v7 = vld [vmem:[%s464_s1 + $0x20] sm:$0xff]   ;;  %v343_v9 = vld [vmem:[%s464_s1 + $0x18] sm:$0xff]   ;;  %v345_v13 = vld [vmem:[%s464_s1 + $0x10] sm:$0xff]   ;;  %23 = vst.msk [vmem:[#allocation2 + $0x18] sm:$0xff] %vm19_vm0, %v356_v20 }
   0x5   :  { %v352_v11 = vld [vmem:[%s465_s0 + $0x4] ss:$8 sps:$4 sm:$0xff]   ;;  %v355_v12 = vld [vmem:[%s465_s0 + $0x14] ss:$8 sps:$4 sm:$0xff]   ;;  %v350_v18 = vld [vmem:[%s465_s0] ss:$8 sps:$4 sm:$0xff]  }
   0x6   :  { %v346_v14 = vld [vmem:[%s464_s1 + $0x48] sm:$0xff]   ;;  %212 = vmatprep.mubr.bf16.mxu0 %v352_v11  ;;  %220 = vmatprep.mubr.bf16.mxu1 %v355_v12  ;;  %v348_v16 = vld [vmem:[%s464_s1 + $0x40] sm:$0xff]   ;;  %v353_v19 = vld [vmem:[%s465_s0 + $0x10] ss:$8 sps:$4 sm:$0xff]  }
   0x7   :  { %292 = vmatpush3.bf16.msra.mxu0 %v337_v3  ;;  %326 = vmatpush3.bf16.msra.mxu1 %v337_v3  ;;  %v347_v15 = vld [vmem:[%s464_s1 + $0x8] sm:$0xff]   ;;  %v349_v17 = vld [vmem:[%s464_s1] sm:$0xff]  }
   0x8   :  { %293 = vmatprep.subr.bf16.mxu0 %v338_v4  ;;  %319 = vmatprep.subr.bf16.mxu1 %v338_v4  ;;  %v24_v23 = vld [vmem:[#allocation2] sm:$0xff] }
   0x9   :  { %v25_v33 = vld [vmem:[#allocation2 + $0x8] sm:$0xff]  ;;  %v288_v41 = vld [vmem:[%s466_s2] ss:$0 sm:$0xff] }
   0xa   :  { %v26_v25 = vld [vmem:[#allocation2 + $0x10] sm:$0xff] }
   0xb   :  { %294 = vmatpush3.bf16.msra.mxu0 %v339_v5  ;;  %327 = vmatpush3.bf16.msra.mxu1 %v339_v5  ;;  %v27_v35 = vld [vmem:[#allocation2 + $0x18] sm:$0xff] }
   0xc   :  { %295 = vmatprep.subr.bf16.mxu0 %v340_v6  ;;  %320 = vmatprep.subr.bf16.mxu1 %v340_v6 }
   0xf   :  { %296 = vmatpush3.bf16.msra.mxu0 %v341_v7  ;;  %328 = vmatpush3.bf16.msra.mxu1 %v341_v7 }
  0x10   :  { %297 = vmatprep.subr.bf16.mxu0 %v342_v8  ;;  %321 = vmatprep.subr.bf16.mxu1 %v342_v8 }
  0x13   :  { %298 = vmatpush3.bf16.msra.mxu0 %v343_v9  ;;  %329 = vmatpush3.bf16.msra.mxu1 %v343_v9 }
  0x14   :  { %299 = vmatprep.subr.bf16.mxu0 %v344_v10  ;;  %322 = vmatprep.subr.bf16.mxu1 %v344_v10 }
  0x17   :  { %300 = vmatpush3.bf16.msra.mxu0 %v345_v13  ;;  %330 = vmatpush3.bf16.msra.mxu1 %v345_v13 }
  0x18   :  { %301 = vmatprep.subr.bf16.mxu0 %v346_v14  ;;  %323 = vmatprep.subr.bf16.mxu1 %v346_v14 }
  0x1b   :  { %302 = vmatpush3.bf16.msra.mxu0 %v347_v15  ;;  %331 = vmatpush3.bf16.msra.mxu1 %v347_v15 }
  0x1c   :  { %303 = vmatprep.subr.bf16.mxu0 %v348_v16  ;;  %324 = vmatprep.subr.bf16.mxu1 %v348_v16 }
  0x1f   :  { %304 = vmatpush3.bf16.msra.mxu0 %v349_v17  ;;  %332 = vmatpush3.bf16.msra.mxu1 %v349_v17 }
  0x22   :  { %213 = vmatmul.mubr.bf16.vlgmr.msra.gmra.mxu0 %v350_v18  ;;  %221 = vmatmul.mubr.bf16.vlgmr.msra.gmra.mxu1 %v353_v19 }
  0xe2   :  { %v305_v21 = vpop.f32.mrf.mxu0  ;;  %v311_v22 = vpop.f32.mrf.mxu1 }
  0xe4   :  { %v306_v24 = vpop.f32.mrf.mxu0  ;;  %v312_v26 = vpop.f32.mrf.mxu1 }
  0xe5   :  { %v307_v27 = vadd.f32 %v306_v24, %v305_v21  ;;  %v313_v28 = vadd.f32 %v312_v26, %v311_v22 }
  0xe6   :  { %v308_v29 = vpop.f32.mrf.mxu0  ;;  %v314_v30 = vpop.f32.mrf.mxu1 }
  0xe7   :  { %v229_v31 = vadd.f32 %v307_v27, %v24_v23  ;;  %v231_v32 = vadd.f32 %v313_v28, %v26_v25 }
  0xe8   :  { %v309_v34 = vpop.f32.mrf.mxu0  ;;  %v315_v36 = vpop.f32.mrf.mxu1 }
  0xe9   :  { %234 = vst.msk [vmem:[#allocation2] sm:$0xff] %vm19_vm0, %v229_v31  ;;  %236 = vst.msk [vmem:[#allocation2 + $0x10] sm:$0xff] %vm19_vm0, %v231_v32  ;;  %v310_v37 = vadd.f32 %v309_v34, %v308_v29  ;;  %v316_v38 = vadd.f32 %v315_v36, %v314_v30 }
  0xeb   :  { %v230_v39 = vadd.f32 %v310_v37, %v25_v33  ;;  %v232_v40 = vadd.f32 %v316_v38, %v27_v35 }
  0xed   :  { %235 = vst.msk [vmem:[#allocation2 + $0x8] sm:$0xff] %vm19_vm0, %v230_v39  ;;  %237 = vst.msk [vmem:[#allocation2 + $0x18] sm:$0xff] %vm19_vm0, %v232_v40 }
  0xf0   :  { %v241_v42 = vld [vmem:[#allocation2] sm:$0xff]  ;;  %v243_v43 = vld [vmem:[#allocation2 + $0x10] sm:$0xff] }
  0xf1   :  { %v252_v44 = vadd.f32 %v288_v41, %v241_v42  ;;  %v254_v45 = vadd.f32 %v288_v41, %v243_v43 }
  0xf3   :  { %v256_v46 = vmax.f32 %v252_v44, 0.0  ;;  %v258_v47 = vmax.f32 %v254_v45, 0.0 }
  0xf4   :  { %v242_v48 = vld [vmem:[#allocation2 + $0x8] sm:$0xff]  ;;  %v244_v49 = vld [vmem:[#allocation2 + $0x18] sm:$0xff] }
  0xf5   :  { %260 = vst.msk [vmem:[%s467_s3] sm:$0xff] %vm19_vm0, %v256_v46  ;;  %262 = vst.msk [vmem:[%s467_s3 + $0x10] sm:$0xff] %vm19_vm0, %v258_v47  ;;  %v253_v50 = vadd.f32 %v288_v41, %v242_v48  ;;  %v255_v51 = vadd.f32 %v288_v41, %v244_v49 }
  0xf7   :  { %v257_v52 = vmax.f32 %v253_v50, 0.0  ;;  %v259_v53 = vmax.f32 %v255_v51, 0.0 }
  0xf9   :  { %261 = vst.msk [vmem:[%s467_s3 + $0x8] sm:$0xff] %vm19_vm0, %v257_v52  ;;  %263 = vst.msk [vmem:[%s467_s3 + $0x18] sm:$0xff] %vm19_vm0, %v259_v53 }

// kernel: _lambda_.24
= control target key start
LH: loop header
LB: loop body
LE: loop exit
PB: predicated region body
PF: predicated region fallthrough
CT: control target
= control target key end

     0   :  { %vm19_vm0 = vcmask 261120   ;;  %v244_v1 = vmov 0.0   ;;  %s322_s1 = inlined_call_operand.vmem [shape: bf16[128,32], index: 1, kind: input, shape index: {}]   ;;  %s323_s0 = inlined_call_operand.vmem [shape: bf16[32,128], index: 0, kind: input, shape index: {}]   ;;  %s324_s2 = inlined_call_operand.vmem [shape: f32[1,32], index: 2, kind: input, shape index: {}]   ;;  %s325_s3 = inlined_call_operand.vmem [shape: f32[32,32], index: 3, kind: output, shape index: {}]  }
   0x1   :  { %v234_v0 = vld [vmem:[%s322_s1 + $0x38] sm:$0xff]   ;;  %22 = vst.msk [vmem:[#allocation2 + $0x10] sm:$0xff] %vm19_vm0, %v244_v1  ;;  %20 = vst.msk [vmem:[#allocation2] sm:$0xff] %vm19_vm0, %v244_v1  ;;  %v235_v2 = vld [vmem:[%s322_s1 + $0x30] sm:$0xff]  }
   0x2   :  { %21 = vst.msk [vmem:[#allocation2 + $0x8] sm:$0xff] %vm19_vm0, %v244_v1  ;;  %23 = vst.msk [vmem:[#allocation2 + $0x18] sm:$0xff] %vm19_vm0, %v244_v1  ;;  %213 = vmatprep.subr.bf16.mxu0 %v234_v0  ;;  %v236_v3 = vld [vmem:[%s322_s1 + $0x28] sm:$0xff]   ;;  %v237_v4 = vld [vmem:[%s322_s1 + $0x20] sm:$0xff]  }
   0x3   :  { %214 = vmatpush3.bf16.msra.mxu0 %v234_v0  ;;  %v242_v5 = vld [vmem:[%s323_s0] sm:$0xff]   ;;  %v238_v6 = vld [vmem:[%s322_s1 + $0x18] sm:$0xff]   ;;  %v239_v7 = vld [vmem:[%s322_s1 + $0x10] sm:$0xff]  }
   0x4   :  { %215 = vmatprep.subr.bf16.mxu0 %v235_v2  ;;  %229 = vmatprep.mubr.bf16.mxu0 %v242_v5  ;;  %v240_v8 = vld [vmem:[%s322_s1 + $0x8] sm:$0xff]   ;;  %v241_v9 = vld [vmem:[%s322_s1] sm:$0xff]  }
   0x5   :  { %v243_v10 = vld [vmem:[%s323_s0 + $0x8] sm:$0xff]   ;;  %v202_v23 = vld [vmem:[%s324_s2] ss:$0 sm:$0xff] }
   0x7   :  { %216 = vmatpush3.bf16.msra.mxu0 %v235_v2 }
   0x8   :  { %217 = vmatprep.subr.bf16.mxu0 %v236_v3  ;;  %v26_v11 = vld [vmem:[#allocation2 + $0x10] sm:$0xff]  ;;  %v24_v13 = vld [vmem:[#allocation2] sm:$0xff] }
   0x9   :  { %v27_v16 = vld [vmem:[#allocation2 + $0x18] sm:$0xff]  ;;  %v25_v19 = vld [vmem:[#allocation2 + $0x8] sm:$0xff] }
   0xb   :  { %218 = vmatpush3.bf16.msra.mxu0 %v236_v3 }
   0xc   :  { %219 = vmatprep.subr.bf16.mxu0 %v237_v4 }
   0xf   :  { %220 = vmatpush3.bf16.msra.mxu0 %v237_v4 }
  0x10   :  { %221 = vmatprep.subr.bf16.mxu0 %v238_v6 }
  0x13   :  { %222 = vmatpush3.bf16.msra.mxu0 %v238_v6 }
  0x14   :  { %223 = vmatprep.subr.bf16.mxu0 %v239_v7 }
  0x17   :  { %224 = vmatpush3.bf16.msra.mxu0 %v239_v7 }
  0x18   :  { %225 = vmatprep.subr.bf16.mxu0 %v240_v8 }
  0x1b   :  { %226 = vmatpush3.bf16.msra.mxu0 %v240_v8 }
  0x1c   :  { %227 = vmatprep.subr.bf16.mxu0 %v241_v9 }
  0x1f   :  { %228 = vmatpush3.bf16.msra.mxu0 %v241_v9 }
  0x22   :  { %230 = vmatmul.mubr.bf16.vlgmr.msra.gmra.mxu0 %v243_v10 }
  0xe2   :  { %v231_v12 = vpop.f32.mrf.mxu0 }
  0xe3   :  { %v159_v14 = vadd.f32 %v231_v12, %v26_v11 }
  0xe4   :  { %v142_v15 = vpop.f32.mrf.mxu0 }
  0xe5   :  { %164 = vst.msk [vmem:[#allocation2 + $0x10] sm:$0xff] %vm19_vm0, %v159_v14  ;;  %v157_v17 = vadd.f32 %v142_v15, %v24_v13 }
  0xe6   :  { %v232_v18 = vpop.f32.mrf.mxu0 }
  0xe7   :  { %162 = vst.msk [vmem:[#allocation2] sm:$0xff] %vm19_vm0, %v157_v17  ;;  %v160_v20 = vadd.f32 %v232_v18, %v27_v16 }
  0xe8   :  { %v145_v21 = vpop.f32.mrf.mxu0 }
  0xe9   :  { %165 = vst.msk [vmem:[#allocation2 + $0x18] sm:$0xff] %vm19_vm0, %v160_v20  ;;  %v158_v22 = vadd.f32 %v145_v21, %v25_v19 }
  0xeb   :  { %163 = vst.msk [vmem:[#allocation2 + $0x8] sm:$0xff] %vm19_vm0, %v158_v22 }
  0xec   :  { %v171_v24 = vld [vmem:[#allocation2 + $0x10] sm:$0xff] }
  0xed   :  { %v182_v25 = vadd.f32 %v202_v23, %v171_v24 }
  0xee   :  { %v169_v26 = vld [vmem:[#allocation2] sm:$0xff] }
  0xef   :  { %186 = vst.msk [vmem:[%s325_s3 + $0x10] sm:$0xff] %vm19_vm0, %v182_v25  ;;  %v180_v27 = vadd.f32 %v202_v23, %v169_v26 }
  0xf0   :  { %v172_v28 = vld [vmem:[#allocation2 + $0x18] sm:$0xff] }
  0xf1   :  { %184 = vst.msk [vmem:[%s325_s3] sm:$0xff] %vm19_vm0, %v180_v27  ;;  %v183_v29 = vadd.f32 %v202_v23, %v172_v28 }
  0xf2   :  { %v170_v30 = vld [vmem:[#allocation2 + $0x8] sm:$0xff] }
  0xf3   :  { %187 = vst.msk [vmem:[%s325_s3 + $0x18] sm:$0xff] %vm19_vm0, %v183_v29  ;;  %v181_v31 = vadd.f32 %v202_v23, %v170_v30 }
  0xf5   :  { %185 = vst.msk [vmem:[%s325_s3 + $0x8] sm:$0xff] %vm19_vm0, %v181_v31 }

// kernel: _lambda_.26
= control target key start
LH: loop header
LB: loop body
LE: loop exit
PB: predicated region body
PF: predicated region fallthrough
CT: control target
= control target key end

     0   :  { %s696_s12 = smov 0   ;;  %s698_s13 = smov 0   ;;  %s803_s0 = inlined_call_operand.vmem [shape: bf16[32,384], index: 0, kind: input, shape index: {}]   ;;  %s804_s1 = inlined_call_operand.vmem [shape: bf16[384,32], index: 1, kind: input, shape index: {}]   ;;  %s805_s2 = inlined_call_operand.vmem [shape: f32[1,32], index: 2, kind: input, shape index: {}]   ;;  %s806_s3 = inlined_call_operand.vmem [shape: f32[32,32], index: 3, kind: output, shape index: {}]  }
   0x1   :  { %s700_s14 = smov 0   ;;  %s702_s15 = smov 0  }
   0x2   :  { %s704_s16 = smov 0  }
   0x3 LB: > { %s22_s17 = sadd.s32 1, %s669_s15  ;;  %p41_p1 = scmp.ne.s32.totalorder %s661_s13, %s657_s12  ;;  %s673_s16 = sphi %s704_s16, %s13_s16   ;;  %s669_s15 = sphi %s702_s15, %s810_s15   ;;  %s665_s14 = sphi %s700_s14, %s809_s14   ;;  %s661_s13 = sphi %s698_s13, %s808_s13   ;;  %s657_s12 = sphi %s696_s12, %s807_s12  }
   0x4   : > { %p23_p0 = scmp.ge.s32.totalorder %s22_s17, 3  ;;  %p42_p2 = scmp.eq.s32.totalorder %s673_s16, 0 }
   0x5   : > { %s34_s19 = sadd.s32 1, %s661_s13  ;;  %p530_p5 = scmp.ge.s32.totalorder %s673_s16, 3 }
   0x6   : > { %s812_s17 = smov (%p23_p0, %s22_s17), 0  ;;  %p43_p3 = por %p42_p2, %p41_p1 }
   0x7   : > { %s30_s18 = ssub.s32 %s669_s15, %s812_s17  ;;  %143 = sbr.rel (%p530_p5) target bundleno = 18 (0x12), region = 20 }
   0x8   : > { %p32_p4 = scmp.eq.s32.totalorder %s30_s18, 0 }
   0xa   : > { %s731_s20 = scalar_select %p32_p4, %s661_s13, %s34_s19  }
   0xc   : > { %146 = sbr.rel (!%p43_p3) target bundleno = 18 (0x12), region = 24  ;;  %s148_s21 = sand.u32 (%p43_p3), 1, %s661_s13  }
   0xd   : > { %s532_s22 = sshll.u32 (%p43_p3), %s669_s15, 2  ;;  %s531_s23 = sshll.u32 (%p43_p3), %s148_s21, 4 }
   0xe   : > { %s155_s26 = scalar_lea.vmem (%p43_p3), %s803_s0, %s532_s22  ;;  %s150_s27 = scalar_lea.vmem (%p43_p3), [#allocation3], %s531_s23 }
   0xf   : > { %v172_v0 = vld [vmem:[%s155_s26] sm:$0xf] (%p43_p3)  ;;  %v174_v1 = vld [vmem:[%s155_s26 + $0xc] sm:$0xf] (%p43_p3)  ;;  %v176_v2 = vld [vmem:[%s155_s26 + $0x18] sm:$0xf] (%p43_p3) }
  0x10   : > { %173 = vst [vmem:[%s150_s27] sm:$0xf] (%p43_p3), %v172_v0  ;;  %175 = vst [vmem:[%s150_s27 + $0x4] sm:$0xf] (%p43_p3), %v174_v1  ;;  %v178_v3 = vld [vmem:[%s155_s26 + $0x24] sm:$0xf] (%p43_p3) }
  0x11   : > { %177 = vst [vmem:[%s150_s27 + $0x8] sm:$0xf] %v176_v2  ;;  %179 = vst [vmem:[%s150_s27 + $0xc] sm:$0xf] %v178_v3 }
  0x12 PF: > { %p533_p6 = scmp.ge.s32.totalorder %s673_s16, 1  ;;  %p219_p7 = scmp.lt.s32.totalorder %s673_s16, 4 }
  0x14   : > { %p220_p8 = pnand %p533_p6, %p219_p7 }
  0x15   : > { %s226_s28 = sand.u32 (!%p220_p8), 1, %s657_s12   ;;  %s535_s29 = sshll.u32 (!%p220_p8), %s665_s14, 4 }
  0x16   : > { %223 = sbr.rel (%p220_p8) target bundleno = 282 (0x11a), region = 69  ;;  %s743_s30 = sshll.u32 (!%p220_p8), %s226_s28, 4 }
  0x17   : > { %p256_p9 = scmp.lt.s32.totalorder (!%p220_p8), %s535_s29, 47  ;;  %s228_s8 = scalar_lea.vmem (!%p220_p8), [#allocation3], %s743_s30 }
  0x18   : > { %p537_p10 = scmp.ne.s32.totalorder (!%p220_p8), %s665_s14, 0 }
  0x1b   : > { %s814_s29 = smov (!%p256_p9, %s535_s29), 47  ;;  %271 = sbr.rel (%p537_p10) target bundleno = 35 (0x23), region = 77 }
  0x1c   : > { %s536_s4 = sshll.u32 %s814_s29, 2 }
  0x1d   : > { %s748_s7 = scalar_lea.vmem %s804_s1, %s536_s4 }
  0x20   : > { %vm272_vm0 = vcmask 261120   ;;  %v675_v4 = vmov 0.0  }
  0x21   : > { %273 = vst.msk [vmem:[#allocation2] sm:$0xff] %vm272_vm0, %v675_v4  ;;  %274 = vst.msk [vmem:[#allocation2 + $0x8] sm:$0xff] %vm272_vm0, %v675_v4 }
  0x22   : > { %275 = vst.msk [vmem:[#allocation2 + $0x10] sm:$0xff] %vm272_vm0, %v675_v4  ;;  %276 = vst.msk [vmem:[#allocation2 + $0x18] sm:$0xff] %vm272_vm0, %v675_v4 }
  0x23 PF: > { %v625_v5 = vld [vmem:[%s748_s7 + $0x38] sm:$0xff]   ;;  %v626_v6 = vld [vmem:[%s748_s7 + $0x30] sm:$0xff]   ;;  %v627_v7 = vld [vmem:[%s748_s7 + $0x28] sm:$0xff]   ;;  %vm414_vm1 = vcmask 261120   ;;  %p548_p11 = scmp.ne.s32.totalorder %s665_s14, 2 }
  0x24   : > { %564 = vmatprep.subr.bf16.mxu0 %v625_v5  ;;  %v628_v8 = vld [vmem:[%s748_s7 + $0x20] sm:$0xff]   ;;  %v629_v10 = vld [vmem:[%s748_s7 + $0x18] sm:$0xff]   ;;  %v630_v11 = vld [vmem:[%s748_s7 + $0x10] sm:$0xff]  }
  0x25   : > { %565 = vmatpush3.bf16.msra.mxu0 %v625_v5  ;;  %v633_v9 = vld [vmem:[%s228_s8] sm:$0xff]   ;;  %v631_v12 = vld [vmem:[%s748_s7 + $0x8] sm:$0xff]  }
  0x26   : > { %566 = vmatprep.subr.bf16.mxu0 %v626_v6  ;;  %580 = vmatprep.mubr.bf16.mxu0 %v633_v9  ;;  %v632_v13 = vld [vmem:[%s748_s7] sm:$0xff]   ;;  %v634_v14 = vld [vmem:[%s228_s8 + $0x8] sm:$0xff]  }
  0x28   : > { %v277_v17 = vld [vmem:[#allocation2] sm:$0xff]  ;;  %v278_v23 = vld [vmem:[#allocation2 + $0x8] sm:$0xff] }
  0x29   : > { %567 = vmatpush3.bf16.msra.mxu0 %v626_v6  ;;  %v279_v15 = vld [vmem:[#allocation2 + $0x10] sm:$0xff]  ;;  %v280_v20 = vld [vmem:[#allocation2 + $0x18] sm:$0xff] }
  0x2a   : > { %568 = vmatprep.subr.bf16.mxu0 %v627_v7 }
  0x2d   : > { %569 = vmatpush3.bf16.msra.mxu0 %v627_v7 }
  0x2e   : > { %570 = vmatprep.subr.bf16.mxu0 %v628_v8 }
  0x31   : > { %571 = vmatpush3.bf16.msra.mxu0 %v628_v8 }
  0x32   : > { %572 = vmatprep.subr.bf16.mxu0 %v629_v10 }
  0x35   : > { %573 = vmatpush3.bf16.msra.mxu0 %v629_v10 }
  0x36   : > { %574 = vmatprep.subr.bf16.mxu0 %v630_v11 }
  0x39   : > { %575 = vmatpush3.bf16.msra.mxu0 %v630_v11 }
  0x3a   : > { %576 = vmatprep.subr.bf16.mxu0 %v631_v12 }
  0x3d   : > { %577 = vmatpush3.bf16.msra.mxu0 %v631_v12 }
  0x3e   : > { %578 = vmatprep.subr.bf16.mxu0 %v632_v13 }
  0x41   : > { %579 = vmatpush3.bf16.msra.mxu0 %v632_v13 }
  0x44   : > { %581 = vmatmul.mubr.bf16.vlgmr.msra.gmra.mxu0 %v634_v14 }
 0x104   : > { %v582_v16 = vpop.f32.mrf.mxu0 }
 0x105   : > { %v412_v18 = vadd.f32 %v582_v16, %v279_v15 }
 0x106   : > { %v395_v19 = vpop.f32.mrf.mxu0 }
 0x107   : > { %417 = vst.msk [vmem:[#allocation2 + $0x10] sm:$0xff] %vm414_vm1, %v412_v18  ;;  %v410_v21 = vadd.f32 %v395_v19, %v277_v17 }
 0x108   : > { %v583_v22 = vpop.f32.mrf.mxu0 }
 0x109   : > { %415 = vst.msk [vmem:[#allocation2] sm:$0xff] %vm414_vm1, %v410_v21  ;;  %v413_v24 = vadd.f32 %v583_v22, %v280_v20  ;;  %422 = sbr.rel (%p548_p11) target bundleno = 282 (0x11a), region = 81 }
 0x10a   : > { %v398_v25 = vpop.f32.mrf.mxu0 }
 0x10b   : > { %418 = vst.msk [vmem:[#allocation2 + $0x18] sm:$0xff] %vm414_vm1, %v413_v24  ;;  %v411_v26 = vadd.f32 %v398_v25, %v278_v23 }
 0x10d   : > { %416 = vst.msk [vmem:[#allocation2 + $0x8] sm:$0xff] %vm414_vm1, %v411_v26 }
 0x10e   : > { %v549_v28 = vld [vmem:[%s805_s2] ss:$0 sm:$0xff]  ;;  %v425_v32 = vld [vmem:[#allocation2 + $0x10] sm:$0xff] }
 0x10f   : > { %v436_v34 = vadd.f32 %v549_v28, %v425_v32 }
 0x110   : > { %v423_v27 = vld [vmem:[#allocation2] sm:$0xff] }
 0x111   : > { %v434_v30 = vadd.f32 %v549_v28, %v423_v27  ;;  %v440_v38 = vmax.f32 %v436_v34, 0.0 }
 0x112   : > { %v426_v33 = vld [vmem:[#allocation2 + $0x18] sm:$0xff] }
 0x113   : > { %v437_v35 = vadd.f32 %v549_v28, %v426_v33  ;;  %v438_v36 = vmax.f32 %v434_v30, 0.0  ;;  %444 = vst.msk [vmem:[%s806_s3 + $0x10] sm:$0xff] %vm414_vm1, %v440_v38 }
 0x114   : > { %v424_v29 = vld [vmem:[#allocation2 + $0x8] sm:$0xff] }
 0x115   : > { %v435_v31 = vadd.f32 %v549_v28, %v424_v29  ;;  %v441_v39 = vmax.f32 %v437_v35, 0.0  ;;  %442 = vst.msk [vmem:[%s806_s3] sm:$0xff] %vm414_vm1, %v438_v36 }
 0x117   : > { %v439_v37 = vmax.f32 %v435_v31, 0.0  ;;  %445 = vst.msk [vmem:[%s806_s3 + $0x18] sm:$0xff] %vm414_vm1, %v441_v39 }
 0x119   : > { %443 = vst.msk [vmem:[%s806_s3 + $0x8] sm:$0xff] %vm414_vm1, %v439_v37 }
 0x11a PF: > { %s13_s16 = sadd.s32 1, %s673_s16   ;;  %s807_s12 = smov %s661_s13 }
 0x11b   : > { %p10_p12 = scmp.ge.s32.totalorder %s13_s16, 5   ;;  %s808_s13 = smov %s731_s20 }
 0x11c   : > { %s809_s14 = smov %s669_s15  ;;  %s810_s15 = smov %s812_s17 }
 0x11d   :  { %12 = sbr.rel (!%p10_p12) target bundleno = 3 (0x3), region = 119 }

// kernel: _lambda_.25
= control target key start
LH: loop header
LB: loop body
LE: loop exit
PB: predicated region body
PF: predicated region fallthrough
CT: control target
= control target key end

     0   :  { %s774_s15 = smov 0   ;;  %s776_s16 = smov 0   ;;  %s893_s0 = inlined_call_operand.vmem [shape: bf16[32,384], index: 0, kind: input, shape index: {}]   ;;  %s894_s1 = inlined_call_operand.vmem [shape: bf16[384,32], index: 1, kind: input, shape index: {}]   ;;  %s895_s2 = inlined_call_operand.vmem [shape: f32[1,32], index: 2, kind: input, shape index: {}]   ;;  %s896_s3 = inlined_call_operand.vmem [shape: f32[32,32], index: 3, kind: input, shape index: {}]   ;;  %s897_s4 = inlined_call_operand.vmem [shape: f32[32,32], index: 4, kind: output, shape index: {}]  }
   0x1   :  { %s778_s17 = smov 0   ;;  %s780_s18 = smov 0  }
   0x2   :  { %s782_s19 = smov 0  }
   0x3 LB: > { %s23_s20 = sadd.s32 1, %s742_s18  ;;  %p42_p1 = scmp.ne.s32.totalorder %s734_s16, %s730_s15  ;;  %s746_s19 = sphi %s782_s19, %s14_s19   ;;  %s742_s18 = sphi %s780_s18, %s901_s18   ;;  %s738_s17 = sphi %s778_s17, %s900_s17   ;;  %s734_s16 = sphi %s776_s16, %s899_s16   ;;  %s730_s15 = sphi %s774_s15, %s898_s15  }
   0x4   : > { %p24_p0 = scmp.ge.s32.totalorder %s23_s20, 3  ;;  %p43_p2 = scmp.eq.s32.totalorder %s746_s19, 0 }
   0x5   : > { %s35_s22 = sadd.s32 1, %s734_s16  ;;  %p603_p5 = scmp.ge.s32.totalorder %s746_s19, 3 }
   0x6   : > { %s903_s20 = smov (%p24_p0, %s23_s20), 0  ;;  %p44_p3 = por %p43_p2, %p42_p1 }
   0x7   : > { %s31_s21 = ssub.s32 %s742_s18, %s903_s20  ;;  %179 = sbr.rel (%p603_p5) target bundleno = 18 (0x12), region = 24 }
   0x8   : > { %p33_p4 = scmp.eq.s32.totalorder %s31_s21, 0 }
   0xa   : > { %s809_s23 = scalar_select %p33_p4, %s734_s16, %s35_s22  }
   0xc   : > { %182 = sbr.rel (!%p44_p3) target bundleno = 18 (0x12), region = 28  ;;  %s184_s24 = sand.u32 (%p44_p3), 1, %s734_s16  }
   0xd   : > { %s605_s25 = sshll.u32 (%p44_p3), %s742_s18, 2  ;;  %s604_s26 = sshll.u32 (%p44_p3), %s184_s24, 4 }
   0xe   : > { %s191_s29 = scalar_lea.vmem (%p44_p3), %s893_s0, %s605_s25  ;;  %s186_s30 = scalar_lea.vmem (%p44_p3), [#allocation3], %s604_s26 }
   0xf   : > { %v208_v0 = vld [vmem:[%s191_s29] sm:$0xf] (%p44_p3)  ;;  %v210_v1 = vld [vmem:[%s191_s29 + $0xc] sm:$0xf] (%p44_p3)  ;;  %v212_v2 = vld [vmem:[%s191_s29 + $0x18] sm:$0xf] (%p44_p3) }
  0x10   : > { %209 = vst [vmem:[%s186_s30] sm:$0xf] (%p44_p3), %v208_v0  ;;  %211 = vst [vmem:[%s186_s30 + $0x4] sm:$0xf] (%p44_p3), %v210_v1  ;;  %v214_v3 = vld [vmem:[%s191_s29 + $0x24] sm:$0xf] (%p44_p3) }
  0x11   : > { %213 = vst [vmem:[%s186_s30 + $0x8] sm:$0xf] %v212_v2  ;;  %215 = vst [vmem:[%s186_s30 + $0xc] sm:$0xf] %v214_v3 }
  0x12 PF: > { %p606_p6 = scmp.ge.s32.totalorder %s746_s19, 1  ;;  %p255_p7 = scmp.lt.s32.totalorder %s746_s19, 4 }
  0x14   : > { %p256_p8 = pnand %p606_p6, %p255_p7 }
  0x15   : > { %s262_s5 = sand.u32 (!%p256_p8), 1, %s730_s15   ;;  %s608_s6 = sshll.u32 (!%p256_p8), %s738_s17, 4 }
  0x16   : > { %259 = sbr.rel (%p256_p8) target bundleno = 284 (0x11c), region = 73  ;;  %s821_s7 = sshll.u32 (!%p256_p8), %s262_s5, 4 }
  0x17   : > { %p299_p9 = scmp.lt.s32.totalorder (!%p256_p8), %s608_s6, 47  ;;  %s264_s12 = scalar_lea.vmem (!%p256_p8), [#allocation3], %s821_s7 }
  0x18   : > { %p610_p10 = scmp.ne.s32.totalorder (!%p256_p8), %s738_s17, 0 }
  0x1b   : > { %s905_s6 = smov (!%p299_p9, %s608_s6), 47  ;;  %320 = sbr.rel (%p610_p10) target bundleno = 35 (0x23), region = 81 }
  0x1c   : > { %s609_s8 = sshll.u32 %s905_s6, 2 }
  0x1d   : > { %s826_s11 = scalar_lea.vmem %s894_s1, %s609_s8 }
  0x20   : > { %vm321_vm0 = vcmask 261120   ;;  %v748_v4 = vmov 0.0  }
  0x21   : > { %322 = vst.msk [vmem:[#allocation2] sm:$0xff] %vm321_vm0, %v748_v4  ;;  %323 = vst.msk [vmem:[#allocation2 + $0x8] sm:$0xff] %vm321_vm0, %v748_v4 }
  0x22   : > { %324 = vst.msk [vmem:[#allocation2 + $0x10] sm:$0xff] %vm321_vm0, %v748_v4  ;;  %325 = vst.msk [vmem:[#allocation2 + $0x18] sm:$0xff] %vm321_vm0, %v748_v4 }
  0x23 PF: > { %v698_v5 = vld [vmem:[%s826_s11 + $0x38] sm:$0xff]   ;;  %v699_v6 = vld [vmem:[%s826_s11 + $0x30] sm:$0xff]   ;;  %v700_v7 = vld [vmem:[%s826_s11 + $0x28] sm:$0xff]   ;;  %vm463_vm1 = vcmask 261120   ;;  %p621_p11 = scmp.ne.s32.totalorder %s738_s17, 2 }
  0x24   : > { %637 = vmatprep.subr.bf16.mxu0 %v698_v5  ;;  %v701_v8 = vld [vmem:[%s826_s11 + $0x20] sm:$0xff]   ;;  %v702_v10 = vld [vmem:[%s826_s11 + $0x18] sm:$0xff]   ;;  %v703_v11 = vld [vmem:[%s826_s11 + $0x10] sm:$0xff]  }
  0x25   : > { %638 = vmatpush3.bf16.msra.mxu0 %v698_v5  ;;  %v706_v9 = vld [vmem:[%s264_s12] sm:$0xff]   ;;  %v704_v12 = vld [vmem:[%s826_s11 + $0x8] sm:$0xff]  }
  0x26   : > { %639 = vmatprep.subr.bf16.mxu0 %v699_v6  ;;  %653 = vmatprep.mubr.bf16.mxu0 %v706_v9  ;;  %v705_v13 = vld [vmem:[%s826_s11] sm:$0xff]   ;;  %v707_v14 = vld [vmem:[%s264_s12 + $0x8] sm:$0xff]  }
  0x28   : > { %v326_v17 = vld [vmem:[#allocation2] sm:$0xff]  ;;  %v327_v23 = vld [vmem:[#allocation2 + $0x8] sm:$0xff] }
  0x29   : > { %640 = vmatpush3.bf16.msra.mxu0 %v699_v6  ;;  %v328_v15 = vld [vmem:[#allocation2 + $0x10] sm:$0xff]  ;;  %v329_v20 = vld [vmem:[#allocation2 + $0x18] sm:$0xff] }
  0x2a   : > { %641 = vmatprep.subr.bf16.mxu0 %v700_v7 }
  0x2d   : > { %642 = vmatpush3.bf16.msra.mxu0 %v700_v7 }
  0x2e   : > { %643 = vmatprep.subr.bf16.mxu0 %v701_v8 }
  0x31   : > { %644 = vmatpush3.bf16.msra.mxu0 %v701_v8 }
  0x32   : > { %645 = vmatprep.subr.bf16.mxu0 %v702_v10 }
  0x35   : > { %646 = vmatpush3.bf16.msra.mxu0 %v702_v10 }
  0x36   : > { %647 = vmatprep.subr.bf16.mxu0 %v703_v11 }
  0x39   : > { %648 = vmatpush3.bf16.msra.mxu0 %v703_v11 }
  0x3a   : > { %649 = vmatprep.subr.bf16.mxu0 %v704_v12 }
  0x3d   : > { %650 = vmatpush3.bf16.msra.mxu0 %v704_v12 }
  0x3e   : > { %651 = vmatprep.subr.bf16.mxu0 %v705_v13 }
  0x41   : > { %652 = vmatpush3.bf16.msra.mxu0 %v705_v13 }
  0x44   : > { %654 = vmatmul.mubr.bf16.vlgmr.msra.gmra.mxu0 %v707_v14 }
 0x104   : > { %v655_v16 = vpop.f32.mrf.mxu0 }
 0x105   : > { %v461_v18 = vadd.f32 %v655_v16, %v328_v15 }
 0x106   : > { %v444_v19 = vpop.f32.mrf.mxu0 }
 0x107   : > { %466 = vst.msk [vmem:[#allocation2 + $0x10] sm:$0xff] %vm463_vm1, %v461_v18  ;;  %v459_v21 = vadd.f32 %v444_v19, %v326_v17 }
 0x108   : > { %v656_v22 = vpop.f32.mrf.mxu0 }
 0x109   : > { %464 = vst.msk [vmem:[#allocation2] sm:$0xff] %vm463_vm1, %v459_v21  ;;  %v462_v24 = vadd.f32 %v656_v22, %v329_v20  ;;  %471 = sbr.rel (%p621_p11) target bundleno = 284 (0x11c), region = 85 }
 0x10a   : > { %v447_v25 = vpop.f32.mrf.mxu0 }
 0x10b   : > { %467 = vst.msk [vmem:[#allocation2 + $0x18] sm:$0xff] %vm463_vm1, %v462_v24  ;;  %v460_v26 = vadd.f32 %v447_v25, %v327_v23 }
 0x10d   : > { %465 = vst.msk [vmem:[#allocation2 + $0x8] sm:$0xff] %vm463_vm1, %v460_v26 }
 0x10e   : > { %v622_v28 = vld [vmem:[%s895_s2] ss:$0 sm:$0xff]  ;;  %v488_v32 = vld [vmem:[%s896_s3 + $0x8] sm:$0xff]  ;;  %v474_v33 = vld [vmem:[#allocation2 + $0x10] sm:$0xff] }
 0x10f   : > { %v487_v29 = vld [vmem:[%s896_s3] sm:$0xff]  ;;  %v485_v35 = vadd.f32 %v622_v28, %v474_v33  ;;  %v489_v36 = vld [vmem:[%s896_s3 + $0x10] sm:$0xff]  ;;  %v490_v38 = vld [vmem:[%s896_s3 + $0x18] sm:$0xff] }
 0x110   : > { %v472_v27 = vld [vmem:[#allocation2] sm:$0xff] }
 0x111   : > { %v483_v30 = vadd.f32 %v622_v28, %v472_v27  ;;  %v493_v42 = vadd.f32 %v489_v36, %v485_v35 }
 0x112   : > { %v475_v37 = vld [vmem:[#allocation2 + $0x18] sm:$0xff] }
 0x113   : > { %v491_v39 = vadd.f32 %v487_v29, %v483_v30  ;;  %v486_v40 = vadd.f32 %v622_v28, %v475_v37  ;;  %v497_v46 = vmax.f32 %v493_v42, 0.0 }
 0x114   : > { %v473_v31 = vld [vmem:[#allocation2 + $0x8] sm:$0xff] }
 0x115   : > { %v484_v34 = vadd.f32 %v622_v28, %v473_v31  ;;  %v495_v43 = vmax.f32 %v491_v39, 0.0  ;;  %v494_v44 = vadd.f32 %v490_v38, %v486_v40  ;;  %501 = vst.msk [vmem:[%s897_s4 + $0x10] sm:$0xff] %vm463_vm1, %v497_v46 }
 0x117   : > { %v492_v41 = vadd.f32 %v488_v32, %v484_v34  ;;  %499 = vst.msk [vmem:[%s897_s4] sm:$0xff] %vm463_vm1, %v495_v43  ;;  %v498_v47 = vmax.f32 %v494_v44, 0.0 }
 0x119   : > { %v496_v45 = vmax.f32 %v492_v41, 0.0  ;;  %502 = vst.msk [vmem:[%s897_s4 + $0x18] sm:$0xff] %vm463_vm1, %v498_v47 }
 0x11b   : > { %500 = vst.msk [vmem:[%s897_s4 + $0x8] sm:$0xff] %vm463_vm1, %v496_v45 }
 0x11c PF: > { %s14_s19 = sadd.s32 1, %s746_s19   ;;  %s898_s15 = smov %s734_s16 }
 0x11d   : > { %p11_p12 = scmp.ge.s32.totalorder %s14_s19, 5   ;;  %s899_s16 = smov %s809_s23 }
 0x11e   : > { %s900_s17 = smov %s742_s18  ;;  %s901_s18 = smov %s903_s20 }
 0x11f   :  { %13 = sbr.rel (!%p11_p12) target bundleno = 3 (0x3), region = 126 }

// kernel: _lambda_.28
= control target key start
LH: loop header
LB: loop body
LE: loop exit
PB: predicated region body
PF: predicated region fallthrough
CT: control target
= control target key end

     0   :  { %s554_s12 = smov 0   ;;  %s556_s13 = smov 0   ;;  %s613_s0 = inlined_call_operand.vmem [shape: bf16[8,384], index: 0, kind: input, shape index: {}]   ;;  %s614_s1 = inlined_call_operand.vmem [shape: bf16[384,64], index: 1, kind: input, shape index: {}]   ;;  %s615_s2 = inlined_call_operand.vmem [shape: f32[1,64], index: 2, kind: input, shape index: {}]   ;;  %s616_s3 = inlined_call_operand.vmem [shape: f32[8,64], index: 3, kind: output, shape index: {}]  }
   0x1   :  { %s558_s14 = smov 0  }
   0x2 LB: > { %s22_s15 = sadd.s32 1, %s525_s13  ;;  %p425_p0 = scmp.ge.s32.totalorder %s529_s14, 1  ;;  %s529_s14 = sphi %s558_s14, %s13_s14   ;;  %s525_s13 = sphi %s556_s13, %s618_s13   ;;  %s521_s12 = sphi %s554_s12, %s617_s12  }
   0x3   : > { %p23_p1 = scmp.ge.s32.totalorder %s22_s15, 3  ;;  %p165_p2 = scmp.lt.s32.totalorder %s529_s14, 4 }
   0x5   : > { %s620_s15 = smov (%p23_p1, %s22_s15), 0  ;;  %p166_p3 = pnand %p425_p0, %p165_p2 }
   0x6   : > { %p198_p4 = scmp.lt.s32.totalorder (!%p166_p3), %s521_s12, 2  ;;  %s427_s16 = sshll.u32 (!%p166_p3), %s521_s12, 4 }
   0x7   : > { %169 = sbr.rel (%p166_p3) target bundleno = 261 (0x105), region = 32  ;;  %p205_p5 = scmp.lt.s32.totalorder (!%p166_p3), %s427_s16, 47 }
   0x8   : > { %p429_p6 = scmp.ne.s32.totalorder (!%p166_p3), %s521_s12, 0 }
   0xc   : > { %s199_s17 = scalar_select %p198_p4, %s521_s12, 2 }
   0xd   : > { %s622_s16 = smov (!%p205_p5, %s427_s16), 47  ;;  %218 = sbr.rel (%p429_p6) target bundleno = 20 (0x14), region = 36 }
   0xe   : > { %s426_s18 = sshll.u32 %s199_s17, 2  ;;  %s428_s22 = sshll.u32 %s622_s16, 2 }
   0xf   : > { %s580_s21 = scalar_lea.vmem %s613_s0, %s426_s18  ;;  %s585_s25 = scalar_lea.vmem %s614_s1, %s428_s22 }
  0x12   : > { %vm219_vm0 = vcmask 523264   ;;  %v531_v0 = vmov 0.0  }
  0x13   : > { %220 = vst.msk [vmem:[#allocation2] sm:$0xff] %vm219_vm0, %v531_v0 }
  0x14 PF: > { %v499_v1 = vld [vmem:[%s585_s25 + $0x38] sm:$0xff]   ;;  %v532_v2 = vmov 0.0   ;;  %v500_v3 = vld [vmem:[%s585_s25 + $0x30] sm:$0xff]   ;;  %vm533_vm1 = vmmov 0   ;;  %v501_v4 = vld [vmem:[%s585_s25 + $0x28] sm:$0xff]   ;;  %vm328_vm2 = vcmask 523264  }
  0x15   : > { %452 = vmatprep.subr.bf16.mxu0 %v532_v2  ;;  %468 = vmatprep.mubr.msk.bf16.mxu0 %vm533_vm1, %v532_v2  ;;  %v502_v5 = vld [vmem:[%s585_s25 + $0x20] sm:$0xff]   ;;  %v503_v6 = vld [vmem:[%s585_s25 + $0x18] sm:$0xff]   ;;  %v504_v7 = vld [vmem:[%s585_s25 + $0x10] sm:$0xff]   ;;  %p438_p7 = scmp.ne.s32.totalorder %s521_s12, 2 }
  0x16   : > { %453 = vmatpush3.bf16.msra.mxu0 %v499_v1  ;;  %v505_v8 = vld [vmem:[%s585_s25 + $0x8] sm:$0xff]   ;;  %v506_v9 = vld [vmem:[%s585_s25] sm:$0xff]  }
  0x17   : > { %454 = vmatprep.subr.bf16.mxu0 %v532_v2  ;;  %v222_v10 = vld [vmem:[%s580_s21] sm:$0xf] }
  0x1a   : > { %455 = vmatpush3.bf16.msra.mxu0 %v500_v3  ;;  %v221_v11 = vld [vmem:[#allocation2] sm:$0xff] }
  0x1b   : > { %456 = vmatprep.subr.bf16.mxu0 %v532_v2 }
  0x1e   : > { %457 = vmatpush3.bf16.msra.mxu0 %v501_v4 }
  0x1f   : > { %458 = vmatprep.subr.bf16.mxu0 %v532_v2 }
  0x22   : > { %459 = vmatpush3.bf16.msra.mxu0 %v502_v5 }
  0x23   : > { %460 = vmatprep.subr.bf16.mxu0 %v532_v2 }
  0x26   : > { %461 = vmatpush3.bf16.msra.mxu0 %v503_v6 }
  0x27   : > { %462 = vmatprep.subr.bf16.mxu0 %v532_v2 }
  0x2a   : > { %463 = vmatpush3.bf16.msra.mxu0 %v504_v7 }
  0x2b   : > { %464 = vmatprep.subr.bf16.mxu0 %v532_v2 }
  0x2e   : > { %465 = vmatpush3.bf16.msra.mxu0 %v505_v8 }
  0x2f   : > { %466 = vmatprep.subr.bf16.mxu0 %v532_v2 }
  0x32   : > { %467 = vmatpush3.bf16.msra.mxu0 %v506_v9 }
  0x35   : > { %469 = vmatmul.mubr.bf16.vlgmr.msra.gmra.mxu0 %v222_v10 }
  0xf5   : > { %v321_v12 = vpop.f32.mrf.mxu0 }
  0xf6   : > { %v327_v13 = vadd.f32 %v321_v12, %v221_v11 }
  0xf7   : > { %v470_v14 = vpop.f32.mrf.mxu0  ;;  %333 = sbr.rel (%p438_p7) target bundleno = 261 (0x105), region = 40 }
  0xf8   : > { %329 = vst.msk [vmem:[#allocation2] sm:$0xff] %vm328_vm2, %v327_v13 }
  0xf9   : > { %v324_v15 = vpop.f32.mrf.mxu0 }
  0xfb   : > { %v471_v16 = vpop.f32.mrf.mxu0 }
  0xfc   : > { %v439_v18 = vld [vmem:[%s615_s2] ss:$0 sm:$0xff] }
  0xff   : > { %v334_v17 = vld [vmem:[#allocation2] sm:$0xff] }
 0x100   : > { %v342_v19 = vadd.f32 %v439_v18, %v334_v17 }
 0x102   : > { %v343_v20 = vmax.f32 %v342_v19, 0.0 }
 0x104   : > { %344 = vst.msk [vmem:[%s616_s3] sm:$0xff] %vm328_vm2, %v343_v20 }
 0x105 PF: > { %s13_s14 = sadd.s32 1, %s529_s14   ;;  %s617_s12 = smov %s525_s13 }
 0x106   : > { %p10_p8 = scmp.ge.s32.totalorder %s13_s14, 5   ;;  %s618_s13 = smov %s620_s15 }
 0x108   :  { %12 = sbr.rel (!%p10_p8) target bundleno = 2 (0x2), region = 73 }

// kernel: _lambda_.29
= control target key start
LH: loop header
LB: loop body
LE: loop exit
PB: predicated region body
PF: predicated region fallthrough
CT: control target
= control target key end

     0   :  { %vm19_vm0 = vcmask 523264   ;;  %v195_v0 = vmov 0.0   ;;  %vm196_vm1 = vmmov 0   ;;  %s253_s1 = inlined_call_operand.vmem [shape: bf16[128,64], index: 1, kind: input, shape index: {}]   ;;  %s254_s0 = inlined_call_operand.vmem [shape: bf16[8,128], index: 0, kind: input, shape index: {}]   ;;  %s255_s2 = inlined_call_operand.vmem [shape: f32[1,64], index: 2, kind: input, shape index: {}]   ;;  %s256_s3 = inlined_call_operand.vmem [shape: f32[8,64], index: 3, kind: output, shape index: {}]  }
   0x1   :  { %165 = vmatprep.subr.bf16.mxu0 %v195_v0  ;;  %v187_v1 = vld [vmem:[%s253_s1 + $0x38] sm:$0xff]   ;;  %181 = vmatprep.mubr.msk.bf16.mxu0 %vm196_vm1, %v195_v0  ;;  %20 = vst.msk [vmem:[#allocation2] sm:$0xff] %vm19_vm0, %v195_v0  ;;  %v188_v2 = vld [vmem:[%s253_s1 + $0x30] sm:$0xff]   ;;  %v189_v3 = vld [vmem:[%s253_s1 + $0x28] sm:$0xff]  }
   0x2   :  { %166 = vmatpush3.bf16.msra.mxu0 %v187_v1  ;;  %v190_v4 = vld [vmem:[%s253_s1 + $0x20] sm:$0xff]   ;;  %v191_v5 = vld [vmem:[%s253_s1 + $0x18] sm:$0xff]   ;;  %v192_v6 = vld [vmem:[%s253_s1 + $0x10] sm:$0xff]  }
   0x3   :  { %167 = vmatprep.subr.bf16.mxu0 %v195_v0  ;;  %v193_v7 = vld [vmem:[%s253_s1 + $0x8] sm:$0xff]   ;;  %v194_v8 = vld [vmem:[%s253_s1] sm:$0xff]  }
   0x4   :  { %v22_v9 = vld [vmem:[%s254_s0] sm:$0xf] }
   0x5   :  { %v155_v16 = vld [vmem:[%s255_s2] ss:$0 sm:$0xff] }
   0x6   :  { %168 = vmatpush3.bf16.msra.mxu0 %v188_v2 }
   0x7   :  { %169 = vmatprep.subr.bf16.mxu0 %v195_v0 }
   0x8   :  { %v21_v10 = vld [vmem:[#allocation2] sm:$0xff] }
   0xa   :  { %170 = vmatpush3.bf16.msra.mxu0 %v189_v3 }
   0xb   :  { %171 = vmatprep.subr.bf16.mxu0 %v195_v0 }
   0xe   :  { %172 = vmatpush3.bf16.msra.mxu0 %v190_v4 }
   0xf   :  { %173 = vmatprep.subr.bf16.mxu0 %v195_v0 }
  0x12   :  { %174 = vmatpush3.bf16.msra.mxu0 %v191_v5 }
  0x13   :  { %175 = vmatprep.subr.bf16.mxu0 %v195_v0 }
  0x16   :  { %176 = vmatpush3.bf16.msra.mxu0 %v192_v6 }
  0x17   :  { %177 = vmatprep.subr.bf16.mxu0 %v195_v0 }
  0x1a   :  { %178 = vmatpush3.bf16.msra.mxu0 %v193_v7 }
  0x1b   :  { %179 = vmatprep.subr.bf16.mxu0 %v195_v0 }
  0x1e   :  { %180 = vmatpush3.bf16.msra.mxu0 %v194_v8 }
  0x21   :  { %182 = vmatmul.mubr.bf16.vlgmr.msra.gmra.mxu0 %v22_v9 }
  0xe1   :  { %v121_v11 = vpop.f32.mrf.mxu0 }
  0xe2   :  { %v127_v12 = vadd.f32 %v121_v11, %v21_v10 }
  0xe3   :  { %v183_v13 = vpop.f32.mrf.mxu0 }
  0xe4   :  { %129 = vst.msk [vmem:[#allocation2] sm:$0xff] %vm19_vm0, %v127_v12 }
  0xe5   :  { %v124_v14 = vpop.f32.mrf.mxu0 }
  0xe7   :  { %v184_v15 = vpop.f32.mrf.mxu0 }
  0xeb   :  { %v133_v17 = vld [vmem:[#allocation2] sm:$0xff] }
  0xec   :  { %v141_v18 = vadd.f32 %v155_v16, %v133_v17 }
  0xee   :  { %142 = vst.msk [vmem:[%s256_s3] sm:$0xff] %vm19_vm0, %v141_v18 }

// kernel: _lambda_.30
= control target key start
LH: loop header
LB: loop body
LE: loop exit
PB: predicated region body
PF: predicated region fallthrough
CT: control target
= control target key end

     0   :  { %s621_s15 = smov 0   ;;  %s623_s16 = smov 0   ;;  %s683_s0 = inlined_call_operand.vmem [shape: bf16[8,640], index: 0, kind: input, shape index: {}]   ;;  %s684_s1 = inlined_call_operand.vmem [shape: bf16[640,64], index: 1, kind: input, shape index: {}]   ;;  %s685_s2 = inlined_call_operand.vmem [shape: f32[1,64], index: 2, kind: input, shape index: {}]   ;;  %s686_s3 = inlined_call_operand.vmem [shape: f32[8,64], index: 3, kind: input, shape index: {}]   ;;  %s687_s4 = inlined_call_operand.vmem [shape: f32[8,64], index: 4, kind: output, shape index: {}]  }
   0x1   :  { %s625_s17 = smov 0  }
   0x2 LB: > { %s23_s18 = sadd.s32 1, %s587_s16  ;;  %p487_p0 = scmp.ge.s32.totalorder %s591_s17, 1  ;;  %s591_s17 = sphi %s625_s17, %s14_s17   ;;  %s587_s16 = sphi %s623_s16, %s689_s16   ;;  %s583_s15 = sphi %s621_s15, %s688_s15  }
   0x3   : > { %p24_p1 = scmp.ge.s32.totalorder %s23_s18, 5  ;;  %p199_p2 = scmp.lt.s32.totalorder %s591_s17, 6 }
   0x5   : > { %s691_s18 = smov (%p24_p1, %s23_s18), 0  ;;  %p200_p3 = pnand %p487_p0, %p199_p2 }
   0x6   : > { %p238_p4 = scmp.lt.s32.totalorder (!%p200_p3), %s583_s15, 4  ;;  %s489_s19 = sshll.u32 (!%p200_p3), %s583_s15, 4 }
   0x7   : > { %203 = sbr.rel (%p200_p3) target bundleno = 263 (0x107), region = 36  ;;  %p245_p5 = scmp.lt.s32.totalorder (!%p200_p3), %s489_s19, 79 }
   0x8   : > { %p491_p6 = scmp.ne.s32.totalorder (!%p200_p3), %s583_s15, 0 }
   0xc   : > { %s239_s20 = scalar_select %p238_p4, %s583_s15, 4 }
   0xd   : > { %s693_s19 = smov (!%p245_p5, %s489_s19), 79  ;;  %262 = sbr.rel (%p491_p6) target bundleno = 20 (0x14), region = 40 }
   0xe   : > { %s488_s21 = sshll.u32 %s239_s20, 2  ;;  %s490_s25 = sshll.u32 %s693_s19, 2 }
   0xf   : > { %s647_s24 = scalar_lea.vmem %s683_s0, %s488_s21  ;;  %s652_s28 = scalar_lea.vmem %s684_s1, %s490_s25 }
  0x12   : > { %vm263_vm0 = vcmask 523264   ;;  %v593_v0 = vmov 0.0  }
  0x13   : > { %264 = vst.msk [vmem:[#allocation2] sm:$0xff] %vm263_vm0, %v593_v0 }
  0x14 PF: > { %v561_v1 = vld [vmem:[%s652_s28 + $0x38] sm:$0xff]   ;;  %v594_v2 = vmov 0.0   ;;  %v562_v3 = vld [vmem:[%s652_s28 + $0x30] sm:$0xff]   ;;  %vm595_vm1 = vmmov 0   ;;  %v563_v4 = vld [vmem:[%s652_s28 + $0x28] sm:$0xff]   ;;  %vm372_vm2 = vcmask 523264  }
  0x15   : > { %514 = vmatprep.subr.bf16.mxu0 %v594_v2  ;;  %530 = vmatprep.mubr.msk.bf16.mxu0 %vm595_vm1, %v594_v2  ;;  %v564_v5 = vld [vmem:[%s652_s28 + $0x20] sm:$0xff]   ;;  %v565_v6 = vld [vmem:[%s652_s28 + $0x18] sm:$0xff]   ;;  %v566_v7 = vld [vmem:[%s652_s28 + $0x10] sm:$0xff]   ;;  %p500_p7 = scmp.ne.s32.totalorder %s583_s15, 4 }
  0x16   : > { %515 = vmatpush3.bf16.msra.mxu0 %v561_v1  ;;  %v567_v8 = vld [vmem:[%s652_s28 + $0x8] sm:$0xff]   ;;  %v568_v9 = vld [vmem:[%s652_s28] sm:$0xff]  }
  0x17   : > { %516 = vmatprep.subr.bf16.mxu0 %v594_v2  ;;  %v266_v10 = vld [vmem:[%s647_s24] sm:$0xf] }
  0x1a   : > { %517 = vmatpush3.bf16.msra.mxu0 %v562_v3  ;;  %v265_v11 = vld [vmem:[#allocation2] sm:$0xff] }
  0x1b   : > { %518 = vmatprep.subr.bf16.mxu0 %v594_v2 }
  0x1e   : > { %519 = vmatpush3.bf16.msra.mxu0 %v563_v4 }
  0x1f   : > { %520 = vmatprep.subr.bf16.mxu0 %v594_v2 }
  0x22   : > { %521 = vmatpush3.bf16.msra.mxu0 %v564_v5 }
  0x23   : > { %522 = vmatprep.subr.bf16.mxu0 %v594_v2 }
  0x26   : > { %523 = vmatpush3.bf16.msra.mxu0 %v565_v6 }
  0x27   : > { %524 = vmatprep.subr.bf16.mxu0 %v594_v2 }
  0x2a   : > { %525 = vmatpush3.bf16.msra.mxu0 %v566_v7 }
  0x2b   : > { %526 = vmatprep.subr.bf16.mxu0 %v594_v2 }
  0x2e   : > { %527 = vmatpush3.bf16.msra.mxu0 %v567_v8 }
  0x2f   : > { %528 = vmatprep.subr.bf16.mxu0 %v594_v2 }
  0x32   : > { %529 = vmatpush3.bf16.msra.mxu0 %v568_v9 }
  0x35   : > { %531 = vmatmul.mubr.bf16.vlgmr.msra.gmra.mxu0 %v266_v10 }
  0xf5   : > { %v365_v12 = vpop.f32.mrf.mxu0 }
  0xf6   : > { %v371_v13 = vadd.f32 %v365_v12, %v265_v11 }
  0xf7   : > { %v532_v14 = vpop.f32.mrf.mxu0  ;;  %377 = sbr.rel (%p500_p7) target bundleno = 263 (0x107), region = 44 }
  0xf8   : > { %373 = vst.msk [vmem:[#allocation2] sm:$0xff] %vm372_vm2, %v371_v13 }
  0xf9   : > { %v368_v15 = vpop.f32.mrf.mxu0 }
  0xfb   : > { %v533_v16 = vpop.f32.mrf.mxu0 }
  0xfc   : > { %v501_v18 = vld [vmem:[%s685_s2] ss:$0 sm:$0xff] }
  0xfd   : > { %v387_v19 = vld [vmem:[%s686_s3] sm:$0xff] }
  0xff   : > { %v378_v17 = vld [vmem:[#allocation2] sm:$0xff] }
 0x100   : > { %v386_v20 = vadd.f32 %v501_v18, %v378_v17 }
 0x102   : > { %v388_v21 = vadd.f32 %v387_v19, %v386_v20 }
 0x104   : > { %v389_v22 = vmax.f32 %v388_v21, 0.0 }
 0x106   : > { %390 = vst.msk [vmem:[%s687_s4] sm:$0xff] %vm372_vm2, %v389_v22 }
 0x107 PF: > { %s14_s17 = sadd.s32 1, %s591_s17   ;;  %s688_s15 = smov %s587_s16 }
 0x108   : > { %p11_p8 = scmp.ge.s32.totalorder %s14_s17, 7   ;;  %s689_s16 = smov %s691_s18 }
 0x10a   :  { %13 = sbr.rel (!%p11_p8) target bundleno = 2 (0x2), region = 80 }

// kernel: _lambda_.31
= control target key start
LH: loop header
LB: loop body
LE: loop exit
PB: predicated region body
PF: predicated region fallthrough
CT: control target
= control target key end

     0   :  { %s554_s12 = smov 0   ;;  %s556_s13 = smov 0   ;;  %s613_s0 = inlined_call_operand.vmem [shape: bf16[8,640], index: 0, kind: input, shape index: {}]   ;;  %s614_s1 = inlined_call_operand.vmem [shape: bf16[640,64], index: 1, kind: input, shape index: {}]   ;;  %s615_s2 = inlined_call_operand.vmem [shape: f32[1,64], index: 2, kind: input, shape index: {}]   ;;  %s616_s3 = inlined_call_operand.vmem [shape: f32[8,64], index: 3, kind: output, shape index: {}]  }
   0x1   :  { %s558_s14 = smov 0  }
   0x2 LB: > { %s22_s15 = sadd.s32 1, %s525_s13  ;;  %p425_p0 = scmp.ge.s32.totalorder %s529_s14, 1  ;;  %s529_s14 = sphi %s558_s14, %s13_s14   ;;  %s525_s13 = sphi %s556_s13, %s618_s13   ;;  %s521_s12 = sphi %s554_s12, %s617_s12  }
   0x3   : > { %p23_p1 = scmp.ge.s32.totalorder %s22_s15, 5  ;;  %p165_p2 = scmp.lt.s32.totalorder %s529_s14, 6 }
   0x5   : > { %s620_s15 = smov (%p23_p1, %s22_s15), 0  ;;  %p166_p3 = pnand %p425_p0, %p165_p2 }
   0x6   : > { %p198_p4 = scmp.lt.s32.totalorder (!%p166_p3), %s521_s12, 4  ;;  %s427_s16 = sshll.u32 (!%p166_p3), %s521_s12, 4 }
   0x7   : > { %169 = sbr.rel (%p166_p3) target bundleno = 261 (0x105), region = 32  ;;  %p205_p5 = scmp.lt.s32.totalorder (!%p166_p3), %s427_s16, 79 }
   0x8   : > { %p429_p6 = scmp.ne.s32.totalorder (!%p166_p3), %s521_s12, 0 }
   0xc   : > { %s199_s17 = scalar_select %p198_p4, %s521_s12, 4 }
   0xd   : > { %s622_s16 = smov (!%p205_p5, %s427_s16), 79  ;;  %218 = sbr.rel (%p429_p6) target bundleno = 20 (0x14), region = 36 }
   0xe   : > { %s426_s18 = sshll.u32 %s199_s17, 2  ;;  %s428_s22 = sshll.u32 %s622_s16, 2 }
   0xf   : > { %s580_s21 = scalar_lea.vmem %s613_s0, %s426_s18  ;;  %s585_s25 = scalar_lea.vmem %s614_s1, %s428_s22 }
  0x12   : > { %vm219_vm0 = vcmask 523264   ;;  %v531_v0 = vmov 0.0  }
  0x13   : > { %220 = vst.msk [vmem:[#allocation2] sm:$0xff] %vm219_vm0, %v531_v0 }
  0x14 PF: > { %v499_v1 = vld [vmem:[%s585_s25 + $0x38] sm:$0xff]   ;;  %v532_v2 = vmov 0.0   ;;  %v500_v3 = vld [vmem:[%s585_s25 + $0x30] sm:$0xff]   ;;  %vm533_vm1 = vmmov 0   ;;  %v501_v4 = vld [vmem:[%s585_s25 + $0x28] sm:$0xff]   ;;  %vm328_vm2 = vcmask 523264  }
  0x15   : > { %452 = vmatprep.subr.bf16.mxu0 %v532_v2  ;;  %468 = vmatprep.mubr.msk.bf16.mxu0 %vm533_vm1, %v532_v2  ;;  %v502_v5 = vld [vmem:[%s585_s25 + $0x20] sm:$0xff]   ;;  %v503_v6 = vld [vmem:[%s585_s25 + $0x18] sm:$0xff]   ;;  %v504_v7 = vld [vmem:[%s585_s25 + $0x10] sm:$0xff]   ;;  %p438_p7 = scmp.ne.s32.totalorder %s521_s12, 4 }
  0x16   : > { %453 = vmatpush3.bf16.msra.mxu0 %v499_v1  ;;  %v505_v8 = vld [vmem:[%s585_s25 + $0x8] sm:$0xff]   ;;  %v506_v9 = vld [vmem:[%s585_s25] sm:$0xff]  }
  0x17   : > { %454 = vmatprep.subr.bf16.mxu0 %v532_v2  ;;  %v222_v10 = vld [vmem:[%s580_s21] sm:$0xf] }
  0x1a   : > { %455 = vmatpush3.bf16.msra.mxu0 %v500_v3  ;;  %v221_v11 = vld [vmem:[#allocation2] sm:$0xff] }
  0x1b   : > { %456 = vmatprep.subr.bf16.mxu0 %v532_v2 }
  0x1e   : > { %457 = vmatpush3.bf16.msra.mxu0 %v501_v4 }
  0x1f   : > { %458 = vmatprep.subr.bf16.mxu0 %v532_v2 }
  0x22   : > { %459 = vmatpush3.bf16.msra.mxu0 %v502_v5 }
  0x23   : > { %460 = vmatprep.subr.bf16.mxu0 %v532_v2 }
  0x26   : > { %461 = vmatpush3.bf16.msra.mxu0 %v503_v6 }
  0x27   : > { %462 = vmatprep.subr.bf16.mxu0 %v532_v2 }
  0x2a   : > { %463 = vmatpush3.bf16.msra.mxu0 %v504_v7 }
  0x2b   : > { %464 = vmatprep.subr.bf16.mxu0 %v532_v2 }
  0x2e   : > { %465 = vmatpush3.bf16.msra.mxu0 %v505_v8 }
  0x2f   : > { %466 = vmatprep.subr.bf16.mxu0 %v532_v2 }
  0x32   : > { %467 = vmatpush3.bf16.msra.mxu0 %v506_v9 }
  0x35   : > { %469 = vmatmul.mubr.bf16.vlgmr.msra.gmra.mxu0 %v222_v10 }
  0xf5   : > { %v321_v12 = vpop.f32.mrf.mxu0 }
  0xf6   : > { %v327_v13 = vadd.f32 %v321_v12, %v221_v11 }
  0xf7   : > { %v470_v14 = vpop.f32.mrf.mxu0  ;;  %333 = sbr.rel (%p438_p7) target bundleno = 261 (0x105), region = 40 }
  0xf8   : > { %329 = vst.msk [vmem:[#allocation2] sm:$0xff] %vm328_vm2, %v327_v13 }
  0xf9   : > { %v324_v15 = vpop.f32.mrf.mxu0 }
  0xfb   : > { %v471_v16 = vpop.f32.mrf.mxu0 }
  0xfc   : > { %v439_v18 = vld [vmem:[%s615_s2] ss:$0 sm:$0xff] }
  0xff   : > { %v334_v17 = vld [vmem:[#allocation2] sm:$0xff] }
 0x100   : > { %v342_v19 = vadd.f32 %v439_v18, %v334_v17 }
 0x102   : > { %v343_v20 = vmax.f32 %v342_v19, 0.0 }
 0x104   : > { %344 = vst.msk [vmem:[%s616_s3] sm:$0xff] %vm328_vm2, %v343_v20 }
 0x105 PF: > { %s13_s14 = sadd.s32 1, %s529_s14   ;;  %s617_s12 = smov %s525_s13 }
 0x106   : > { %p10_p8 = scmp.ge.s32.totalorder %s13_s14, 7   ;;  %s618_s13 = smov %s620_s15 }
 0x108   :  { %12 = sbr.rel (!%p10_p8) target bundleno = 2 (0x2), region = 73 }

// kernel: _lambda_.33
= control target key start
LH: loop header
LB: loop body
LE: loop exit
PB: predicated region body
PF: predicated region fallthrough
CT: control target
= control target key end

     0   :  { %vm19_vm0 = vcmask 15360   ;;  %v278_v19 = vmov 0.0   ;;  %s359_s1 = inlined_call_operand.vmem [shape: bf16[256,2], index: 1, kind: input, shape index: {}]   ;;  %s360_s0 = inlined_call_operand.vmem [shape: bf16[8,256], index: 0, kind: input, shape index: {}]   ;;  %s361_s2 = inlined_call_operand.vmem [shape: f32[1,2], index: 2, kind: input, shape index: {}]   ;;  %s362_s3 = inlined_call_operand.vmem [shape: f32[8,2], index: 3, kind: output, shape index: {}]  }
   0x1   :  { %v260_v0 = vld [vmem:[%s359_s1 + $0x78] sm:$0xff]   ;;  %v262_v2 = vld [vmem:[%s359_s1 + $0x70] sm:$0xff]   ;;  %v264_v4 = vld [vmem:[%s359_s1 + $0x68] sm:$0xff]   ;;  %20 = vst.msk [vmem:[#allocation2] sm:$0xff] %vm19_vm0, %v278_v19 }
   0x2   :  { %v261_v1 = vld [vmem:[%s359_s1 + $0x38] sm:$0xff]   ;;  %237 = vmatprep.subr.bf16.mxu0 %v260_v0  ;;  %v263_v3 = vld [vmem:[%s359_s1 + $0x30] sm:$0xff]   ;;  %v265_v5 = vld [vmem:[%s359_s1 + $0x28] sm:$0xff]  }
   0x3   :  { %238 = vmatpush3.bf16.msra.mxu0 %v261_v1  ;;  %v266_v6 = vld [vmem:[%s359_s1 + $0x60] sm:$0xff]   ;;  %v268_v8 = vld [vmem:[%s359_s1 + $0x58] sm:$0xff]   ;;  %v270_v10 = vld [vmem:[%s359_s1 + $0x50] sm:$0xff]  }
   0x4   :  { %239 = vmatprep.subr.bf16.mxu0 %v262_v2  ;;  %v267_v7 = vld [vmem:[%s359_s1 + $0x20] sm:$0xff]   ;;  %v269_v9 = vld [vmem:[%s359_s1 + $0x18] sm:$0xff]   ;;  %v271_v13 = vld [vmem:[%s359_s1 + $0x10] sm:$0xff]  }
   0x5   :  { %v22_v11 = vld [vmem:[%s360_s0] sm:$0xff]  ;;  %v272_v14 = vld [vmem:[%s359_s1 + $0x48] sm:$0xff]  }
   0x6   :  { %v219_v12 = vcombine.high %v22_v11, %v22_v11  ;;  %v273_v15 = vld [vmem:[%s359_s1 + $0x8] sm:$0xff]   ;;  %v274_v16 = vld [vmem:[%s359_s1 + $0x40] sm:$0xff]   ;;  %v218_v18 = vcombine.low %v22_v11, %v22_v11 }
   0x7   :  { %240 = vmatpush3.bf16.msra.mxu0 %v263_v3  ;;  %v275_v17 = vld [vmem:[%s359_s1] sm:$0xff]  }
   0x8   :  { %241 = vmatprep.subr.bf16.mxu0 %v264_v4  ;;  %190 = vmatprep.mubr.bf16.mxu0 %v219_v12  ;;  %v21_v21 = vld [vmem:[#allocation2] sm:$0xff] }
   0x9   :  { %v236_v27 = vld [vmem:[%s361_s2] ss:$0 sm:$0xff] }
   0xb   :  { %242 = vmatpush3.bf16.msra.mxu0 %v265_v5 }
   0xc   :  { %243 = vmatprep.subr.bf16.mxu0 %v266_v6 }
   0xf   :  { %244 = vmatpush3.bf16.msra.mxu0 %v267_v7 }
  0x10   :  { %245 = vmatprep.subr.bf16.mxu0 %v268_v8 }
  0x13   :  { %246 = vmatpush3.bf16.msra.mxu0 %v269_v9 }
  0x14   :  { %247 = vmatprep.subr.bf16.mxu0 %v270_v10 }
  0x17   :  { %248 = vmatpush3.bf16.msra.mxu0 %v271_v13 }
  0x18   :  { %249 = vmatprep.subr.bf16.mxu0 %v272_v14 }
  0x1b   :  { %250 = vmatpush3.bf16.msra.mxu0 %v273_v15 }
  0x1c   :  { %251 = vmatprep.subr.bf16.mxu0 %v274_v16 }
  0x1f   :  { %252 = vmatpush3.bf16.msra.mxu0 %v275_v17 }
  0x22   :  { %191 = vmatmul.mubr.bf16.vlgmr.msra.gmra.mxu0 %v218_v18 }
  0xe2   :  { %v253_v20 = vpop.f32.mrf.mxu0 }
  0xe4   :  { %v254_v22 = vpop.f32.mrf.mxu0 }
  0xe5   :  { %v255_v23 = vadd.f32 %v254_v22, %v253_v20 }
  0xe6   :  { %v256_v24 = vpop.f32.mrf.mxu0 }
  0xe7   :  { %v198_v25 = vadd.f32 %v255_v23, %v21_v21 }
  0xe8   :  { %v257_v26 = vpop.f32.mrf.mxu0 }
  0xe9   :  { %200 = vst.msk [vmem:[#allocation2] sm:$0xff] %vm19_vm0, %v198_v25 }
  0xf0   :  { %v204_v28 = vld [vmem:[#allocation2] sm:$0xff] }
  0xf1   :  { %v212_v29 = vadd.f32 %v236_v27, %v204_v28 }
  0xf3   :  { %213 = vst.msk [vmem:[%s362_s3] sm:$0xff] %vm19_vm0, %v212_v29 }

</bundles_post_ra>
